<compile_context>
chip_gen: v7x
topology: tpu7x:2x2x1
jax: 0.10.0
libtpu: 0.0.40
codegen_flags: <defaults>
</compile_context>

<pallas_src>
import numpy as np

import jax
import jax.numpy as jnp
from jax.experimental import pallas as pl
from jax.experimental.pallas import tpu as pltpu


# ---------------------------------------------------------------------------
# Layout constants (SimpleCNN is shape-locked to 32x32 inputs by fc1).
# ---------------------------------------------------------------------------
_H_IN = 32                      # input spatial size
_C_IN = 3
_C1, _C2 = 16, 32               # conv channel counts
_XCOLS = _H_IN * _C_IN          # 96:  input row = [w*3 + c]
_W1_COLS = 2 * 15 * _C1         # 480: conv1 out cols, (parity, j, co) ordered
_W2_COLS = 2 * 6 * _C2          # 384: conv2 out cols, (parity, jj, co) ordered
_P1_COLS = 15 * _C1             # 240: pooled-1 cols, [j*16 + c]
_P2_COLS = 6 * _C2              # 192: pooled-2 cols, [jj*32 + c]


# ---------------------------------------------------------------------------
# The fused kernel: one image per grid step, everything VMEM-resident.
# ---------------------------------------------------------------------------
def _simple_cnn_kernel(x_ref, t1_ref, b1_ref, t2_ref, b2_ref,
                       wfc1_ref, bfc1_ref, wfc2_ref, bfc2_ref, o_ref):
    f32 = jnp.float32

    def pool_relu(a, b, half, bias):
        # bias + ReLU + 2x2 max-pool over two row-parity groups whose columns
        # are width-parity-major (even-ow half | odd-ow half).
        m = jnp.maximum(jnp.maximum(a[:, :half], a[:, half:2 * half]),
                        jnp.maximum(b[:, :half], b[:, half:2 * half]))
        return jnp.maximum(m + bias, 0.0)

    # ---- input image, rows pre-split by (h mod 4): h_grp[p][v] = row 4v+p --
    h_grp = [x_ref[0, p, :, :] for p in range(4)]            # 4 x (8, 96)

    # ---- conv1: output rows grouped by (oh mod 4); 3 banded matmuls each ---
    rows = (8, 8, 7, 7)                                      # rows in group m
    g = []
    for m in range(4):
        acc = None
        for kh in range(3):
            q, p = divmod(m + kh, 4)                         # input row 4(u+q)+p
            term = jnp.dot(h_grp[p][q:q + rows[m], :], t1_ref[kh],
                           preferred_element_type=f32)
            acc = term if acc is None else acc + term
        g.append(acc)                                        # (rows[m], 480)

    # ---- fused bias + ReLU + pool #1 -> 15x15x16 image, rows split by parity
    #      (exactly the row grouping conv2 needs) ----------------------------
    p_even = pool_relu(g[0], g[1], _P1_COLS, b1_ref[...])    # rows 0,2,..,14
    p_odd = pool_relu(g[2], g[3], _P1_COLS, b1_ref[...])     # rows 1,3,..,13

    # ---- conv2: even / odd output rows (row 12 & col 12 are dropped by the
    #      floor-mode pool, so they are never computed) ----------------------
    def conv2(r0, r1, r2):
        acc = jnp.dot(r0, t2_ref[0], preferred_element_type=f32)
        acc = acc + jnp.dot(r1, t2_ref[1], preferred_element_type=f32)
        acc = acc + jnp.dot(r2, t2_ref[2], preferred_element_type=f32)
        return acc                                           # (6, 384)

    out_e = conv2(p_even[0:6, :], p_odd[0:6, :], p_even[1:7, :])   # oh = 0,2,..,10
    out_o = conv2(p_odd[0:6, :], p_even[1:7, :], p_odd[1:7, :])    # oh = 1,3,..,11

    # ---- fused bias + ReLU + pool #2 -> (6, 192) = [h, w*32 + c] -----------
    pooled2 = pool_relu(out_e, out_o, _P2_COLS, b2_ref[...])

    # ---- fc1 (+ReLU): flatten handled as 6 accumulating matmuls over h -----
    z = jnp.dot(pooled2[0:1, :], wfc1_ref[0:_P2_COLS, :],
                preferred_element_type=f32)
    for hh in range(1, 6):
        z = z + jnp.dot(pooled2[hh:hh + 1, :],
                        wfc1_ref[hh * _P2_COLS:(hh + 1) * _P2_COLS, :],
                        preferred_element_type=f32)
    z = jnp.maximum(z + bfc1_ref[...], 0.0)                  # (1, 64)

    # ---- fc2 ---------------------------------------------------------------
    o_ref[0] = (jnp.dot(z, wfc2_ref[...], preferred_element_type=f32)
                + bfc2_ref[...])


# ---------------------------------------------------------------------------
# Forward wrapper
# ---------------------------------------------------------------------------
def _resident(arr):
    """Whole-array BlockSpec with a constant index map (fetched into VMEM once)."""
    nd = arr.ndim
    return pl.BlockSpec(arr.shape, lambda b, _nd=nd: (0,) * _nd)


@jax.jit
def simple_cnn_forward(kparams, x):
    """x: (N, 3, 32, 32) float32 -> logits (N, 10). One fused pallas_call."""
    n = x.shape[0]
    # (N, 3, 32, 32) -> row-major (H, W*C) image, rows split by (h mod 4).
    xs = x.transpose(0, 2, 3, 1).reshape(n, _H_IN, _XCOLS)
    xs = xs.reshape(n, 8, 4, _XCOLS).transpose(0, 2, 1, 3)   # (N, 4, 8, 96)

    weights = (kparams["t1"], kparams["b1"], kparams["t2"], kparams["b2"],
               kparams["wfc1"], kparams["bfc1"], kparams["wfc2"],
               kparams["bfc2"])

    out = pl.pallas_call(
        _simple_cnn_kernel,
        out_shape=jax.ShapeDtypeStruct((n, 1, 10), jnp.float32),
        grid_spec=pltpu.PrefetchScalarGridSpec(
            num_scalar_prefetch=0,
            grid=(n,),
            in_specs=[pl.BlockSpec((1, 4, 8, _XCOLS), lambda b: (b, 0, 0, 0))]
                     + [_resident(w) for w in weights],
            out_specs=pl.BlockSpec((1, 1, 10), lambda b: (b, 0, 0)),
        ),
        compiler_params=pltpu.CompilerParams(
            dimension_semantics=("parallel",)),
    )(xs, *weights)
    return out.reshape(n, 10)


# ---------------------------------------------------------------------------
# One-time weight preparation (banded conv matrices, pre-permuted fc weights)
# ---------------------------------------------------------------------------
def _conv_band_matrices(w_oihw, in_w, col_base, n_cols):
    """Per-kh banded matrices turning a 3x3 valid conv on a row-major
    (H, W*Cin) image into 3 accumulating 2-D matmuls.

    T[kh][w*Cin + ci, col_base[ow] + co] = w[co, ci, kh, w - ow],  0 <= w-ow < 3
    col_base[ow] < 0 means that output column is dropped (floor-mode pooling).
    """
    co_n, ci_n, kh_n, kw_n = w_oihw.shape
    out_w = in_w - kw_n + 1
    t = np.zeros((kh_n, in_w * ci_n, n_cols), np.float32)
    for kh in range(kh_n):
        for ow in range(out_w):
            base = int(col_base[ow])
            if base < 0:
                continue
            for kw in range(kw_n):
                wi = ow + kw
                for ci in range(ci_n):
                    t[kh, wi * ci_n + ci, base:base + co_n] = w_oihw[:, ci, kh, kw]
    return t


def prepare_params(params):
    """Convert PyTorch-layout params into the kernel's VMEM-resident form."""
    w1 = np.asarray(params["conv1_w"], np.float32)   # (16, 3, 3, 3)
    b1 = np.asarray(params["conv1_b"], np.float32)
    w2 = np.asarray(params["conv2_w"], np.float32)   # (32, 16, 3, 3)
    b2 = np.asarray(params["conv2_b"], np.float32)
    wf1 = np.asarray(params["fc1_w"], np.float32)    # (64, 1152)
    bf1 = np.asarray(params["fc1_b"], np.float32)
    wf2 = np.asarray(params["fc2_w"], np.float32)    # (10, 64)
    bf2 = np.asarray(params["fc2_b"], np.float32)

    # Output column = base[ow] + co; width-parity-major so the pool is a
    # max of the two column halves.  ow == 12 of conv2 is dropped.
    base1 = np.array([(ow % 2) * _P1_COLS + (ow // 2) * _C1 for ow in range(30)])
    base2 = np.array([(ow % 2) * _P2_COLS + (ow // 2) * _C2 if ow < 12 else -1
                      for ow in range(13)])

    t1 = _conv_band_matrices(w1, in_w=32, col_base=base1, n_cols=_W1_COLS)
    t2 = _conv_band_matrices(w2, in_w=15, col_base=base2, n_cols=_W2_COLS)

    # fc1 rows re-ordered to the kernel's flatten order [h*192 + w*32 + c],
    # fc2 pre-transposed -> no runtime transposes.
    wfc1 = wf1.reshape(64, 32, 6, 6).transpose(2, 3, 1, 0).reshape(1152, 64)

    return {
        "t1": jnp.asarray(t1),                          # (3, 96, 480)
        "b1": jnp.asarray(np.tile(b1, 15)[None, :]),    # (1, 240)
        "t2": jnp.asarray(t2),                          # (3, 240, 384)
        "b2": jnp.asarray(np.tile(b2, 6)[None, :]),     # (1, 192)
        "wfc1": jnp.asarray(wfc1),                      # (1152, 64)
        "bfc1": jnp.asarray(bf1[None, :]),              # (1, 64)
        "wfc2": jnp.asarray(np.ascontiguousarray(wf2.T)),   # (64, 10)
        "bfc2": jnp.asarray(bf2[None, :]),              # (1, 10)
    }


# ---------------------------------------------------------------------------
# Parameters (deterministic, shapes from SimpleCNN.__init__, PyTorch layout)
# ---------------------------------------------------------------------------
def init_params(key):
    keys = jax.random.split(key, 8)

    def uniform(k, shape, fan_in):
        bound = 1.0 / jnp.sqrt(float(fan_in))
        return jax.random.uniform(k, shape, jnp.float32, -bound, bound)

    return {
        "conv1_w": uniform(keys[0], (16, 3, 3, 3), 3 * 3 * 3),
        "conv1_b": uniform(keys[1], (16,), 3 * 3 * 3),
        "conv2_w": uniform(keys[2], (32, 16, 3, 3), 16 * 3 * 3),
        "conv2_b": uniform(keys[3], (32,), 16 * 3 * 3),
        "fc1_w": uniform(keys[4], (64, 32 * 6 * 6), 32 * 6 * 6),
        "fc1_b": uniform(keys[5], (64,), 32 * 6 * 6),
        "fc2_w": uniform(keys[6], (10, 64), 64),
        "fc2_b": uniform(keys[7], (10,), 64),
    }


# ---------------------------------------------------------------------------
# Pure-JAX reference (same math as the PyTorch module) for self-checking.
# ---------------------------------------------------------------------------
def _reference_forward(params, x):
    def im2col(x, k):
        n, c, h, w = x.shape
        oh, ow = h - k + 1, w - k + 1
        cols = [x[:, :, a:a + oh, b:b + ow] for a in range(k) for b in range(k)]
        p = jnp.stack(cols, axis=2).transpose(0, 3, 4, 1, 2)
        return p.reshape(n * oh * ow, c * k * k), oh, ow

    def conv_relu(x, w, b):
        n = x.shape[0]
        cout, cin, k, _ = w.shape
        p, oh, ow = im2col(x, k)
        y = jnp.maximum(p @ w.reshape(cout, cin * k * k).T + b, 0.0)
        return y.reshape(n, oh, ow, cout).transpose(0, 3, 1, 2)

    def pool(x):
        n, c, h, w = x.shape
        xt = x[:, :, :(h // 2) * 2, :(w // 2) * 2]
        return jnp.maximum(
            jnp.maximum(xt[:, :, 0::2, 0::2], xt[:, :, 0::2, 1::2]),
            jnp.maximum(xt[:, :, 1::2, 0::2], xt[:, :, 1::2, 1::2]))

    x = pool(conv_relu(x, params["conv1_w"], params["conv1_b"]))
    x = pool(conv_relu(x, params["conv2_w"], params["conv2_b"]))
    x = x.reshape(-1, 32 * 6 * 6)
    x = jnp.maximum(x @ params["fc1_w"].T + params["fc1_b"], 0.0)
    return x @ params["fc2_w"].T + params["fc2_b"]


if __name__ == "__main__":
    key = jax.random.PRNGKey(0)
    pkey, xkey = jax.random.split(key)
    params = init_params(pkey)
    kparams = prepare_params(params)

    # Spatial size 32 is required by fc1 (32*6*6); batch kept small.
    x = jax.random.normal(xkey, (2, 3, 32, 32), jnp.float32)

    out = simple_cnn_forward(kparams, x)
    jax.block_until_ready(out)
    assert out.shape == (2, 10) and out.dtype == jnp.float32

    ref = _reference_forward(params, x)
    np.testing.assert_allclose(np.asarray(out), np.asarray(ref),
                               rtol=1e-2, atol=1e-2)
    print("KERNEL_OK")
</pallas_src>

<mosaic_0001>
module attributes {stable_mosaic.version = 11 : i64} {
  func.func @_simple_cnn_kernel(%arg0: i32, %arg1: memref<1x4x8x96xf32, #tpu.memory_space<vmem>>, %arg2: memref<3x96x480xf32, #tpu.memory_space<vmem>>, %arg3: memref<1x240xf32, #tpu.memory_space<vmem>>, %arg4: memref<3x240x384xf32, #tpu.memory_space<vmem>>, %arg5: memref<1x192xf32, #tpu.memory_space<vmem>>, %arg6: memref<1152x64xf32, #tpu.memory_space<vmem>>, %arg7: memref<1x64xf32, #tpu.memory_space<vmem>>, %arg8: memref<64x10xf32, #tpu.memory_space<vmem>>, %arg9: memref<1x10xf32, #tpu.memory_space<vmem>>, %arg10: memref<1x1x10xf32, #tpu.memory_space<vmem>>) attributes {dimension_semantics = [#tpu.dimension_semantics<parallel>], iteration_bounds = array<i64: 2>, scalar_prefetch = 0 : i64, scratch_operands = 0 : i64, tpu.core_type = #tpu.core_type<tc>, window_params = [{transform_indices = @transform_0, window_bounds = array<i64: 1, 4, 8, 96>}, {pipeline_mode = #tpu.pipeline_mode<synchronous>, transform_indices = @transform_1, window_bounds = array<i64: 3, 96, 480>}, {pipeline_mode = #tpu.pipeline_mode<synchronous>, transform_indices = @transform_2, window_bounds = array<i64: 1, 240>}, {pipeline_mode = #tpu.pipeline_mode<synchronous>, transform_indices = @transform_3, window_bounds = array<i64: 3, 240, 384>}, {pipeline_mode = #tpu.pipeline_mode<synchronous>, transform_indices = @transform_4, window_bounds = array<i64: 1, 192>}, {pipeline_mode = #tpu.pipeline_mode<synchronous>, transform_indices = @transform_5, window_bounds = array<i64: 1152, 64>}, {pipeline_mode = #tpu.pipeline_mode<synchronous>, transform_indices = @transform_6, window_bounds = array<i64: 1, 64>}, {pipeline_mode = #tpu.pipeline_mode<synchronous>, transform_indices = @transform_7, window_bounds = array<i64: 64, 10>}, {pipeline_mode = #tpu.pipeline_mode<synchronous>, transform_indices = @transform_8, window_bounds = array<i64: 1, 10>}, {transform_indices = @transform_9, window_bounds = array<i64: 1, 1, 10>}]} {
    %c0 = arith.constant 0 : index
    %c0_0 = arith.constant 0 : index
    %c0_1 = arith.constant 0 : index
    %c0_2 = arith.constant 0 : index
    %0 = vector.load %arg1[%c0, %c0_0, %c0_1, %c0_2] : memref<1x4x8x96xf32, #tpu.memory_space<vmem>>, vector<1x1x8x96xf32>
    %1 = vector.shape_cast %0 : vector<1x1x8x96xf32> to vector<8x96xf32>
    %c0_3 = arith.constant 0 : index
    %c1 = arith.constant 1 : index
    %c0_4 = arith.constant 0 : index
    %c0_5 = arith.constant 0 : index
    %2 = vector.load %arg1[%c0_3, %c1, %c0_4, %c0_5] : memref<1x4x8x96xf32, #tpu.memory_space<vmem>>, vector<1x1x8x96xf32>
    %3 = vector.shape_cast %2 : vector<1x1x8x96xf32> to vector<8x96xf32>
    %c0_6 = arith.constant 0 : index
    %c2 = arith.constant 2 : index
    %c0_7 = arith.constant 0 : index
    %c0_8 = arith.constant 0 : index
    %4 = vector.load %arg1[%c0_6, %c2, %c0_7, %c0_8] : memref<1x4x8x96xf32, #tpu.memory_space<vmem>>, vector<1x1x8x96xf32>
    %5 = vector.shape_cast %4 : vector<1x1x8x96xf32> to vector<8x96xf32>
    %c0_9 = arith.constant 0 : index
    %c3 = arith.constant 3 : index
    %c0_10 = arith.constant 0 : index
    %c0_11 = arith.constant 0 : index
    %6 = vector.load %arg1[%c0_9, %c3, %c0_10, %c0_11] : memref<1x4x8x96xf32, #tpu.memory_space<vmem>>, vector<1x1x8x96xf32>
    %7 = vector.shape_cast %6 : vector<1x1x8x96xf32> to vector<8x96xf32>
    %c0_12 = arith.constant 0 : index
    %c0_13 = arith.constant 0 : index
    %c0_14 = arith.constant 0 : index
    %8 = vector.load %arg2[%c0_12, %c0_13, %c0_14] : memref<3x96x480xf32, #tpu.memory_space<vmem>>, vector<1x96x480xf32>
    %9 = vector.shape_cast %8 : vector<1x96x480xf32> to vector<96x480xf32>
    %cst = arith.constant dense<0.000000e+00> : vector<8x480xf32>
    %10 = tpu.matmul %1, %9, %cst {dimension_numbers = #tpu.dot_dimension_numbers<[1], [0], [0], [1], [0, 0, 1, 1], [], []>} : vector<8x96xf32>, vector<96x480xf32>, vector<8x480xf32> -> vector<8x480xf32>
    %c1_15 = arith.constant 1 : index
    %c0_16 = arith.constant 0 : index
    %c0_17 = arith.constant 0 : index
    %11 = vector.load %arg2[%c1_15, %c0_16, %c0_17] : memref<3x96x480xf32, #tpu.memory_space<vmem>>, vector<1x96x480xf32>
    %12 = vector.shape_cast %11 : vector<1x96x480xf32> to vector<96x480xf32>
    %cst_18 = arith.constant dense<0.000000e+00> : vector<8x480xf32>
    %13 = tpu.matmul %3, %12, %cst_18 {dimension_numbers = #tpu.dot_dimension_numbers<[1], [0], [0], [1], [0, 0, 1, 1], [], []>} : vector<8x96xf32>, vector<96x480xf32>, vector<8x480xf32> -> vector<8x480xf32>
    %14 = arith.addf %10, %13 : vector<8x480xf32>
    %c2_19 = arith.constant 2 : index
    %c0_20 = arith.constant 0 : index
    %c0_21 = arith.constant 0 : index
    %15 = vector.load %arg2[%c2_19, %c0_20, %c0_21] : memref<3x96x480xf32, #tpu.memory_space<vmem>>, vector<1x96x480xf32>
    %16 = vector.shape_cast %15 : vector<1x96x480xf32> to vector<96x480xf32>
    %cst_22 = arith.constant dense<0.000000e+00> : vector<8x480xf32>
    %17 = tpu.matmul %5, %16, %cst_22 {dimension_numbers = #tpu.dot_dimension_numbers<[1], [0], [0], [1], [0, 0, 1, 1], [], []>} : vector<8x96xf32>, vector<96x480xf32>, vector<8x480xf32> -> vector<8x480xf32>
    %18 = arith.addf %14, %17 : vector<8x480xf32>
    %c0_23 = arith.constant 0 : index
    %c0_24 = arith.constant 0 : index
    %c0_25 = arith.constant 0 : index
    %19 = vector.load %arg2[%c0_23, %c0_24, %c0_25] : memref<3x96x480xf32, #tpu.memory_space<vmem>>, vector<1x96x480xf32>
    %20 = vector.shape_cast %19 : vector<1x96x480xf32> to vector<96x480xf32>
    %cst_26 = arith.constant dense<0.000000e+00> : vector<8x480xf32>
    %21 = tpu.matmul %3, %20, %cst_26 {dimension_numbers = #tpu.dot_dimension_numbers<[1], [0], [0], [1], [0, 0, 1, 1], [], []>} : vector<8x96xf32>, vector<96x480xf32>, vector<8x480xf32> -> vector<8x480xf32>
    %c1_27 = arith.constant 1 : index
    %c0_28 = arith.constant 0 : index
    %c0_29 = arith.constant 0 : index
    %22 = vector.load %arg2[%c1_27, %c0_28, %c0_29] : memref<3x96x480xf32, #tpu.memory_space<vmem>>, vector<1x96x480xf32>
    %23 = vector.shape_cast %22 : vector<1x96x480xf32> to vector<96x480xf32>
    %cst_30 = arith.constant dense<0.000000e+00> : vector<8x480xf32>
    %24 = tpu.matmul %5, %23, %cst_30 {dimension_numbers = #tpu.dot_dimension_numbers<[1], [0], [0], [1], [0, 0, 1, 1], [], []>} : vector<8x96xf32>, vector<96x480xf32>, vector<8x480xf32> -> vector<8x480xf32>
    %25 = arith.addf %21, %24 : vector<8x480xf32>
    %c2_31 = arith.constant 2 : index
    %c0_32 = arith.constant 0 : index
    %c0_33 = arith.constant 0 : index
    %26 = vector.load %arg2[%c2_31, %c0_32, %c0_33] : memref<3x96x480xf32, #tpu.memory_space<vmem>>, vector<1x96x480xf32>
    %27 = vector.shape_cast %26 : vector<1x96x480xf32> to vector<96x480xf32>
    %cst_34 = arith.constant dense<0.000000e+00> : vector<8x480xf32>
    %28 = tpu.matmul %7, %27, %cst_34 {dimension_numbers = #tpu.dot_dimension_numbers<[1], [0], [0], [1], [0, 0, 1, 1], [], []>} : vector<8x96xf32>, vector<96x480xf32>, vector<8x480xf32> -> vector<8x480xf32>
    %29 = arith.addf %25, %28 : vector<8x480xf32>
    %30 = vector.extract_strided_slice %5 {offsets = [0, 0], sizes = [7, 96], strides = [1, 1]} : vector<8x96xf32> to vector<7x96xf32>
    %c0_35 = arith.constant 0 : index
    %c0_36 = arith.constant 0 : index
    %c0_37 = arith.constant 0 : index
    %31 = vector.load %arg2[%c0_35, %c0_36, %c0_37] : memref<3x96x480xf32, #tpu.memory_space<vmem>>, vector<1x96x480xf32>
    %32 = vector.shape_cast %31 : vector<1x96x480xf32> to vector<96x480xf32>
    %cst_38 = arith.constant dense<0.000000e+00> : vector<7x480xf32>
    %33 = tpu.matmul %30, %32, %cst_38 {dimension_numbers = #tpu.dot_dimension_numbers<[1], [0], [0], [1], [0, 0, 1, 1], [], []>} : vector<7x96xf32>, vector<96x480xf32>, vector<7x480xf32> -> vector<7x480xf32>
    %34 = vector.extract_strided_slice %7 {offsets = [0, 0], sizes = [7, 96], strides = [1, 1]} : vector<8x96xf32> to vector<7x96xf32>
    %c1_39 = arith.constant 1 : index
    %c0_40 = arith.constant 0 : index
    %c0_41 = arith.constant 0 : index
    %35 = vector.load %arg2[%c1_39, %c0_40, %c0_41] : memref<3x96x480xf32, #tpu.memory_space<vmem>>, vector<1x96x480xf32>
    %36 = vector.shape_cast %35 : vector<1x96x480xf32> to vector<96x480xf32>
    %cst_42 = arith.constant dense<0.000000e+00> : vector<7x480xf32>
    %37 = tpu.matmul %34, %36, %cst_42 {dimension_numbers = #tpu.dot_dimension_numbers<[1], [0], [0], [1], [0, 0, 1, 1], [], []>} : vector<7x96xf32>, vector<96x480xf32>, vector<7x480xf32> -> vector<7x480xf32>
    %38 = arith.addf %33, %37 : vector<7x480xf32>
    %39 = vector.extract_strided_slice %1 {offsets = [1, 0], sizes = [7, 96], strides = [1, 1]} : vector<8x96xf32> to vector<7x96xf32>
    %c2_43 = arith.constant 2 : index
    %c0_44 = arith.constant 0 : index
    %c0_45 = arith.constant 0 : index
    %40 = vector.load %arg2[%c2_43, %c0_44, %c0_45] : memref<3x96x480xf32, #tpu.memory_space<vmem>>, vector<1x96x480xf32>
    %41 = vector.shape_cast %40 : vector<1x96x480xf32> to vector<96x480xf32>
    %cst_46 = arith.constant dense<0.000000e+00> : vector<7x480xf32>
    %42 = tpu.matmul %39, %41, %cst_46 {dimension_numbers = #tpu.dot_dimension_numbers<[1], [0], [0], [1], [0, 0, 1, 1], [], []>} : vector<7x96xf32>, vector<96x480xf32>, vector<7x480xf32> -> vector<7x480xf32>
    %43 = arith.addf %38, %42 : vector<7x480xf32>
    %44 = vector.extract_strided_slice %7 {offsets = [0, 0], sizes = [7, 96], strides = [1, 1]} : vector<8x96xf32> to vector<7x96xf32>
    %c0_47 = arith.constant 0 : index
    %c0_48 = arith.constant 0 : index
    %c0_49 = arith.constant 0 : index
    %45 = vector.load %arg2[%c0_47, %c0_48, %c0_49] : memref<3x96x480xf32, #tpu.memory_space<vmem>>, vector<1x96x480xf32>
    %46 = vector.shape_cast %45 : vector<1x96x480xf32> to vector<96x480xf32>
    %cst_50 = arith.constant dense<0.000000e+00> : vector<7x480xf32>
    %47 = tpu.matmul %44, %46, %cst_50 {dimension_numbers = #tpu.dot_dimension_numbers<[1], [0], [0], [1], [0, 0, 1, 1], [], []>} : vector<7x96xf32>, vector<96x480xf32>, vector<7x480xf32> -> vector<7x480xf32>
    %48 = vector.extract_strided_slice %1 {offsets = [1, 0], sizes = [7, 96], strides = [1, 1]} : vector<8x96xf32> to vector<7x96xf32>
    %c1_51 = arith.constant 1 : index
    %c0_52 = arith.constant 0 : index
    %c0_53 = arith.constant 0 : index
    %49 = vector.load %arg2[%c1_51, %c0_52, %c0_53] : memref<3x96x480xf32, #tpu.memory_space<vmem>>, vector<1x96x480xf32>
    %50 = vector.shape_cast %49 : vector<1x96x480xf32> to vector<96x480xf32>
    %cst_54 = arith.constant dense<0.000000e+00> : vector<7x480xf32>
    %51 = tpu.matmul %48, %50, %cst_54 {dimension_numbers = #tpu.dot_dimension_numbers<[1], [0], [0], [1], [0, 0, 1, 1], [], []>} : vector<7x96xf32>, vector<96x480xf32>, vector<7x480xf32> -> vector<7x480xf32>
    %52 = arith.addf %47, %51 : vector<7x480xf32>
    %53 = vector.extract_strided_slice %3 {offsets = [1, 0], sizes = [7, 96], strides = [1, 1]} : vector<8x96xf32> to vector<7x96xf32>
    %c2_55 = arith.constant 2 : index
    %c0_56 = arith.constant 0 : index
    %c0_57 = arith.constant 0 : index
    %54 = vector.load %arg2[%c2_55, %c0_56, %c0_57] : memref<3x96x480xf32, #tpu.memory_space<vmem>>, vector<1x96x480xf32>
    %55 = vector.shape_cast %54 : vector<1x96x480xf32> to vector<96x480xf32>
    %cst_58 = arith.constant dense<0.000000e+00> : vector<7x480xf32>
    %56 = tpu.matmul %53, %55, %cst_58 {dimension_numbers = #tpu.dot_dimension_numbers<[1], [0], [0], [1], [0, 0, 1, 1], [], []>} : vector<7x96xf32>, vector<96x480xf32>, vector<7x480xf32> -> vector<7x480xf32>
    %57 = arith.addf %52, %56 : vector<7x480xf32>
    %c0_59 = arith.constant 0 : index
    %c0_60 = arith.constant 0 : index
    %58 = vector.load %arg3[%c0_59, %c0_60] : memref<1x240xf32, #tpu.memory_space<vmem>>, vector<1x240xf32>
    %59 = vector.extract_strided_slice %18 {offsets = [0, 0], sizes = [8, 240], strides = [1, 1]} : vector<8x480xf32> to vector<8x240xf32>
    %60 = vector.extract_strided_slice %18 {offsets = [0, 240], sizes = [8, 240], strides = [1, 1]} : vector<8x480xf32> to vector<8x240xf32>
    %61 = arith.maximumf %59, %60 : vector<8x240xf32>
    %62 = vector.extract_strided_slice %29 {offsets = [0, 0], sizes = [8, 240], strides = [1, 1]} : vector<8x480xf32> to vector<8x240xf32>
    %63 = vector.extract_strided_slice %29 {offsets = [0, 240], sizes = [8, 240], strides = [1, 1]} : vector<8x480xf32> to vector<8x240xf32>
    %64 = arith.maximumf %62, %63 : vector<8x240xf32>
    %65 = arith.maximumf %61, %64 : vector<8x240xf32>
    %66 = vector.broadcast %58 : vector<1x240xf32> to vector<8x240xf32>
    %67 = arith.addf %65, %66 : vector<8x240xf32>
    %cst_61 = arith.constant 0.000000e+00 : f32
    %68 = vector.broadcast %cst_61 : f32 to vector<8x240xf32>
    %69 = arith.maximumf %67, %68 : vector<8x240xf32>
    %c0_62 = arith.constant 0 : index
    %c0_63 = arith.constant 0 : index
    %70 = vector.load %arg3[%c0_62, %c0_63] : memref<1x240xf32, #tpu.memory_space<vmem>>, vector<1x240xf32>
    %71 = vector.extract_strided_slice %43 {offsets = [0, 0], sizes = [7, 240], strides = [1, 1]} : vector<7x480xf32> to vector<7x240xf32>
    %72 = vector.extract_strided_slice %43 {offsets = [0, 240], sizes = [7, 240], strides = [1, 1]} : vector<7x480xf32> to vector<7x240xf32>
    %73 = arith.maximumf %71, %72 : vector<7x240xf32>
    %74 = vector.extract_strided_slice %57 {offsets = [0, 0], sizes = [7, 240], strides = [1, 1]} : vector<7x480xf32> to vector<7x240xf32>
    %75 = vector.extract_strided_slice %57 {offsets = [0, 240], sizes = [7, 240], strides = [1, 1]} : vector<7x480xf32> to vector<7x240xf32>
    %76 = arith.maximumf %74, %75 : vector<7x240xf32>
    %77 = arith.maximumf %73, %76 : vector<7x240xf32>
    %78 = vector.broadcast %70 : vector<1x240xf32> to vector<7x240xf32>
    %79 = arith.addf %77, %78 : vector<7x240xf32>
    %cst_64 = arith.constant 0.000000e+00 : f32
    %80 = vector.broadcast %cst_64 : f32 to vector<7x240xf32>
    %81 = arith.maximumf %79, %80 : vector<7x240xf32>
    %82 = vector.extract_strided_slice %69 {offsets = [0, 0], sizes = [6, 240], strides = [1, 1]} : vector<8x240xf32> to vector<6x240xf32>
    %83 = vector.extract_strided_slice %81 {offsets = [0, 0], sizes = [6, 240], strides = [1, 1]} : vector<7x240xf32> to vector<6x240xf32>
    %84 = vector.extract_strided_slice %69 {offsets = [1, 0], sizes = [6, 240], strides = [1, 1]} : vector<8x240xf32> to vector<6x240xf32>
    %c0_65 = arith.constant 0 : index
    %c0_66 = arith.constant 0 : index
    %c0_67 = arith.constant 0 : index
    %85 = vector.load %arg4[%c0_65, %c0_66, %c0_67] : memref<3x240x384xf32, #tpu.memory_space<vmem>>, vector<1x240x384xf32>
    %86 = vector.shape_cast %85 : vector<1x240x384xf32> to vector<240x384xf32>
    %cst_68 = arith.constant dense<0.000000e+00> : vector<6x384xf32>
    %87 = tpu.matmul %82, %86, %cst_68 {dimension_numbers = #tpu.dot_dimension_numbers<[1], [0], [0], [1], [0, 0, 1, 1], [], []>} : vector<6x240xf32>, vector<240x384xf32>, vector<6x384xf32> -> vector<6x384xf32>
    %c1_69 = arith.constant 1 : index
    %c0_70 = arith.constant 0 : index
    %c0_71 = arith.constant 0 : index
    %88 = vector.load %arg4[%c1_69, %c0_70, %c0_71] : memref<3x240x384xf32, #tpu.memory_space<vmem>>, vector<1x240x384xf32>
    %89 = vector.shape_cast %88 : vector<1x240x384xf32> to vector<240x384xf32>
    %cst_72 = arith.constant dense<0.000000e+00> : vector<6x384xf32>
    %90 = tpu.matmul %83, %89, %cst_72 {dimension_numbers = #tpu.dot_dimension_numbers<[1], [0], [0], [1], [0, 0, 1, 1], [], []>} : vector<6x240xf32>, vector<240x384xf32>, vector<6x384xf32> -> vector<6x384xf32>
    %91 = arith.addf %87, %90 : vector<6x384xf32>
    %c2_73 = arith.constant 2 : index
    %c0_74 = arith.constant 0 : index
    %c0_75 = arith.constant 0 : index
    %92 = vector.load %arg4[%c2_73, %c0_74, %c0_75] : memref<3x240x384xf32, #tpu.memory_space<vmem>>, vector<1x240x384xf32>
    %93 = vector.shape_cast %92 : vector<1x240x384xf32> to vector<240x384xf32>
    %cst_76 = arith.constant dense<0.000000e+00> : vector<6x384xf32>
    %94 = tpu.matmul %84, %93, %cst_76 {dimension_numbers = #tpu.dot_dimension_numbers<[1], [0], [0], [1], [0, 0, 1, 1], [], []>} : vector<6x240xf32>, vector<240x384xf32>, vector<6x384xf32> -> vector<6x384xf32>
    %95 = arith.addf %91, %94 : vector<6x384xf32>
    %96 = vector.extract_strided_slice %81 {offsets = [0, 0], sizes = [6, 240], strides = [1, 1]} : vector<7x240xf32> to vector<6x240xf32>
    %97 = vector.extract_strided_slice %69 {offsets = [1, 0], sizes = [6, 240], strides = [1, 1]} : vector<8x240xf32> to vector<6x240xf32>
    %98 = vector.extract_strided_slice %81 {offsets = [1, 0], sizes = [6, 240], strides = [1, 1]} : vector<7x240xf32> to vector<6x240xf32>
    %c0_77 = arith.constant 0 : index
    %c0_78 = arith.constant 0 : index
    %c0_79 = arith.constant 0 : index
    %99 = vector.load %arg4[%c0_77, %c0_78, %c0_79] : memref<3x240x384xf32, #tpu.memory_space<vmem>>, vector<1x240x384xf32>
    %100 = vector.shape_cast %99 : vector<1x240x384xf32> to vector<240x384xf32>
    %cst_80 = arith.constant dense<0.000000e+00> : vector<6x384xf32>
    %101 = tpu.matmul %96, %100, %cst_80 {dimension_numbers = #tpu.dot_dimension_numbers<[1], [0], [0], [1], [0, 0, 1, 1], [], []>} : vector<6x240xf32>, vector<240x384xf32>, vector<6x384xf32> -> vector<6x384xf32>
    %c1_81 = arith.constant 1 : index
    %c0_82 = arith.constant 0 : index
    %c0_83 = arith.constant 0 : index
    %102 = vector.load %arg4[%c1_81, %c0_82, %c0_83] : memref<3x240x384xf32, #tpu.memory_space<vmem>>, vector<1x240x384xf32>
    %103 = vector.shape_cast %102 : vector<1x240x384xf32> to vector<240x384xf32>
    %cst_84 = arith.constant dense<0.000000e+00> : vector<6x384xf32>
    %104 = tpu.matmul %97, %103, %cst_84 {dimension_numbers = #tpu.dot_dimension_numbers<[1], [0], [0], [1], [0, 0, 1, 1], [], []>} : vector<6x240xf32>, vector<240x384xf32>, vector<6x384xf32> -> vector<6x384xf32>
    %105 = arith.addf %101, %104 : vector<6x384xf32>
    %c2_85 = arith.constant 2 : index
    %c0_86 = arith.constant 0 : index
    %c0_87 = arith.constant 0 : index
    %106 = vector.load %arg4[%c2_85, %c0_86, %c0_87] : memref<3x240x384xf32, #tpu.memory_space<vmem>>, vector<1x240x384xf32>
    %107 = vector.shape_cast %106 : vector<1x240x384xf32> to vector<240x384xf32>
    %cst_88 = arith.constant dense<0.000000e+00> : vector<6x384xf32>
    %108 = tpu.matmul %98, %107, %cst_88 {dimension_numbers = #tpu.dot_dimension_numbers<[1], [0], [0], [1], [0, 0, 1, 1], [], []>} : vector<6x240xf32>, vector<240x384xf32>, vector<6x384xf32> -> vector<6x384xf32>
    %109 = arith.addf %105, %108 : vector<6x384xf32>
    %c0_89 = arith.constant 0 : index
    %c0_90 = arith.constant 0 : index
    %110 = vector.load %arg5[%c0_89, %c0_90] : memref<1x192xf32, #tpu.memory_space<vmem>>, vector<1x192xf32>
    %111 = vector.extract_strided_slice %95 {offsets = [0, 0], sizes = [6, 192], strides = [1, 1]} : vector<6x384xf32> to vector<6x192xf32>
    %112 = vector.extract_strided_slice %95 {offsets = [0, 192], sizes = [6, 192], strides = [1, 1]} : vector<6x384xf32> to vector<6x192xf32>
    %113 = arith.maximumf %111, %112 : vector<6x192xf32>
    %114 = vector.extract_strided_slice %109 {offsets = [0, 0], sizes = [6, 192], strides = [1, 1]} : vector<6x384xf32> to vector<6x192xf32>
    %115 = vector.extract_strided_slice %109 {offsets = [0, 192], sizes = [6, 192], strides = [1, 1]} : vector<6x384xf32> to vector<6x192xf32>
    %116 = arith.maximumf %114, %115 : vector<6x192xf32>
    %117 = arith.maximumf %113, %116 : vector<6x192xf32>
    %118 = vector.broadcast %110 : vector<1x192xf32> to vector<6x192xf32>
    %119 = arith.addf %117, %118 : vector<6x192xf32>
    %cst_91 = arith.constant 0.000000e+00 : f32
    %120 = vector.broadcast %cst_91 : f32 to vector<6x192xf32>
    %121 = arith.maximumf %119, %120 : vector<6x192xf32>
    %122 = vector.extract_strided_slice %121 {offsets = [0, 0], sizes = [1, 192], strides = [1, 1]} : vector<6x192xf32> to vector<1x192xf32>
    %c0_92 = arith.constant 0 : index
    %c0_93 = arith.constant 0 : index
    %123 = vector.load %arg6[%c0_92, %c0_93] : memref<1152x64xf32, #tpu.memory_space<vmem>>, vector<192x64xf32>
    %cst_94 = arith.constant dense<0.000000e+00> : vector<1x64xf32>
    %124 = tpu.matmul %122, %123, %cst_94 {dimension_numbers = #tpu.dot_dimension_numbers<[1], [0], [0], [1], [0, 0, 1, 1], [], []>} : vector<1x192xf32>, vector<192x64xf32>, vector<1x64xf32> -> vector<1x64xf32>
    %125 = vector.extract_strided_slice %121 {offsets = [1, 0], sizes = [1, 192], strides = [1, 1]} : vector<6x192xf32> to vector<1x192xf32>
    %c192 = arith.constant 192 : index
    %c0_95 = arith.constant 0 : index
    %126 = vector.load %arg6[%c192, %c0_95] : memref<1152x64xf32, #tpu.memory_space<vmem>>, vector<192x64xf32>
    %cst_96 = arith.constant dense<0.000000e+00> : vector<1x64xf32>
    %127 = tpu.matmul %125, %126, %cst_96 {dimension_numbers = #tpu.dot_dimension_numbers<[1], [0], [0], [1], [0, 0, 1, 1], [], []>} : vector<1x192xf32>, vector<192x64xf32>, vector<1x64xf32> -> vector<1x64xf32>
    %128 = arith.addf %124, %127 : vector<1x64xf32>
    %129 = vector.extract_strided_slice %121 {offsets = [2, 0], sizes = [1, 192], strides = [1, 1]} : vector<6x192xf32> to vector<1x192xf32>
    %c384 = arith.constant 384 : index
    %c0_97 = arith.constant 0 : index
    %130 = vector.load %arg6[%c384, %c0_97] : memref<1152x64xf32, #tpu.memory_space<vmem>>, vector<192x64xf32>
    %cst_98 = arith.constant dense<0.000000e+00> : vector<1x64xf32>
    %131 = tpu.matmul %129, %130, %cst_98 {dimension_numbers = #tpu.dot_dimension_numbers<[1], [0], [0], [1], [0, 0, 1, 1], [], []>} : vector<1x192xf32>, vector<192x64xf32>, vector<1x64xf32> -> vector<1x64xf32>
    %132 = arith.addf %128, %131 : vector<1x64xf32>
    %133 = vector.extract_strided_slice %121 {offsets = [3, 0], sizes = [1, 192], strides = [1, 1]} : vector<6x192xf32> to vector<1x192xf32>
    %c576 = arith.constant 576 : index
    %c0_99 = arith.constant 0 : index
    %134 = vector.load %arg6[%c576, %c0_99] : memref<1152x64xf32, #tpu.memory_space<vmem>>, vector<192x64xf32>
    %cst_100 = arith.constant dense<0.000000e+00> : vector<1x64xf32>
    %135 = tpu.matmul %133, %134, %cst_100 {dimension_numbers = #tpu.dot_dimension_numbers<[1], [0], [0], [1], [0, 0, 1, 1], [], []>} : vector<1x192xf32>, vector<192x64xf32>, vector<1x64xf32> -> vector<1x64xf32>
    %136 = arith.addf %132, %135 : vector<1x64xf32>
    %137 = vector.extract_strided_slice %121 {offsets = [4, 0], sizes = [1, 192], strides = [1, 1]} : vector<6x192xf32> to vector<1x192xf32>
    %c768 = arith.constant 768 : index
    %c0_101 = arith.constant 0 : index
    %138 = vector.load %arg6[%c768, %c0_101] : memref<1152x64xf32, #tpu.memory_space<vmem>>, vector<192x64xf32>
    %cst_102 = arith.constant dense<0.000000e+00> : vector<1x64xf32>
    %139 = tpu.matmul %137, %138, %cst_102 {dimension_numbers = #tpu.dot_dimension_numbers<[1], [0], [0], [1], [0, 0, 1, 1], [], []>} : vector<1x192xf32>, vector<192x64xf32>, vector<1x64xf32> -> vector<1x64xf32>
    %140 = arith.addf %136, %139 : vector<1x64xf32>
    %141 = vector.extract_strided_slice %121 {offsets = [5, 0], sizes = [1, 192], strides = [1, 1]} : vector<6x192xf32> to vector<1x192xf32>
    %c960 = arith.constant 960 : index
    %c0_103 = arith.constant 0 : index
    %142 = vector.load %arg6[%c960, %c0_103] : memref<1152x64xf32, #tpu.memory_space<vmem>>, vector<192x64xf32>
    %cst_104 = arith.constant dense<0.000000e+00> : vector<1x64xf32>
    %143 = tpu.matmul %141, %142, %cst_104 {dimension_numbers = #tpu.dot_dimension_numbers<[1], [0], [0], [1], [0, 0, 1, 1], [], []>} : vector<1x192xf32>, vector<192x64xf32>, vector<1x64xf32> -> vector<1x64xf32>
    %144 = arith.addf %140, %143 : vector<1x64xf32>
    %c0_105 = arith.constant 0 : index
    %c0_106 = arith.constant 0 : index
    %145 = vector.load %arg7[%c0_105, %c0_106] : memref<1x64xf32, #tpu.memory_space<vmem>>, vector<1x64xf32>
    %146 = arith.addf %144, %145 : vector<1x64xf32>
    %cst_107 = arith.constant 0.000000e+00 : f32
    %147 = vector.broadcast %cst_107 : f32 to vector<1x64xf32>
    %148 = arith.maximumf %146, %147 : vector<1x64xf32>
    %c0_108 = arith.constant 0 : index
    %c0_109 = arith.constant 0 : index
    %149 = vector.load %arg8[%c0_108, %c0_109] : memref<64x10xf32, #tpu.memory_space<vmem>>, vector<64x10xf32>
    %cst_110 = arith.constant dense<0.000000e+00> : vector<1x10xf32>
    %150 = tpu.matmul %148, %149, %cst_110 {dimension_numbers = #tpu.dot_dimension_numbers<[1], [0], [0], [1], [0, 0, 1, 1], [], []>} : vector<1x64xf32>, vector<64x10xf32>, vector<1x10xf32> -> vector<1x10xf32>
    %c0_111 = arith.constant 0 : index
    %c0_112 = arith.constant 0 : index
    %151 = vector.load %arg9[%c0_111, %c0_112] : memref<1x10xf32, #tpu.memory_space<vmem>>, vector<1x10xf32>
    %152 = arith.addf %150, %151 : vector<1x10xf32>
    %c0_113 = arith.constant 0 : index
    %c0_114 = arith.constant 0 : index
    %c0_115 = arith.constant 0 : index
    %153 = vector.load %arg10[%c0_113, %c0_114, %c0_115] : memref<1x1x10xf32, #tpu.memory_space<vmem>>, vector<1x1x10xf32>
    %154 = vector.shape_cast %153 : vector<1x1x10xf32> to vector<1x10xf32>
    %155 = vector.shape_cast %152 : vector<1x10xf32> to vector<1x1x10xf32>
    tpu.vector_store %arg10[%c0_113, %c0_114, %c0_115], %155 {strides = array<i32>} : memref<1x1x10xf32, #tpu.memory_space<vmem>>, vector<1x1x10xf32>,
    return
  }
  func.func @transform_0(%arg0: i32) -> (i32, i32, i32, i32) {
    %c0_i32 = arith.constant 0 : i32
    %c0_i32_0 = arith.constant 0 : i32
    %c0_i32_1 = arith.constant 0 : i32
    %c0_i32_2 = arith.constant 0 : i32
    return %arg0, %c0_i32, %c0_i32_0, %c0_i32_1 : i32, i32, i32, i32
  }
  func.func @transform_1(%arg0: i32) -> (i32, i32, i32) {
    %c0_i32 = arith.constant 0 : i32
    %c0_i32_0 = arith.constant 0 : i32
    %c0_i32_1 = arith.constant 0 : i32
    %c0_i32_2 = arith.constant 0 : i32
    return %c0_i32, %c0_i32_0, %c0_i32_1 : i32, i32, i32
  }
  func.func @transform_2(%arg0: i32) -> (i32, i32) {
    %c0_i32 = arith.constant 0 : i32
    %c0_i32_0 = arith.constant 0 : i32
    %c0_i32_1 = arith.constant 0 : i32
    return %c0_i32, %c0_i32_0 : i32, i32
  }
  func.func @transform_3(%arg0: i32) -> (i32, i32, i32) {
    %c0_i32 = arith.constant 0 : i32
    %c0_i32_0 = arith.constant 0 : i32
    %c0_i32_1 = arith.constant 0 : i32
    %c0_i32_2 = arith.constant 0 : i32
    return %c0_i32, %c0_i32_0, %c0_i32_1 : i32, i32, i32
  }
  func.func @transform_4(%arg0: i32) -> (i32, i32) {
    %c0_i32 = arith.constant 0 : i32
    %c0_i32_0 = arith.constant 0 : i32
    %c0_i32_1 = arith.constant 0 : i32
    return %c0_i32, %c0_i32_0 : i32, i32
  }
  func.func @transform_5(%arg0: i32) -> (i32, i32) {
    %c0_i32 = arith.constant 0 : i32
    %c0_i32_0 = arith.constant 0 : i32
    %c0_i32_1 = arith.constant 0 : i32
    return %c0_i32, %c0_i32_0 : i32, i32
  }
  func.func @transform_6(%arg0: i32) -> (i32, i32) {
    %c0_i32 = arith.constant 0 : i32
    %c0_i32_0 = arith.constant 0 : i32
    %c0_i32_1 = arith.constant 0 : i32
    return %c0_i32, %c0_i32_0 : i32, i32
  }
  func.func @transform_7(%arg0: i32) -> (i32, i32) {
    %c0_i32 = arith.constant 0 : i32
    %c0_i32_0 = arith.constant 0 : i32
    %c0_i32_1 = arith.constant 0 : i32
    return %c0_i32, %c0_i32_0 : i32, i32
  }
  func.func @transform_8(%arg0: i32) -> (i32, i32) {
    %c0_i32 = arith.constant 0 : i32
    %c0_i32_0 = arith.constant 0 : i32
    %c0_i32_1 = arith.constant 0 : i32
    return %c0_i32, %c0_i32_0 : i32, i32
  }
  func.func @transform_9(%arg0: i32) -> (i32, i32, i32) {
    %c0_i32 = arith.constant 0 : i32
    %c0_i32_0 = arith.constant 0 : i32
    %c0_i32_1 = arith.constant 0 : i32
    return %arg0, %c0_i32, %c0_i32_0 : i32, i32, i32
  }
}

</mosaic_0001>

<bundles_post_ra>
// kernel: simple_cnn_forward.1
= control target key start
LH: loop header
LB: loop body
LE: loop exit
PB: predicated region body
PF: predicated region fallthrough
CT: control target
= control target key end

     0   :  { %14 = vsyncpa [#allocation3], 0  ;;  %s9442_s0 = inlined_call_operand.vmem [shape: f32[2,4,8,96], index: 0, kind: input, shape index: {}]   ;;  %s9443_s1 = inlined_call_operand.vmem [shape: f32[3,96,480], index: 1, kind: input, shape index: {}]   ;;  %s9444_s2 = inlined_call_operand.vmem [shape: f32[1,240], index: 2, kind: input, shape index: {}]   ;;  %s9445_s3 = inlined_call_operand.vmem [shape: f32[3,240,384], index: 3, kind: input, shape index: {}]   ;;  %s9446_s4 = inlined_call_operand.vmem [shape: f32[1,192], index: 4, kind: input, shape index: {}]   ;;  %s9447_s5 = inlined_call_operand.vmem [shape: f32[1152,64], index: 5, kind: input, shape index: {}]   ;;  %s9448_s6 = inlined_call_operand.vmem [shape: f32[1,64], index: 6, kind: input, shape index: {}]   ;;  %s9449_s7 = inlined_call_operand.vmem [shape: f32[64,10], index: 7, kind: input, shape index: {}]   ;;  %s9450_s8 = inlined_call_operand.vmem [shape: f32[1,10], index: 8, kind: input, shape index: {}]   ;;  %s9451_s9 = inlined_call_operand.hbm [shape: f32[2,1,10], index: 9, kind: output, shape index: {}]  }
   0x1   :  { %16 = vsyncpa [#allocation3 + $0x1], 0  ;;  %s6249_s30 = smov 0   ;;  %s6251_s10 = smov 0  }
   0x2   :  { %s6253_s11 = smov 0   ;;  %s6255_s12 = smov 0  }
   0x3 LB: > { %s6270_s13 = sadd.s32 4294967295, %s6191_s12   ;;  %s4243_s14 = sadd.s32 4294967294, %s6191_s12   ;;  %s6191_s12 = sphi %s6255_s12, %s9844_s12   ;;  %s6187_s11 = sphi %s6253_s11, %s9843_s11   ;;  %s6183_s10 = sphi %s6251_s10, %s9842_s10   ;;  %s6179_s30 = sphi %s6249_s30, %s9841_s30  }
   0x4   : > { %s6274_s15 = sadd.s32 1, %s6191_s12   ;;  %s223_s16 = sadd.s32 1, %s6187_s11 }
   0x5   : > { %s220_s17 = ssub.s32 %s6191_s12, %s6274_s15  ;;  %p233_p0 = scmp.ne.s32.totalorder %s6187_s11, %s6183_s10 }
   0x6   : > { %p221_p1 = scmp.eq.s32.totalorder %s220_s17, 0  ;;  %p234_p2 = scmp.eq.s32.totalorder %s6270_s13, 1 }
   0x7   : > { %p239_p3 = scmp.ne.s32.totalorder %s6183_s10, %s6179_s30  ;;  %p240_p4 = scmp.eq.s32.totalorder %s4243_s14, 1 }
   0x8   : > { %s6285_s18 = scalar_select %p221_p1, %s6187_s11, %s223_s16  }
   0x9   : > { %p6287_p5 = por %p234_p2, %p233_p0  ;;  %p6291_p6 = por %p240_p4, %p239_p3 }
   0xa   : > { %p4246_p7 = scmp.ge.s32.totalorder %s6191_s12, 1  ;;  %p290_p8 = scmp.lt.s32.totalorder %s6191_s12, 3 }
   0xc   : > { %p291_p9 = pnand %p4246_p7, %p290_p8 }
   0xe   : > { %294 = sbr.rel (%p291_p9) target bundleno = 1841 (0x731), region = 56 }
  0x15   : > { %v4253_v0 = vld [vmem:[%s9443_s1 + $0x188] sm:$0xff]  ;;  %v4255_v2 = vld [vmem:[%s9443_s1 + $0x198] sm:$0xff]  ;;  %v4252_v5 = vld [vmem:[%s9443_s1 + $0x180] sm:$0xff]  ;;  %v9452_v7 = vmov 0.0   ;;  %p325_p10 = scmp.lt.s32.totalorder %s6270_s13, 1  ;;  %vm434_vm0 = vcmask 785408  }
  0x16   : > { %v4257_v1 = vld [vmem:[%s9443_s1 + $0x1a8] sm:$0xff]  ;;  %v4259_v4 = vld [vmem:[%s9443_s1 + $0x1b8] sm:$0xff]  ;;  %v4256_v6 = vld [vmem:[%s9443_s1 + $0x1a0] sm:$0xff]  ;;  %502 = vmatprep.mubr.f32.mxu0 %v9452_v7  ;;  %573 = vmatprep.mubr.f32.mxu1 %v9452_v7  ;;  %vm2232_vm1 = vcmask 130048   ;;  %vm2488_vm2 = vcmask 916480   ;;  %s6196_s26 = smov 64  }
  0x17   : > { %v6306_v3 = vpack.c.bf16 %v4257_v1, %v4253_v0  ;;  %v6319_v8 = vpack.c.bf16 %v4259_v4, %v4255_v2  ;;  %v6321_v9 = vpack.c.bf16 %v4256_v6, %v4252_v5  ;;  %v4254_v10 = vld [vmem:[%s9443_s1 + $0x190] sm:$0xff]  ;;  %v4261_v12 = vld [vmem:[%s9443_s1 + $0x1c8] sm:$0xff]  ;;  %v4263_v15 = vld [vmem:[%s9443_s1 + $0x1d8] sm:$0xff]  ;;  %s326_s21 = scalar_select %p325_p10, %s6270_s13, 1  ;;  %vm3457_vm3 = vcmask 523264  }
  0x18   : > { %v4258_v11 = vld [vmem:[%s9443_s1 + $0x1b0] sm:$0xff]  ;;  %v4265_v14 = vld [vmem:[%s9443_s1 + $0x1e8] sm:$0xff]  ;;  %v4267_v16 = vld [vmem:[%s9443_s1 + $0x1f8] sm:$0xff]  ;;  %vm6197_vm4 = vmmov 0   ;;  %s4571_s17 = sshll.u32 %s6270_s13, 4  ;;  %vm4173_vm5 = vcmask 73728  }
  0x19   : > { %4604 = vmatprep.subr.bf16.mxu0 %v6306_v3  ;;  %v6333_v13 = vpack.c.bf16 %v4258_v11, %v4254_v10  ;;  %4628 = vmatprep.subr.bf16.mxu1 %v6319_v8  ;;  %v6346_v17 = vpack.c.bf16 %v4265_v14, %v4261_v12  ;;  %v6348_v18 = vpack.c.bf16 %v4267_v16, %v4263_v15  ;;  %v4260_v19 = vld [vmem:[%s9443_s1 + $0x1c0] sm:$0xff]  ;;  %v4262_v21 = vld [vmem:[%s9443_s1 + $0x1d0] sm:$0xff]  ;;  %v4269_v24 = vld [vmem:[%s9443_s1 + $0x208] sm:$0xff]  ;;  %s4574_s27 = sshll.u32 %s326_s21, 5  ;;  %s9400_s28 = scalar_lea.hbm %s9451_s9, %s4571_s17 }
  0x1a   : > { %4606 = vmatpush1.bf16.msra.mxu0 %v6321_v9  ;;  %v4264_v20 = vld [vmem:[%s9443_s1 + $0x1e0] sm:$0xff]  ;;  %v4266_v23 = vld [vmem:[%s9443_s1 + $0x1f0] sm:$0xff]  ;;  %v4273_v25 = vld [vmem:[%s9443_s1 + $0x228] sm:$0xff]  ;;  %s6533_s22 = scalar_lea.vmem %s9442_s0, %s4574_s27  ;;  %s323_s27 = sand.u32 1, %s6183_s10  }
  0x1b   : > { %4630 = vmatpush1.bf16.msra.mxu1 %v6333_v13  ;;  %v6360_v22 = vpack.c.bf16 %v4264_v20, %v4260_v19  ;;  %4608 = vmatprep.subr.bf16.mxu0 %v6346_v17  ;;  %v6373_v26 = vpack.c.bf16 %v4266_v23, %v4262_v21  ;;  %v6375_v27 = vpack.c.bf16 %v4273_v25, %v4269_v24  ;;  %v4271_v28 = vld [vmem:[%s9443_s1 + $0x218] sm:$0xff]  ;;  %v4268_v30 = vld [vmem:[%s9443_s1 + $0x200] sm:$0xff]  ;;  %v4270_v33 = vld [vmem:[%s9443_s1 + $0x210] sm:$0xff]  ;;  %s324_s23 = scalar_lea.vmem [#allocation2], %s323_s27  ;;  %s6198_s13 = smov [#allocation2]  }
  0x1c   : > { %4632 = vmatprep.subr.bf16.mxu1 %v6348_v18  ;;  %v4275_v29 = vld [vmem:[%s9443_s1 + $0x238] sm:$0xff]  ;;  %v4272_v32 = vld [vmem:[%s9443_s1 + $0x220] sm:$0xff]  ;;  %v4274_v34 = vld [vmem:[%s9443_s1 + $0x230] sm:$0xff]  ;;  %s4188_s24 = sshll.u32 %s324_s23, 4  ;;  %s6133_s14 = sshll.u32 %s6198_s13, 4  ;;  %s9402_s24 = int_to_ptr.vmem [resolvable:$true] %s4188_s24  ;;  %s6134_s14 = int_to_ptr.vmem [resolvable:$false] %s6133_s14 }
  0x1d   : > { %v6386_v31 = vpack.c.bf16 %v4275_v29, %v4271_v28  ;;  %v6398_v35 = vpack.c.bf16 %v4272_v32, %v4268_v30  ;;  %v4277_v36 = vld [vmem:[%s9443_s1 + $0x248] sm:$0xff]  ;;  %v4279_v38 = vld [vmem:[%s9443_s1 + $0x258] sm:$0xff]  ;;  %v6411_v39 = vpack.c.bf16 %v4274_v34, %v4270_v33  ;;  %v4276_v42 = vld [vmem:[%s9443_s1 + $0x240] sm:$0xff]  ;;  %s6129_s29 = scalar_lea.vmem %s9402_s24, 16  ;;  %s6135_s16 = scalar_lea.vmem %s6134_s14, 32 }
  0x1e   : > { %4610 = vmatpush1.bf16.msra.mxu0 %v6360_v22  ;;  %v4281_v37 = vld [vmem:[%s9443_s1 + $0x268] sm:$0xff]  ;;  %v4283_v41 = vld [vmem:[%s9443_s1 + $0x278] sm:$0xff]  ;;  %v4280_v43 = vld [vmem:[%s9443_s1 + $0x260] sm:$0xff]  ;;  %p6130_p11 = scmp.ne.s32.totalorder %s9402_s24, %s6129_s29  ;;  %p6136_p0 = scmp.lt.s32.totalorder %s9402_s24, %s6134_s14 }
  0x1f   : > { %4634 = vmatpush1.bf16.msra.mxu1 %v6373_v26  ;;  %4612 = vmatprep.subr.bf16.mxu0 %v6375_v27  ;;  %v6413_v40 = vpack.c.bf16 %v4281_v37, %v4277_v36  ;;  %v6425_v44 = vpack.c.bf16 %v4283_v41, %v4279_v38  ;;  %v4278_v45 = vld [vmem:[%s9443_s1 + $0x250] sm:$0xff]  ;;  %v4285_v47 = vld [vmem:[%s9443_s1 + $0x288] sm:$0xff]  ;;  %v4287_v49 = vld [vmem:[%s9443_s1 + $0x298] sm:$0xff]  ;;  %v6447_v51 = vpack.c.bf16 %v4280_v43, %v4276_v42  ;;  %p6137_p1 = scmp.lt.s32.totalorder %s6135_s16, %s6129_s29 }
  0x20   : > { %4636 = vmatprep.subr.bf16.mxu1 %v6386_v31  ;;  %v4282_v46 = vld [vmem:[%s9443_s1 + $0x270] sm:$0xff]  ;;  %v4289_v48 = vld [vmem:[%s9443_s1 + $0x2a8] sm:$0xff]  ;;  %v4291_v50 = vld [vmem:[%s9443_s1 + $0x2b8] sm:$0xff]  ;;  %p6131_p12 = pnand %p6130_p11, %p6287_p5 }
  0x21   : > { %v6451_v52 = vpack.c.bf16 %v4282_v46, %v4278_v45  ;;  %v6453_v53 = vpack.c.bf16 %v4289_v48, %v4285_v47  ;;  %v4284_v54 = vld [vmem:[%s9443_s1 + $0x280] sm:$0xff]  ;;  %v4286_v56 = vld [vmem:[%s9443_s1 + $0x290] sm:$0xff]  ;;  %v6465_v57 = vpack.c.bf16 %v4291_v50, %v4287_v49  ;;  %v4293_v59 = vld [vmem:[%s9443_s1 + $0x2c8] sm:$0xff]  ;;  %p6138_p2 = por %p6137_p1, %p6136_p0 }
  0x22   : > { %4614 = vmatpush1.bf16.msra.mxu0 %v6398_v35  ;;  %v4288_v55 = vld [vmem:[%s9443_s1 + $0x2a0] sm:$0xff]  ;;  %v4290_v58 = vld [vmem:[%s9443_s1 + $0x2b0] sm:$0xff]  ;;  %v4297_v60 = vld [vmem:[%s9443_s1 + $0x2e8] sm:$0xff]  ;;  %p6132_p13 = pneg %p6131_p12 }
  0x23   : > { %4638 = vmatpush1.bf16.msra.mxu1 %v6411_v39  ;;  %4616 = vmatprep.subr.bf16.mxu0 %v6413_v40  ;;  %v4295_v61 = vld [vmem:[%s9443_s1 + $0x2d8] sm:$0xff]  ;;  %v6486_v63 = vpack.c.bf16 %v4288_v55, %v4284_v54  ;;  %v6490_v0 = vpack.c.bf16 %v4290_v58, %v4286_v56  ;;  %v6492_v1 = vpack.c.bf16 %v4297_v60, %v4293_v59  ;;  %v4292_v2 = vld [vmem:[%s9443_s1 + $0x2c0] sm:$0xff]  ;;  %v4294_v5 = vld [vmem:[%s9443_s1 + $0x2d0] sm:$0xff] }
  0x24   : > { %4640 = vmatprep.subr.bf16.mxu1 %v6425_v44  ;;  %v4299_v62 = vld [vmem:[%s9443_s1 + $0x2f8] sm:$0xff]  ;;  %v4296_v4 = vld [vmem:[%s9443_s1 + $0x2e0] sm:$0xff]  ;;  %v4298_v10 = vld [vmem:[%s9443_s1 + $0x2f0] sm:$0xff]  ;;  %p6139_p3 = pnand %p6138_p2, %p6132_p13 }
  0x25   : > { %v6504_v6 = vpack.c.bf16 %v4299_v62, %v4295_v61  ;;  %v338_v11 = vld [vmem:[%s9443_s1 + $0x8] sm:$0xff]  ;;  %v340_v14 = vld [vmem:[%s9443_s1 + $0x18] sm:$0xff]  ;;  %v6522_v16 = vpack.c.bf16 %v4296_v4, %v4292_v2  ;;  %v6526_v19 = vpack.c.bf16 %v4298_v10, %v4294_v5  ;;  %v337_v21 = vld [vmem:[%s9443_s1] sm:$0xff] }
  0x26   : > { %4618 = vmatpush1.bf16.msra.mxu0 %v6447_v51  ;;  %v342_v12 = vld [vmem:[%s9443_s1 + $0x28] sm:$0xff]  ;;  %v344_v15 = vld [vmem:[%s9443_s1 + $0x38] sm:$0xff]  ;;  %v341_v23 = vld [vmem:[%s9443_s1 + $0x20] sm:$0xff] }
  0x27   : > { %4642 = vmatpush1.bf16.msra.mxu1 %v6451_v52  ;;  %4620 = vmatprep.subr.bf16.mxu0 %v6453_v53  ;;  %v6528_v20 = vpack.c.bf16 %v342_v12, %v338_v11  ;;  %v339_v24 = vld [vmem:[%s9443_s1 + $0x10] sm:$0xff]  ;;  %v6545_v25 = vpack.c.bf16 %v344_v15, %v340_v14  ;;  %v346_v29 = vld [vmem:[%s9443_s1 + $0x48] sm:$0xff]  ;;  %v348_v32 = vld [vmem:[%s9443_s1 + $0x58] sm:$0xff]  ;;  %v6566_v36 = vpack.c.bf16 %v341_v23, %v337_v21 }
  0x28   : > { %4644 = vmatprep.subr.bf16.mxu1 %v6465_v57  ;;  %v343_v28 = vld [vmem:[%s9443_s1 + $0x30] sm:$0xff]  ;;  %v350_v30 = vld [vmem:[%s9443_s1 + $0x68] sm:$0xff]  ;;  %v352_v33 = vld [vmem:[%s9443_s1 + $0x78] sm:$0xff] }
  0x29   : > { %v6564_v34 = vld [vmem:[%s6533_s22 + $0x8] sm:$0xff]  ;;  %v6570_v37 = vpack.c.bf16 %v343_v28, %v339_v24  ;;  %v6572_v38 = vpack.c.bf16 %v350_v30, %v346_v29  ;;  %v345_v41 = vld [vmem:[%s9443_s1 + $0x40] sm:$0xff]  ;;  %v347_v43 = vld [vmem:[%s9443_s1 + $0x50] sm:$0xff]  ;;  %v6584_v45 = vpack.c.bf16 %v352_v33, %v348_v32 }
  0x2a   : > { %4622 = vmatpush1.bf16.msra.mxu0 %v6486_v63  ;;  %9598 = vst [vmem:[#allocation5_spill] sm:$0xff] %v6564_v34  ;;  %v349_v42 = vld [vmem:[%s9443_s1 + $0x60] sm:$0xff]  ;;  %v351_v46 = vld [vmem:[%s9443_s1 + $0x70] sm:$0xff]  ;;  %v354_v47 = vld [vmem:[%s9443_s1 + $0x88] sm:$0xff] }
  0x2b   : > { %4646 = vmatpush1.bf16.msra.mxu1 %v6490_v0  ;;  %4624 = vmatprep.subr.bf16.mxu0 %v6492_v1  ;;  %v358_v48 = vld [vmem:[%s9443_s1 + $0xa8] sm:$0xff]  ;;  %v356_v49 = vld [vmem:[%s9443_s1 + $0x98] sm:$0xff]  ;;  %v6606_v54 = vpack.c.bf16 %v349_v42, %v345_v41  ;;  %v6610_v55 = vpack.c.bf16 %v351_v46, %v347_v43  ;;  %v353_v58 = vld [vmem:[%s9443_s1 + $0x80] sm:$0xff] }
  0x2c   : > { %4648 = vmatprep.subr.bf16.mxu1 %v6504_v6  ;;  %v360_v50 = vld [vmem:[%s9443_s1 + $0xb8] sm:$0xff]  ;;  %v6612_v56 = vpack.c.bf16 %v358_v48, %v354_v47  ;;  %v357_v59 = vld [vmem:[%s9443_s1 + $0xa0] sm:$0xff]  ;;  %v355_v60 = vld [vmem:[%s9443_s1 + $0x90] sm:$0xff] }
  0x2d   : > { %v6624_v61 = vpack.c.bf16 %v360_v50, %v356_v49  ;;  %v359_v62 = vld [vmem:[%s9443_s1 + $0xb0] sm:$0xff]  ;;  %v362_v2 = vld [vmem:[%s9443_s1 + $0xc8] sm:$0xff]  ;;  %v364_v5 = vld [vmem:[%s9443_s1 + $0xd8] sm:$0xff]  ;;  %v6644_v11 = vpack.c.bf16 %v357_v59, %v353_v58 }
  0x2e   : > { %4626 = vmatpush1.bf16.msra.mxu0 %v6522_v16  ;;  %v366_v4 = vld [vmem:[%s9443_s1 + $0xe8] sm:$0xff]  ;;  %v368_v10 = vld [vmem:[%s9443_s1 + $0xf8] sm:$0xff]  ;;  %v6648_v12 = vpack.c.bf16 %v359_v62, %v355_v60  ;;  %v361_v15 = vld [vmem:[%s9443_s1 + $0xc0] sm:$0xff] }
  0x2f   : > { %4650 = vmatpush1.bf16.msra.mxu1 %v6526_v19  ;;  %4652 = vmatprep.subr.bf16.mxu0 %v6528_v20  ;;  %9599 = vst [vmem:[#allocation6_spill] sm:$0xff] %v6644_v11  ;;  %v6650_v14 = vpack.c.bf16 %v366_v4, %v362_v2  ;;  %v365_v21 = vld [vmem:[%s9443_s1 + $0xe0] sm:$0xff]  ;;  %v363_v23 = vld [vmem:[%s9443_s1 + $0xd0] sm:$0xff]  ;;  %v6662_v24 = vpack.c.bf16 %v368_v10, %v364_v5  ;;  %v370_v29 = vld [vmem:[%s9443_s1 + $0x108] sm:$0xff] }
  0x30   : > { %4676 = vmatprep.subr.bf16.mxu1 %v6545_v25  ;;  %v367_v28 = vld [vmem:[%s9443_s1 + $0xf0] sm:$0xff]  ;;  %v374_v30 = vld [vmem:[%s9443_s1 + $0x128] sm:$0xff]  ;;  %v372_v32 = vld [vmem:[%s9443_s1 + $0x118] sm:$0xff]  ;;  %v6680_v41 = vpack.c.bf16 %v365_v21, %v361_v15 }
  0x31   : > { %4300 = vmatmul.mubr.msk.f32.vlgmr.msra.gmra.mrb[0].mxu0 %vm434_vm0, %v6564_v34  ;;  %9600 = vst [vmem:[#allocation7_spill] sm:$0xff] %v6650_v14  ;;  %9601 = vst [vmem:[#allocation8_spill] sm:$0xff] %v6662_v24  ;;  %v376_v33 = vld [vmem:[%s9443_s1 + $0x138] sm:$0xff]  ;;  %v6684_v42 = vpack.c.bf16 %v367_v28, %v363_v23  ;;  %v6686_v43 = vpack.c.bf16 %v374_v30, %v370_v29  ;;  %v369_v46 = vld [vmem:[%s9443_s1 + $0x100] sm:$0xff] }
  0x32   : > { %4301 = vmatmul.mubr.msk.f32.vlgmr.msra.gmra.mrb[0].mxu1 %vm434_vm0, %v6564_v34  ;;  %4654 = vmatpush1.bf16.msra.mxu0 %v6566_v36  ;;  %9602 = vst [vmem:[#allocation9_spill] sm:$0xff] %v6680_v41  ;;  %v373_v47 = vld [vmem:[%s9443_s1 + $0x120] sm:$0xff]  ;;  %v371_v48 = vld [vmem:[%s9443_s1 + $0x110] sm:$0xff]  ;;  %v6698_v49 = vpack.c.bf16 %v376_v33, %v372_v32  ;;  %v378_v58 = vld [vmem:[%s9443_s1 + $0x148] sm:$0xff] }
  0x33   : > { %4678 = vmatpush1.bf16.msra.mxu1 %v6570_v37  ;;  %4656 = vmatprep.subr.bf16.mxu0 %v6572_v38  ;;  %9603 = vst [vmem:[#allocation10_spill] sm:$0xff] %v6684_v42  ;;  %v375_v50 = vld [vmem:[%s9443_s1 + $0x130] sm:$0xff]  ;;  %v382_v59 = vld [vmem:[%s9443_s1 + $0x168] sm:$0xff]  ;;  %v380_v60 = vld [vmem:[%s9443_s1 + $0x158] sm:$0xff]  ;;  %v6716_v2 = vpack.c.bf16 %v373_v47, %v369_v46 }
  0x34   : > { %4680 = vmatprep.subr.bf16.mxu1 %v6584_v45  ;;  %647 = vmatprep.mubr.f32.mxu0 %v9452_v7  ;;  %v384_v62 = vld [vmem:[%s9443_s1 + $0x178] sm:$0xff]  ;;  %v6720_v4 = vpack.c.bf16 %v375_v50, %v371_v48  ;;  %v6722_v5 = vpack.c.bf16 %v382_v59, %v378_v58  ;;  %v377_v10 = vld [vmem:[%s9443_s1 + $0x140] sm:$0xff]  ;;  %v379_v21 = vld [vmem:[%s9443_s1 + $0x150] sm:$0xff] }
  0x35   : > { %718 = vmatprep.mubr.f32.mxu1 %v9452_v7  ;;  %9604 = vst [vmem:[#allocation11_spill] sm:$0xff] %v6716_v2  ;;  %v381_v15 = vld [vmem:[%s9443_s1 + $0x160] sm:$0xff]  ;;  %v6734_v23 = vpack.c.bf16 %v384_v62, %v380_v60  ;;  %v383_v28 = vld [vmem:[%s9443_s1 + $0x170] sm:$0xff]  ;;  %v4305_v29 = vld [vmem:[%s9443_s1 + $0x308] sm:$0xff] }
  0x36   : > { %4658 = vmatpush1.bf16.msra.mxu0 %v6606_v54  ;;  %9605 = vst [vmem:[#allocation12_spill] sm:$0xff] %v6720_v4  ;;  %9606 = vst [vmem:[#allocation13_spill] sm:$0xff] %v6722_v5  ;;  %v4309_v30 = vld [vmem:[%s9443_s1 + $0x328] sm:$0xff]  ;;  %v4307_v32 = vld [vmem:[%s9443_s1 + $0x318] sm:$0xff]  ;;  %v6752_v46 = vpack.c.bf16 %v381_v15, %v377_v10  ;;  %v6756_v47 = vpack.c.bf16 %v383_v28, %v379_v21 }
  0x37   : > { %4682 = vmatpush1.bf16.msra.mxu1 %v6610_v55  ;;  %4660 = vmatprep.subr.bf16.mxu0 %v6612_v56  ;;  %9607 = vst [vmem:[#allocation14_spill] sm:$0xff] %v6734_v23  ;;  %v4311_v33 = vld [vmem:[%s9443_s1 + $0x338] sm:$0xff]  ;;  %v6758_v48 = vpack.c.bf16 %v4309_v30, %v4305_v29  ;;  %v4304_v50 = vld [vmem:[%s9443_s1 + $0x300] sm:$0xff]  ;;  %v4306_v59 = vld [vmem:[%s9443_s1 + $0x310] sm:$0xff] }
  0x38   : > { %4684 = vmatprep.subr.bf16.mxu1 %v6624_v61  ;;  %9608 = vst [vmem:[#allocation15_spill] sm:$0xff] %v6752_v46  ;;  %9609 = vst [vmem:[#allocation16_spill] sm:$0xff] %v6756_v47  ;;  %v4308_v58 = vld [vmem:[%s9443_s1 + $0x320] sm:$0xff]  ;;  %v6770_v60 = vpack.c.bf16 %v4311_v33, %v4307_v32  ;;  %v4310_v62 = vld [vmem:[%s9443_s1 + $0x330] sm:$0xff] }
  0x39   : > { %9610 = vst [vmem:[#allocation17_spill] sm:$0xff] %v6758_v48  ;;  %v4313_v10 = vld [vmem:[%s9443_s1 + $0x348] sm:$0xff]  ;;  %v4315_v21 = vld [vmem:[%s9443_s1 + $0x358] sm:$0xff]  ;;  %v6789_v29 = vld [vmem:[%s6533_s22] sm:$0xff]  ;;  %v6791_v30 = vpack.c.bf16 %v4308_v58, %v4304_v50  ;;  %v6795_v32 = vpack.c.bf16 %v4310_v62, %v4306_v59 }
  0x3a   : > { %4662 = vmatpush1.bf16.msra.mxu0 %v6644_v11  ;;  %9611 = vst [vmem:[#allocation18_spill] sm:$0xff] %v6770_v60  ;;  %v4317_v15 = vld [vmem:[%s9443_s1 + $0x368] sm:$0xff]  ;;  %v4319_v28 = vld [vmem:[%s9443_s1 + $0x378] sm:$0xff]  ;;  %9612 = vst [vmem:[#allocation19_spill] sm:$0xff] %v6789_v29 }
  0x3b   : > { %4686 = vmatpush1.bf16.msra.mxu1 %v6648_v12  ;;  %4664 = vmatprep.subr.bf16.mxu0 %v6650_v14  ;;  %9613 = vst [vmem:[#allocation20_spill] sm:$0xff] %v6791_v30  ;;  %9614 = vst [vmem:[#allocation21_spill] sm:$0xff] %v6795_v32  ;;  %v6797_v33 = vpack.c.bf16 %v4317_v15, %v4313_v10  ;;  %v4312_v7 = vld [vmem:[%s9443_s1 + $0x340] sm:$0xff]  ;;  %v4314_v50 = vld [vmem:[%s9443_s1 + $0x350] sm:$0xff]  ;;  %v6809_v58 = vpack.c.bf16 %v4319_v28, %v4315_v21 }
  0x3c   : > { %4688 = vmatprep.subr.bf16.mxu1 %v6662_v24  ;;  %v4316_v34 = vld [vmem:[%s9443_s1 + $0x360] sm:$0xff]  ;;  %v4318_v59 = vld [vmem:[%s9443_s1 + $0x370] sm:$0xff]  ;;  %v4321_v62 = vld [vmem:[%s9443_s1 + $0x388] sm:$0xff] }
  0x3d   : > { %9615 = vst [vmem:[#allocation22_spill] sm:$0xff] %v6797_v33  ;;  %9616 = vst [vmem:[#allocation23_spill] sm:$0xff] %v6809_v58  ;;  %v4325_v10 = vld [vmem:[%s9443_s1 + $0x3a8] sm:$0xff]  ;;  %v4323_v15 = vld [vmem:[%s9443_s1 + $0x398] sm:$0xff]  ;;  %v6831_v28 = vpack.c.bf16 %v4316_v34, %v4312_v7 }
  0x3e   : > { %4666 = vmatpush1.bf16.msra.mxu0 %v6680_v41  ;;  %v4327_v21 = vld [vmem:[%s9443_s1 + $0x3b8] sm:$0xff]  ;;  %v4322_v7 = vld [vmem:[%s9443_s1 + $0x390] sm:$0xff] }
  0x3f   : > { %4690 = vmatpush1.bf16.msra.mxu1 %v6684_v42  ;;  %4668 = vmatprep.subr.bf16.mxu0 %v6686_v43  ;;  %9617 = vst [vmem:[#allocation24_spill] sm:$0xff] %v6831_v28  ;;  %v6849_v34 = vpack.c.bf16 %v4327_v21, %v4323_v15  ;;  %v4335_v15 = vld [vmem:[%s9443_s1 + $0x3f8] sm:$0xff] }
  0x40   : > { %4692 = vmatprep.subr.bf16.mxu1 %v6698_v49 }
  0x41   : > { %9620 = vst [vmem:[#allocation27_spill] sm:$0xff] %v6849_v34 }
  0x42   : > { %4670 = vmatpush1.bf16.msra.mxu0 %v6716_v2 }
  0x43   : > { %4694 = vmatpush1.bf16.msra.mxu1 %v6720_v4  ;;  %4672 = vmatprep.subr.bf16.mxu0 %v6722_v5 }
  0x44   : > { %4696 = vmatprep.subr.bf16.mxu1 %v6734_v23 }
  0x46   : > { %4674 = vmatpush1.bf16.msra.mxu0 %v6752_v46  ;;  %v4332_v46 = vld [vmem:[%s9443_s1 + $0x3e0] sm:$0xff] }
  0x47   : > { %4698 = vmatpush1.bf16.msra.mxu1 %v6756_v47  ;;  %4700 = vmatprep.subr.bf16.mxu0 %v6758_v48  ;;  %v6837_v48 = vpack.c.bf16 %v4325_v10, %v4321_v62  ;;  %v4320_v47 = vld [vmem:[%s9443_s1 + $0x380] sm:$0xff]  ;;  %v4333_v62 = vld [vmem:[%s9443_s1 + $0x3e8] sm:$0xff]  ;;  %v9621_v10 = vmov 0.0  }
  0x48   : > { %4724 = vmatprep.subr.bf16.mxu1 %v6770_v60  ;;  %v6835_v60 = vpack.c.bf16 %v4318_v59, %v4314_v50  ;;  %v4326_v50 = vld [vmem:[%s9443_s1 + $0x3b0] sm:$0xff]  ;;  %v4329_v59 = vld [vmem:[%s9443_s1 + $0x3c8] sm:$0xff] }
  0x49   : > { %4302 = vmatmul.mubr.msk.f32.vlgmr.msra.gmra.mrb[0].mxu0 %vm434_vm0, %v6789_v29  ;;  %9619 = vst [vmem:[#allocation26_spill] sm:$0xff] %v6837_v48 }
  0x4a   : > { %4303 = vmatmul.mubr.msk.f32.vlgmr.msra.gmra.mrb[0].mxu1 %vm434_vm0, %v6789_v29  ;;  %4702 = vmatpush1.bf16.msra.mxu0 %v6791_v30  ;;  %9618 = vst [vmem:[#allocation25_spill] sm:$0xff] %v6835_v60  ;;  %v4324_v29 = vld [vmem:[%s9443_s1 + $0x3a0] sm:$0xff] }
  0x4b   : > { %4726 = vmatpush1.bf16.msra.mxu1 %v6795_v32  ;;  %4704 = vmatprep.subr.bf16.mxu0 %v6797_v33  ;;  %v6869_v21 = vpack.c.bf16 %v4324_v29, %v4320_v47  ;;  %v6873_v33 = vpack.c.bf16 %v4326_v50, %v4322_v7  ;;  %v6875_v32 = vpack.c.bf16 %v4333_v62, %v4329_v59  ;;  %v4328_v30 = vld [vmem:[%s9443_s1 + $0x3c0] sm:$0xff]  ;;  %v4330_v47 = vld [vmem:[%s9443_s1 + $0x3d0] sm:$0xff]  ;;  %v4337_v50 = vld [vmem:[%s9443_s1 + $0x408] sm:$0xff] }
  0x4c   : > { %4728 = vmatprep.subr.bf16.mxu1 %v6809_v58  ;;  %841 = vmatprep.mubr.f32.mxu0 %v9621_v10  ;;  %v4331_v58 = vld [vmem:[%s9443_s1 + $0x3d8] sm:$0xff]  ;;  %v4334_v7 = vld [vmem:[%s9443_s1 + $0x3f0] sm:$0xff]  ;;  %v4341_v59 = vld [vmem:[%s9443_s1 + $0x428] sm:$0xff] }
  0x4d   : > { %912 = vmatprep.mubr.f32.mxu1 %v9621_v10  ;;  %9622 = vst [vmem:[#allocation28_spill] sm:$0xff] %v6869_v21  ;;  %9623 = vst [vmem:[#allocation29_spill] sm:$0xff] %v6873_v33  ;;  %v6887_v29 = vpack.c.bf16 %v4335_v15, %v4331_v58  ;;  %v4339_v62 = vld [vmem:[%s9443_s1 + $0x418] sm:$0xff]  ;;  %v6905_v15 = vpack.c.bf16 %v4332_v46, %v4328_v30  ;;  %v4338_v46 = vld [vmem:[%s9443_s1 + $0x410] sm:$0xff] }
  0x4e   : > { %4706 = vmatpush1.bf16.msra.mxu0 %v6831_v28  ;;  %9624 = vst [vmem:[#allocation30_spill] sm:$0xff] %v6875_v32  ;;  %v4343_v58 = vld [vmem:[%s9443_s1 + $0x438] sm:$0xff]  ;;  %v4340_v28 = vld [vmem:[%s9443_s1 + $0x420] sm:$0xff] }
  0x4f   : > { %4730 = vmatpush1.bf16.msra.mxu1 %v6835_v60  ;;  %4708 = vmatprep.subr.bf16.mxu0 %v6837_v48  ;;  %9625 = vst [vmem:[#allocation31_spill] sm:$0xff] %v6887_v29  ;;  %v6911_v48 = vpack.c.bf16 %v4341_v59, %v4337_v50  ;;  %v4336_v60 = vld [vmem:[%s9443_s1 + $0x400] sm:$0xff]  ;;  %v6923_v30 = vpack.c.bf16 %v4343_v58, %v4339_v62  ;;  %v4349_v50 = vld [vmem:[%s9443_s1 + $0x468] sm:$0xff]  ;;  %v4347_v59 = vld [vmem:[%s9443_s1 + $0x458] sm:$0xff] }
  0x50   : > { %4732 = vmatprep.subr.bf16.mxu1 %v6849_v34  ;;  %v6909_v34 = vpack.c.bf16 %v4334_v7, %v4330_v47  ;;  %v4342_v47 = vld [vmem:[%s9443_s1 + $0x430] sm:$0xff]  ;;  %v4345_v7 = vld [vmem:[%s9443_s1 + $0x448] sm:$0xff]  ;;  %v4351_v62 = vld [vmem:[%s9443_s1 + $0x478] sm:$0xff]  ;;  %v6941_v58 = vpack.c.bf16 %v4340_v28, %v4336_v60 }
  0x51   : > { %v6956_v60 = vpack.c.bf16 %v4351_v62, %v4347_v59  ;;  %v4346_v28 = vld [vmem:[%s9443_s1 + $0x450] sm:$0xff]  ;;  %v9629_v59 = vld [vmem:[#allocation17_spill] sm:$0xff] }
  0x52   : > { %4710 = vmatpush1.bf16.msra.mxu0 %v6869_v21  ;;  %v4348_v21 = vld [vmem:[%s9443_s1 + $0x460] sm:$0xff]  ;;  %v9630_v62 = vld [vmem:[#allocation18_spill] sm:$0xff] }
  0x53   : > { %4734 = vmatpush1.bf16.msra.mxu1 %v6873_v33  ;;  %4712 = vmatprep.subr.bf16.mxu0 %v6875_v32  ;;  %v6947_v32 = vpack.c.bf16 %v4349_v50, %v4345_v7  ;;  %v4344_v33 = vld [vmem:[%s9443_s1 + $0x440] sm:$0xff]  ;;  %v6974_v50 = vld [vmem:[%s6533_s22 + $0x10] sm:$0xff] }
  0x54   : > { %4736 = vmatprep.subr.bf16.mxu1 %v6887_v29  ;;  %v6945_v29 = vpack.c.bf16 %v4342_v47, %v4338_v46  ;;  %v4350_v46 = vld [vmem:[%s9443_s1 + $0x470] sm:$0xff]  ;;  %v6965_v47 = vpack.c.bf16 %v4348_v21, %v4344_v33  ;;  %9626 = vst [vmem:[#allocation32_spill] sm:$0xff] %v6974_v50  ;;  %v9628_v21 = vld [vmem:[#allocation16_spill] sm:$0xff] }
  0x55   : > { %v6969_v7 = vpack.c.bf16 %v4350_v46, %v4346_v28  ;;  %v9627_v33 = vld [vmem:[#allocation15_spill] sm:$0xff]  ;;  %v9631_v28 = vld [vmem:[#allocation5_spill] sm:$0xff]  ;;  %v9632_v46 = vld [vmem:[#allocation20_spill] sm:$0xff] }
  0x56   : > { %4714 = vmatpush1.bf16.msra.mxu0 %v6905_v15 }
  0x57   : > { %4738 = vmatpush1.bf16.msra.mxu1 %v6909_v34  ;;  %4716 = vmatprep.subr.bf16.mxu0 %v6911_v48 }
  0x58   : > { %4740 = vmatprep.subr.bf16.mxu1 %v6923_v30 }
  0x5a   : > { %4718 = vmatpush1.bf16.msra.mxu0 %v6941_v58 }
  0x5b   : > { %4742 = vmatpush1.bf16.msra.mxu1 %v6945_v29  ;;  %4720 = vmatprep.subr.bf16.mxu0 %v6947_v32 }
  0x5c   : > { %4744 = vmatprep.subr.bf16.mxu1 %v6956_v60 }
  0x5e   : > { %4722 = vmatpush1.bf16.msra.mxu0 %v6965_v47 }
  0x5f   : > { %4746 = vmatpush1.bf16.msra.mxu1 %v6969_v7  ;;  %4748 = vmatprep.subr.bf16.mxu0 %v6306_v3 }
  0x60   : > { %4772 = vmatprep.subr.bf16.mxu1 %v6319_v8 }
  0x61   : > { %4352 = vmatmul.mubr.msk.f32.vlgmr.msra.gmra.mrb[0].mxu0 %vm434_vm0, %v6974_v50 }
  0x62   : > { %4353 = vmatmul.mubr.msk.f32.vlgmr.msra.gmra.mrb[0].mxu1 %vm434_vm0, %v6974_v50  ;;  %4750 = vmatpush1.bf16.msra.mxu0 %v6321_v9 }
  0x63   : > { %4774 = vmatpush1.bf16.msra.mxu1 %v6333_v13  ;;  %4752 = vmatprep.subr.bf16.mxu0 %v6346_v17 }
  0x64   : > { %4776 = vmatprep.subr.bf16.mxu1 %v6348_v18  ;;  %987 = vmatprep.mubr.f32.mxu0 %v9621_v10 }
  0x65   : > { %1058 = vmatprep.mubr.f32.mxu1 %v9621_v10 }
  0x66   : > { %4754 = vmatpush1.bf16.msra.mxu0 %v6360_v22 }
  0x67   : > { %4778 = vmatpush1.bf16.msra.mxu1 %v6373_v26  ;;  %4756 = vmatprep.subr.bf16.mxu0 %v6375_v27 }
  0x68   : > { %4780 = vmatprep.subr.bf16.mxu1 %v6386_v31 }
  0x6a   : > { %4758 = vmatpush1.bf16.msra.mxu0 %v6398_v35 }
  0x6b   : > { %4782 = vmatpush1.bf16.msra.mxu1 %v6411_v39  ;;  %4760 = vmatprep.subr.bf16.mxu0 %v6413_v40 }
  0x6c   : > { %4784 = vmatprep.subr.bf16.mxu1 %v6425_v44 }
  0x6e   : > { %4762 = vmatpush1.bf16.msra.mxu0 %v6447_v51 }
  0x6f   : > { %4786 = vmatpush1.bf16.msra.mxu1 %v6451_v52  ;;  %4764 = vmatprep.subr.bf16.mxu0 %v6453_v53 }
  0x70   : > { %4788 = vmatprep.subr.bf16.mxu1 %v6465_v57 }
  0x72   : > { %4766 = vmatpush1.bf16.msra.mxu0 %v6486_v63 }
  0x73   : > { %4790 = vmatpush1.bf16.msra.mxu1 %v6490_v0  ;;  %4768 = vmatprep.subr.bf16.mxu0 %v6492_v1 }
  0x74   : > { %4792 = vmatprep.subr.bf16.mxu1 %v6504_v6 }
  0x76   : > { %4770 = vmatpush1.bf16.msra.mxu0 %v6522_v16 }
  0x77   : > { %4794 = vmatpush1.bf16.msra.mxu1 %v6526_v19  ;;  %4796 = vmatprep.subr.bf16.mxu0 %v6528_v20 }
  0x78   : > { %4820 = vmatprep.subr.bf16.mxu1 %v6545_v25 }
  0x79   : > { %4354 = vmatmul.mubr.msk.f32.vlgmr.msra.gmra.mrb[2].mxu0 %vm434_vm0, %v6974_v50 }
  0x7a   : > { %4355 = vmatmul.mubr.msk.f32.vlgmr.msra.gmra.mrb[2].mxu1 %vm434_vm0, %v6974_v50  ;;  %4798 = vmatpush1.bf16.msra.mxu0 %v6566_v36  ;;  %v9633_v50 = vld [vmem:[#allocation21_spill] sm:$0xff] }
  0x7b   : > { %4822 = vmatpush1.bf16.msra.mxu1 %v6570_v37  ;;  %4800 = vmatprep.subr.bf16.mxu0 %v6572_v38 }
  0x7c   : > { %4824 = vmatprep.subr.bf16.mxu1 %v6584_v45  ;;  %1129 = vmatprep.mubr.f32.mxu0 %v9621_v10 }
  0x7d   : > { %1200 = vmatprep.mubr.f32.mxu1 %v9621_v10 }
  0x7e   : > { %4802 = vmatpush1.bf16.msra.mxu0 %v6606_v54 }
  0x7f   : > { %4826 = vmatpush1.bf16.msra.mxu1 %v6610_v55  ;;  %4804 = vmatprep.subr.bf16.mxu0 %v6612_v56 }
  0x80   : > { %4828 = vmatprep.subr.bf16.mxu1 %v6624_v61 }
  0x82   : > { %4806 = vmatpush1.bf16.msra.mxu0 %v6644_v11 }
  0x83   : > { %4830 = vmatpush1.bf16.msra.mxu1 %v6648_v12  ;;  %4808 = vmatprep.subr.bf16.mxu0 %v6650_v14 }
  0x84   : > { %4832 = vmatprep.subr.bf16.mxu1 %v6662_v24 }
  0x86   : > { %4810 = vmatpush1.bf16.msra.mxu0 %v6680_v41 }
  0x87   : > { %4834 = vmatpush1.bf16.msra.mxu1 %v6684_v42  ;;  %4812 = vmatprep.subr.bf16.mxu0 %v6686_v43 }
  0x88   : > { %4836 = vmatprep.subr.bf16.mxu1 %v6698_v49 }
  0x8a   : > { %4814 = vmatpush1.bf16.msra.mxu0 %v6716_v2 }
  0x8b   : > { %4838 = vmatpush1.bf16.msra.mxu1 %v6720_v4  ;;  %4816 = vmatprep.subr.bf16.mxu0 %v6722_v5  ;;  %v9634_v5 = vld [vmem:[#allocation22_spill] sm:$0xff] }
  0x8c   : > { %4840 = vmatprep.subr.bf16.mxu1 %v6734_v23  ;;  %v9635_v23 = vld [vmem:[#allocation23_spill] sm:$0xff] }
  0x8e   : > { %4818 = vmatpush1.bf16.msra.mxu0 %v9627_v33 }
  0x8f   : > { %4842 = vmatpush1.bf16.msra.mxu1 %v9628_v21  ;;  %4844 = vmatprep.subr.bf16.mxu0 %v9629_v59  ;;  %v9636_v59 = vld [vmem:[#allocation24_spill] sm:$0xff]  ;;  %v9638_v21 = vld [vmem:[#allocation26_spill] sm:$0xff] }
  0x90   : > { %4868 = vmatprep.subr.bf16.mxu1 %v9630_v62  ;;  %v9637_v62 = vld [vmem:[#allocation25_spill] sm:$0xff] }
  0x91   : > { %4356 = vmatmul.mubr.msk.f32.vlgmr.msra.gmra.mrb[2].mxu0 %vm434_vm0, %v9631_v28 }
  0x92   : > { %4357 = vmatmul.mubr.msk.f32.vlgmr.msra.gmra.mrb[2].mxu1 %vm434_vm0, %v9631_v28  ;;  %4846 = vmatpush1.bf16.msra.mxu0 %v9632_v46  ;;  %v9639_v28 = vld [vmem:[#allocation27_spill] sm:$0xff]  ;;  %v9640_v46 = vld [vmem:[#allocation28_spill] sm:$0xff] }
  0x93   : > { %4870 = vmatpush1.bf16.msra.mxu1 %v9633_v50  ;;  %4848 = vmatprep.subr.bf16.mxu0 %v9634_v5  ;;  %v9641_v50 = vld [vmem:[#allocation29_spill] sm:$0xff]  ;;  %v9642_v5 = vld [vmem:[#allocation30_spill] sm:$0xff] }
  0x94   : > { %4872 = vmatprep.subr.bf16.mxu1 %v9635_v23  ;;  %1274 = vmatprep.mubr.f32.mxu0 %v9621_v10  ;;  %v9643_v23 = vld [vmem:[#allocation31_spill] sm:$0xff] }
  0x95   : > { %1345 = vmatprep.mubr.f32.mxu1 %v9621_v10 }
  0x96   : > { %4850 = vmatpush1.bf16.msra.mxu0 %v9636_v59 }
  0x97   : > { %4874 = vmatpush1.bf16.msra.mxu1 %v9637_v62  ;;  %4852 = vmatprep.subr.bf16.mxu0 %v9638_v21 }
  0x98   : > { %4876 = vmatprep.subr.bf16.mxu1 %v9639_v28 }
  0x9a   : > { %4854 = vmatpush1.bf16.msra.mxu0 %v9640_v46 }
  0x9b   : > { %4878 = vmatpush1.bf16.msra.mxu1 %v9641_v50  ;;  %4856 = vmatprep.subr.bf16.mxu0 %v9642_v5  ;;  %v7067_v5 = vld [vmem:[%s6533_s22 + $0x18] sm:$0xff]  ;;  %s6194_s22 = smov 16  }
  0x9c   : > { %4880 = vmatprep.subr.bf16.mxu1 %v9643_v23  ;;  %9644 = vst [vmem:[#allocation15_spill] sm:$0xff] %v7067_v5 }
  0x9e   : > { %4858 = vmatpush1.bf16.msra.mxu0 %v6905_v15 }
  0x9f   : > { %4882 = vmatpush1.bf16.msra.mxu1 %v6909_v34  ;;  %4860 = vmatprep.subr.bf16.mxu0 %v6911_v48 }
  0xa0   : > { %4884 = vmatprep.subr.bf16.mxu1 %v6923_v30 }
  0xa2   : > { %4862 = vmatpush1.bf16.msra.mxu0 %v6941_v58 }
  0xa3   : > { %4886 = vmatpush1.bf16.msra.mxu1 %v6945_v29  ;;  %4864 = vmatprep.subr.bf16.mxu0 %v6947_v32 }
  0xa4   : > { %4888 = vmatprep.subr.bf16.mxu1 %v6956_v60 }
  0xa6   : > { %4866 = vmatpush1.bf16.msra.mxu0 %v6965_v47 }
  0xa7   : > { %4890 = vmatpush1.bf16.msra.mxu1 %v6969_v7  ;;  %4892 = vmatprep.subr.bf16.mxu0 %v6306_v3 }
  0xa8   : > { %4916 = vmatprep.subr.bf16.mxu1 %v6319_v8 }
  0xa9   : > { %4358 = vmatmul.mubr.msk.f32.vlgmr.msra.gmra.mrb[2].mxu0 %vm434_vm0, %v7067_v5 }
  0xaa   : > { %4359 = vmatmul.mubr.msk.f32.vlgmr.msra.gmra.mrb[2].mxu1 %vm434_vm0, %v7067_v5  ;;  %4894 = vmatpush1.bf16.msra.mxu0 %v6321_v9 }
  0xab   : > { %4918 = vmatpush1.bf16.msra.mxu1 %v6333_v13  ;;  %4896 = vmatprep.subr.bf16.mxu0 %v6346_v17 }
  0xac   : > { %4920 = vmatprep.subr.bf16.mxu1 %v6348_v18  ;;  %1420 = vmatprep.mubr.f32.mxu0 %v9621_v10 }
  0xad   : > { %1491 = vmatprep.mubr.f32.mxu1 %v9621_v10 }
  0xae   : > { %4898 = vmatpush1.bf16.msra.mxu0 %v6360_v22 }
  0xaf   : > { %4922 = vmatpush1.bf16.msra.mxu1 %v6373_v26  ;;  %4900 = vmatprep.subr.bf16.mxu0 %v6375_v27 }
  0xb0   : > { %4924 = vmatprep.subr.bf16.mxu1 %v6386_v31 }
  0xb2   : > { %4902 = vmatpush1.bf16.msra.mxu0 %v6398_v35 }
  0xb3   : > { %4926 = vmatpush1.bf16.msra.mxu1 %v6411_v39  ;;  %4904 = vmatprep.subr.bf16.mxu0 %v6413_v40 }
  0xb4   : > { %4928 = vmatprep.subr.bf16.mxu1 %v6425_v44 }
  0xb6   : > { %4906 = vmatpush1.bf16.msra.mxu0 %v6447_v51 }
  0xb7   : > { %4930 = vmatpush1.bf16.msra.mxu1 %v6451_v52  ;;  %4908 = vmatprep.subr.bf16.mxu0 %v6453_v53 }
  0xb8   : > { %4932 = vmatprep.subr.bf16.mxu1 %v6465_v57 }
  0xba   : > { %4910 = vmatpush1.bf16.msra.mxu0 %v6486_v63 }
  0xbb   : > { %4934 = vmatpush1.bf16.msra.mxu1 %v6490_v0  ;;  %4912 = vmatprep.subr.bf16.mxu0 %v6492_v1 }
  0xbc   : > { %4936 = vmatprep.subr.bf16.mxu1 %v6504_v6 }
  0xbe   : > { %4914 = vmatpush1.bf16.msra.mxu0 %v6522_v16 }
  0xbf   : > { %4938 = vmatpush1.bf16.msra.mxu1 %v6526_v19  ;;  %4940 = vmatprep.subr.bf16.mxu0 %v6528_v20 }
  0xc0   : > { %4964 = vmatprep.subr.bf16.mxu1 %v6545_v25 }
  0xc1   : > { %4360 = vmatmul.mubr.msk.f32.vlgmr.msra.gmra.mrb[4].mxu0 %vm434_vm0, %v7067_v5 }
  0xc2   : > { %4361 = vmatmul.mubr.msk.f32.vlgmr.msra.gmra.mrb[4].mxu1 %vm434_vm0, %v7067_v5  ;;  %4942 = vmatpush1.bf16.msra.mxu0 %v6566_v36  ;;  %v9645_v5 = vld [vmem:[#allocation13_spill] sm:$0xff] }
  0xc3   : > { %4966 = vmatpush1.bf16.msra.mxu1 %v6570_v37  ;;  %4944 = vmatprep.subr.bf16.mxu0 %v6572_v38 }
  0xc4   : > { %4968 = vmatprep.subr.bf16.mxu1 %v6584_v45  ;;  %1562 = vmatprep.mubr.f32.mxu0 %v9621_v10 }
  0xc5   : > { %1633 = vmatprep.mubr.f32.mxu1 %v9621_v10 }
  0xc6   : > { %4946 = vmatpush1.bf16.msra.mxu0 %v6606_v54 }
  0xc7   : > { %4970 = vmatpush1.bf16.msra.mxu1 %v6610_v55  ;;  %4948 = vmatprep.subr.bf16.mxu0 %v6612_v56 }
  0xc8   : > { %4972 = vmatprep.subr.bf16.mxu1 %v6624_v61 }
  0xca   : > { %4950 = vmatpush1.bf16.msra.mxu0 %v6644_v11  ;;  %v9646_v11 = vld [vmem:[#allocation14_spill] sm:$0xff] }
  0xcb   : > { %4974 = vmatpush1.bf16.msra.mxu1 %v6648_v12  ;;  %4952 = vmatprep.subr.bf16.mxu0 %v6650_v14  ;;  %v9647_v14 = vld [vmem:[#allocation16_spill] sm:$0xff] }
  0xcc   : > { %4976 = vmatprep.subr.bf16.mxu1 %v6662_v24  ;;  %v9648_v24 = vld [vmem:[#allocation17_spill] sm:$0xff] }
  0xce   : > { %4954 = vmatpush1.bf16.msra.mxu0 %v6680_v41  ;;  %v9649_v41 = vld [vmem:[#allocation18_spill] sm:$0xff] }
  0xcf   : > { %4978 = vmatpush1.bf16.msra.mxu1 %v6684_v42  ;;  %4956 = vmatprep.subr.bf16.mxu0 %v6686_v43  ;;  %v9650_v42 = vld [vmem:[#allocation32_spill] sm:$0xff] }
  0xd0   : > { %4980 = vmatprep.subr.bf16.mxu1 %v6698_v49 }
  0xd2   : > { %4958 = vmatpush1.bf16.msra.mxu0 %v6716_v2  ;;  %v9651_v2 = vld [vmem:[#allocation20_spill] sm:$0xff] }
  0xd3   : > { %4982 = vmatpush1.bf16.msra.mxu1 %v6720_v4  ;;  %4960 = vmatprep.subr.bf16.mxu0 %v9645_v5  ;;  %v9652_v4 = vld [vmem:[#allocation21_spill] sm:$0xff]  ;;  %v9653_v5 = vld [vmem:[#allocation22_spill] sm:$0xff] }
  0xd4   : > { %4984 = vmatprep.subr.bf16.mxu1 %v9646_v11  ;;  %v9654_v11 = vld [vmem:[#allocation23_spill] sm:$0xff] }
  0xd6   : > { %4962 = vmatpush1.bf16.msra.mxu0 %v9627_v33 }
  0xd7   : > { %4986 = vmatpush1.bf16.msra.mxu1 %v9647_v14  ;;  %4988 = vmatprep.subr.bf16.mxu0 %v9648_v24 }
  0xd8   : > { %5012 = vmatprep.subr.bf16.mxu1 %v9649_v41 }
  0xd9   : > { %4362 = vmatmul.mubr.msk.f32.vlgmr.msra.gmra.mrb[4].mxu0 %vm434_vm0, %v9650_v42 }
  0xda   : > { %4363 = vmatmul.mubr.msk.f32.vlgmr.msra.gmra.mrb[4].mxu1 %vm434_vm0, %v9650_v42  ;;  %4990 = vmatpush1.bf16.msra.mxu0 %v9651_v2  ;;  %v9655_v42 = vld [vmem:[#allocation30_spill] sm:$0xff] }
  0xdb   : > { %5014 = vmatpush1.bf16.msra.mxu1 %v9652_v4  ;;  %4992 = vmatprep.subr.bf16.mxu0 %v9653_v5 }
  0xdc   : > { %5016 = vmatprep.subr.bf16.mxu1 %v9654_v11  ;;  %1707 = vmatprep.mubr.f32.mxu0 %v9621_v10 }
  0xdd   : > { %1778 = vmatprep.mubr.f32.mxu1 %v9621_v10 }
  0xde   : > { %4994 = vmatpush1.bf16.msra.mxu0 %v9636_v59 }
  0xdf   : > { %5018 = vmatpush1.bf16.msra.mxu1 %v9637_v62  ;;  %4996 = vmatprep.subr.bf16.mxu0 %v9638_v21 }
  0xe0   : > { %5020 = vmatprep.subr.bf16.mxu1 %v9639_v28 }
  0xe2   : > { %4998 = vmatpush1.bf16.msra.mxu0 %v9640_v46 }
  0xe3   : > { %5022 = vmatpush1.bf16.msra.mxu1 %v9641_v50  ;;  %5000 = vmatprep.subr.bf16.mxu0 %v9655_v42  ;;  %v9656_v50 = vld [vmem:[#allocation19_spill] sm:$0xff] }
  0xe4   : > { %5024 = vmatprep.subr.bf16.mxu1 %v9643_v23  ;;  %v1640_v42 = vrot.slane %v9656_v50, 1 }
  0xe6   : > { %5002 = vmatpush1.bf16.msra.mxu0 %v6905_v15 }
  0xe7   : > { %5026 = vmatpush1.bf16.msra.mxu1 %v6909_v34  ;;  %5004 = vmatprep.subr.bf16.mxu0 %v6911_v48 }
  0xe8   : > { %5028 = vmatprep.subr.bf16.mxu1 %v6923_v30 }
  0xea   : > { %5006 = vmatpush1.bf16.msra.mxu0 %v6941_v58 }
  0xeb   : > { %5030 = vmatpush1.bf16.msra.mxu1 %v6945_v29  ;;  %5008 = vmatprep.subr.bf16.mxu0 %v6947_v32 }
  0xec   : > { %5032 = vmatprep.subr.bf16.mxu1 %v6956_v60 }
  0xee   : > { %5010 = vmatpush1.bf16.msra.mxu0 %v6965_v47 }
  0xef   : > { %5034 = vmatpush1.bf16.msra.mxu1 %v6969_v7  ;;  %5036 = vmatprep.subr.bf16.mxu0 %v6306_v3  ;;  %v9657_v3 = vld [vmem:[#allocation6_spill] sm:$0xff] }
  0xf0   : > { %5060 = vmatprep.subr.bf16.mxu1 %v6319_v8  ;;  %v9658_v8 = vld [vmem:[#allocation7_spill] sm:$0xff] }
  0xf1   : > { %4364 = vmatmul.mubr.msk.f32.vlgmr.msra.gmra.mrb[4].mxu0 %vm434_vm0, %v1640_v42 }
  0xf2   : > { %4365 = vmatmul.mubr.msk.f32.vlgmr.msra.gmra.mrb[4].mxu1 %vm434_vm0, %v1640_v42  ;;  %5038 = vmatpush1.bf16.msra.mxu0 %v6321_v9  ;;  %v9659_v9 = vld [vmem:[#allocation8_spill] sm:$0xff] }
  0xf3   : > { %5062 = vmatpush1.bf16.msra.mxu1 %v6333_v13  ;;  %5040 = vmatprep.subr.bf16.mxu0 %v6346_v17  ;;  %v9660_v13 = vld [vmem:[#allocation9_spill] sm:$0xff]  ;;  %v9661_v17 = vld [vmem:[#allocation10_spill] sm:$0xff] }
  0xf4   : > { %5064 = vmatprep.subr.bf16.mxu1 %v6348_v18  ;;  %1853 = vmatprep.mubr.f32.mxu0 %v9621_v10  ;;  %v9662_v18 = vld [vmem:[#allocation11_spill] sm:$0xff] }
  0xf5   : > { %1924 = vmatprep.mubr.f32.mxu1 %v9621_v10 }
  0xf6   : > { %5042 = vmatpush1.bf16.msra.mxu0 %v6360_v22  ;;  %v9663_v22 = vld [vmem:[#allocation12_spill] sm:$0xff] }
  0xf7   : > { %5066 = vmatpush1.bf16.msra.mxu1 %v6373_v26  ;;  %5044 = vmatprep.subr.bf16.mxu0 %v6375_v27  ;;  %v9664_v26 = vld [vmem:[#allocation13_spill] sm:$0xff]  ;;  %v9665_v27 = vld [vmem:[#allocation14_spill] sm:$0xff] }
  0xf8   : > { %5068 = vmatprep.subr.bf16.mxu1 %v6386_v31  ;;  %v9666_v31 = vld [vmem:[#allocation15_spill] sm:$0xff] }
  0xfa   : > { %5046 = vmatpush1.bf16.msra.mxu0 %v6398_v35  ;;  %v9667_v35 = vld [vmem:[#allocation29_spill] sm:$0xff] }
  0xfb   : > { %5070 = vmatpush1.bf16.msra.mxu1 %v6411_v39  ;;  %5048 = vmatprep.subr.bf16.mxu0 %v6413_v40  ;;  %v9668_v39 = vld [vmem:[#allocation30_spill] sm:$0xff] }
  0xfc   : > { %5072 = vmatprep.subr.bf16.mxu1 %v6425_v44 }
  0xfe   : > { %5050 = vmatpush1.bf16.msra.mxu0 %v6447_v51 }
  0xff   : > { %5074 = vmatpush1.bf16.msra.mxu1 %v6451_v52  ;;  %5052 = vmatprep.subr.bf16.mxu0 %v6453_v53  ;;  %v9669_v52 = vld [vmem:[#allocation5_spill] sm:$0xff] }
 0x100   : > { %5076 = vmatprep.subr.bf16.mxu1 %v6465_v57  ;;  %v2073_v53 = vrot.slane %v9669_v52, 1  ;;  %v4405_v52 = vld [vmem:[%s9445_s3 + $0x3d8] sm:$0xff] }
 0x102   : > { %5054 = vmatpush1.bf16.msra.mxu0 %v6486_v63 }
 0x103   : > { %5078 = vmatpush1.bf16.msra.mxu1 %v6490_v0  ;;  %5056 = vmatprep.subr.bf16.mxu0 %v6492_v1 }
 0x104   : > { %5080 = vmatprep.subr.bf16.mxu1 %v6504_v6 }
 0x106   : > { %5058 = vmatpush1.bf16.msra.mxu0 %v6522_v16 }
 0x107   : > { %5082 = vmatpush1.bf16.msra.mxu1 %v6526_v19  ;;  %5084 = vmatprep.subr.bf16.mxu0 %v6528_v20 }
 0x108   : > { %5108 = vmatprep.subr.bf16.mxu1 %v6545_v25 }
 0x109   : > { %4366 = vmatmul.mubr.msk.f32.vlgmr.msra.gmra.mrb[6].mxu0 %vm434_vm0, %v1640_v42 }
 0x10a   : > { %4367 = vmatmul.mubr.msk.f32.vlgmr.msra.gmra.mrb[6].mxu1 %vm434_vm0, %v1640_v42  ;;  %5086 = vmatpush1.bf16.msra.mxu0 %v6566_v36  ;;  %v4373_v36 = vld [vmem:[%s9445_s3 + $0x2d8] sm:$0xff]  ;;  %v4400_v42 = vld [vmem:[%s9445_s3 + $0x3b0] sm:$0xff] }
 0x10b   : > { %5110 = vmatpush1.bf16.msra.mxu1 %v6570_v37  ;;  %5088 = vmatprep.subr.bf16.mxu0 %v6572_v38  ;;  %v4376_v37 = vld [vmem:[%s9445_s3 + $0x2f0] sm:$0xff] }
 0x10c   : > { %5112 = vmatprep.subr.bf16.mxu1 %v6584_v45  ;;  %1995 = vmatprep.mubr.f32.mxu0 %v9621_v10  ;;  %v4372_v38 = vld [vmem:[%s9445_s3 + $0x2d0] sm:$0xff]  ;;  %v7279_v45 = vpack.c.bf16 %v4376_v37, %v4373_v36 }
 0x10d   : > { %2066 = vmatprep.mubr.f32.mxu1 %v9621_v10 }
 0x10e   : > { %5090 = vmatpush1.bf16.msra.mxu0 %v6606_v54  ;;  %v9506_v54 = vmov 0.0|0.0  }
 0x10f   : > { %5114 = vmatpush1.bf16.msra.mxu1 %v6610_v55  ;;  %5092 = vmatprep.subr.bf16.mxu0 %v6612_v56  ;;  %v4375_v55 = vld [vmem:[%s9445_s3 + $0x2e8] sm:$0xff]  ;;  %v4374_v56 = vld [vmem:[%s9445_s3 + $0x2e0] sm:$0xff] }
 0x110   : > { %5116 = vmatprep.subr.bf16.mxu1 %v6624_v61  ;;  %v4377_v61 = vld [vmem:[%s9445_s3 + $0x2f8] sm:$0xff] }
 0x112   : > { %5094 = vmatpush1.bf16.msra.mxu0 %v9657_v3 }
 0x113   : > { %5118 = vmatpush1.bf16.msra.mxu1 %v6648_v12  ;;  %5096 = vmatprep.subr.bf16.mxu0 %v9658_v8  ;;  %v7293_v12 = vpack.c.bf16 %v4377_v61, %v4374_v56  ;;  %v4411_v56 = vld [vmem:[%s9445_s3 + $0x408] sm:$0xff]  ;;  %v4410_v61 = vld [vmem:[%s9445_s3 + $0x400] sm:$0xff] }
 0x114   : > { %5120 = vmatprep.subr.bf16.mxu1 %v9659_v9 }
 0x116   : > { %5098 = vmatpush1.bf16.msra.mxu0 %v9660_v13  ;;  %v4396_v13 = vld [vmem:[%s9445_s3 + $0x390] sm:$0xff] }
 0x117   : > { %5122 = vmatpush1.bf16.msra.mxu1 %v9661_v17  ;;  %5100 = vmatprep.subr.bf16.mxu0 %v6686_v43  ;;  %v4399_v17 = vld [vmem:[%s9445_s3 + $0x3a8] sm:$0xff] }
 0x118   : > { %5124 = vmatprep.subr.bf16.mxu1 %v6698_v49  ;;  %v4381_v49 = vld [vmem:[%s9445_s3 + $0x318] sm:$0xff] }
 0x11a   : > { %5102 = vmatpush1.bf16.msra.mxu0 %v9662_v18  ;;  %v4398_v18 = vld [vmem:[%s9445_s3 + $0x3a0] sm:$0xff] }
 0x11b   : > { %5126 = vmatpush1.bf16.msra.mxu1 %v9663_v22  ;;  %5104 = vmatprep.subr.bf16.mxu0 %v9664_v26  ;;  %v4401_v22 = vld [vmem:[%s9445_s3 + $0x3b8] sm:$0xff]  ;;  %v4403_v26 = vld [vmem:[%s9445_s3 + $0x3c8] sm:$0xff] }
 0x11c   : > { %5128 = vmatprep.subr.bf16.mxu1 %v9665_v27  ;;  %v4406_v27 = vld [vmem:[%s9445_s3 + $0x3e0] sm:$0xff] }
 0x11e   : > { %5106 = vmatpush1.bf16.msra.mxu0 %v9627_v33 }
 0x11f   : > { %5130 = vmatpush1.bf16.msra.mxu1 %v9647_v14  ;;  %5132 = vmatprep.subr.bf16.mxu0 %v9648_v24  ;;  %v4379_v14 = vld [vmem:[%s9445_s3 + $0x308] sm:$0xff]  ;;  %v4382_v24 = vld [vmem:[%s9445_s3 + $0x320] sm:$0xff] }
 0x120   : > { %5156 = vmatprep.subr.bf16.mxu1 %v9649_v41  ;;  %v4378_v41 = vld [vmem:[%s9445_s3 + $0x300] sm:$0xff]  ;;  %v7305_v43 = vpack.c.bf16 %v4382_v24, %v4379_v14  ;;  %v4413_v14 = vld [vmem:[%s9445_s3 + $0x418] sm:$0xff]  ;;  %v4415_v24 = vld [vmem:[%s9445_s3 + $0x428] sm:$0xff] }
 0x121   : > { %4368 = vmatmul.mubr.msk.f32.vlgmr.msra.gmra.mrb[6].mxu0 %vm434_vm0, %v9666_v31 }
 0x122   : > { %4369 = vmatmul.mubr.msk.f32.vlgmr.msra.gmra.mrb[6].mxu1 %vm434_vm0, %v9666_v31  ;;  %5134 = vmatpush1.bf16.msra.mxu0 %v9651_v2  ;;  %v4380_v2 = vld [vmem:[%s9445_s3 + $0x310] sm:$0xff]  ;;  %v7411_v31 = vpack.c.bf16 %v4399_v17, %v4396_v13  ;;  %v4430_v13 = vld [vmem:[%s9445_s3 + $0x4a0] sm:$0xff] }
 0x123   : > { %5158 = vmatpush1.bf16.msra.mxu1 %v9652_v4  ;;  %5136 = vmatprep.subr.bf16.mxu0 %v9653_v5  ;;  %v4383_v4 = vld [vmem:[%s9445_s3 + $0x328] sm:$0xff]  ;;  %v7318_v5 = vpack.c.bf16 %v4381_v49, %v4378_v41  ;;  %v4418_v41 = vld [vmem:[%s9445_s3 + $0x440] sm:$0xff] }
 0x124   : > { %5160 = vmatprep.subr.bf16.mxu1 %v9654_v11  ;;  %2140 = vmatprep.mubr.f32.mxu0 %v9621_v10  ;;  %v7291_v11 = vpack.c.bf16 %v4375_v55, %v4372_v38  ;;  %v4408_v55 = vld [vmem:[%s9445_s3 + $0x3f0] sm:$0xff] }
 0x125   : > { %2211 = vmatprep.mubr.f32.mxu1 %v9621_v10  ;;  %v7467_v49 = vpack.c.bf16 %v4411_v56, %v4408_v55  ;;  %v4432_v56 = vld [vmem:[%s9445_s3 + $0x4b0] sm:$0xff]  ;;  %v2257_v10 = vlaneseq }
 0x126   : > { %5138 = vmatpush1.bf16.msra.mxu0 %v9636_v59  ;;  %v4393_v59 = vld [vmem:[%s9445_s3 + $0x378] sm:$0xff] }
 0x127   : > { %5162 = vmatpush1.bf16.msra.mxu1 %v9637_v62  ;;  %5140 = vmatprep.subr.bf16.mxu0 %v9638_v21  ;;  %v4390_v21 = vld [vmem:[%s9445_s3 + $0x360] sm:$0xff]  ;;  %v4392_v62 = vld [vmem:[%s9445_s3 + $0x370] sm:$0xff] }
 0x128   : > { %5164 = vmatprep.subr.bf16.mxu1 %v9639_v28  ;;  %v4395_v28 = vld [vmem:[%s9445_s3 + $0x388] sm:$0xff]  ;;  %v7383_v3 = vpack.c.bf16 %v4393_v59, %v4390_v21  ;;  %v4420_v59 = vld [vmem:[%s9445_s3 + $0x450] sm:$0xff] }
 0x129   : > { %v7387_v8 = vpack.c.bf16 %v4395_v28, %v4392_v62  ;;  %v4423_v62 = vld [vmem:[%s9445_s3 + $0x468] sm:$0xff]  ;;  %v4422_v28 = vld [vmem:[%s9445_s3 + $0x460] sm:$0xff] }
 0x12a   : > { %5142 = vmatpush1.bf16.msra.mxu0 %v9640_v46  ;;  %v4397_v46 = vld [vmem:[%s9445_s3 + $0x398] sm:$0xff]  ;;  %v7523_v17 = vpack.c.bf16 %v4423_v62, %v4420_v59  ;;  %v4440_v59 = vld [vmem:[%s9445_s3 + $0x4f0] sm:$0xff] }
 0x12b   : > { %5166 = vmatpush1.bf16.msra.mxu1 %v9667_v35  ;;  %5144 = vmatprep.subr.bf16.mxu0 %v9668_v39  ;;  %v7389_v9 = vpack.c.bf16 %v4400_v42, %v4397_v46  ;;  %v7415_v35 = vpack.c.bf16 %v4401_v22, %v4398_v18  ;;  %v7417_v39 = vpack.c.bf16 %v4406_v27, %v4403_v26  ;;  %v4425_v46 = vld [vmem:[%s9445_s3 + $0x478] sm:$0xff]  ;;  %v4427_v42 = vld [vmem:[%s9445_s3 + $0x488] sm:$0xff]  ;;  %v4426_v26 = vld [vmem:[%s9445_s3 + $0x480] sm:$0xff] }
 0x12c   : > { %5168 = vmatprep.subr.bf16.mxu1 %v9643_v23  ;;  %v4385_v23 = vld [vmem:[%s9445_s3 + $0x338] sm:$0xff]  ;;  %v7527_v18 = vpack.c.bf16 %v4425_v46, %v4422_v28  ;;  %v7529_v22 = vpack.c.bf16 %v4430_v13, %v4427_v42  ;;  %v4443_v28 = vld [vmem:[%s9445_s3 + $0x508] sm:$0xff]  ;;  %v4448_v13 = vld [vmem:[%s9445_s3 + $0x530] sm:$0xff] }
 0x12d   : > { %v4429_v27 = vld [vmem:[%s9445_s3 + $0x498] sm:$0xff]  ;;  %v7606_v46 = vpack.c.bf16 %v4443_v28, %v4440_v59  ;;  %v4455_v59 = vld [vmem:[%s9445_s3 + $0x568] sm:$0xff] }
 0x12e   : > { %5146 = vmatpush1.bf16.msra.mxu0 %v6905_v15  ;;  %v4387_v15 = vld [vmem:[%s9445_s3 + $0x348] sm:$0xff]  ;;  %v4445_v42 = vld [vmem:[%s9445_s3 + $0x518] sm:$0xff] }
 0x12f   : > { %5170 = vmatpush1.bf16.msra.mxu1 %v6909_v34  ;;  %5148 = vmatprep.subr.bf16.mxu0 %v6911_v48  ;;  %v4388_v48 = vld [vmem:[%s9445_s3 + $0x350] sm:$0xff]  ;;  %9671 = vst [vmem:[#allocation25_spill] sm:$0xff] %v7606_v46 }
 0x130   : > { %5172 = vmatprep.subr.bf16.mxu1 %v6923_v30  ;;  %v7330_v34 = vpack.c.bf16 %v4388_v48, %v4385_v23  ;;  %v4386_v30 = vld [vmem:[%s9445_s3 + $0x340] sm:$0xff]  ;;  %v4417_v48 = vld [vmem:[%s9445_s3 + $0x438] sm:$0xff] }
 0x131   : > { %v4414_v23 = vld [vmem:[%s9445_s3 + $0x420] sm:$0xff] }
 0x132   : > { %5150 = vmatpush1.bf16.msra.mxu0 %v6941_v58  ;;  %v4389_v58 = vld [vmem:[%s9445_s3 + $0x358] sm:$0xff] }
 0x133   : > { %5174 = vmatpush1.bf16.msra.mxu1 %v6945_v29  ;;  %5152 = vmatprep.subr.bf16.mxu0 %v6947_v32  ;;  %v7328_v32 = vpack.c.bf16 %v4383_v4, %v4380_v2  ;;  %v4384_v29 = vld [vmem:[%s9445_s3 + $0x330] sm:$0xff]  ;;  %v7357_v50 = vpack.c.bf16 %v4389_v58, %v4386_v30  ;;  %v7471_v2 = vpack.c.bf16 %v4413_v14, %v4410_v61  ;;  %v4421_v30 = vld [vmem:[%s9445_s3 + $0x458] sm:$0xff]  ;;  %v4435_v61 = vld [vmem:[%s9445_s3 + $0x4c8] sm:$0xff] }
 0x134   : > { %v7244_v40 = vpop.f32.mrb[0].mxu0  ;;  %5176 = vmatprep.subr.bf16.mxu1 %v6956_v60  ;;  %v4391_v60 = vld [vmem:[%s9445_s3 + $0x368] sm:$0xff]  ;;  %v7473_v4 = vpack.c.bf16 %v4418_v41, %v4415_v24  ;;  %v4424_v58 = vld [vmem:[%s9445_s3 + $0x470] sm:$0xff]  ;;  %v4434_v14 = vld [vmem:[%s9445_s3 + $0x4c0] sm:$0xff]  ;;  %v7573_v41 = vpack.c.bf16 %v4435_v61, %v4432_v56 }
 0x135   : > { %v914_v44 = vpop.f32.mrb[0].mxu1  ;;  %v7247_v51 = vpop.f32.mrb[1].mxu0  ;;  %v7501_v21 = vpack.c.bf16 %v4424_v58, %v4421_v30  ;;  %v4437_v24 = vld [vmem:[%s9445_s3 + $0x4d8] sm:$0xff]  ;;  %v4438_v30 = vld [vmem:[%s9445_s3 + $0x4e0] sm:$0xff]  ;;  %v4451_v61 = vld [vmem:[%s9445_s3 + $0x548] sm:$0xff] }
 0x136   : > { %v7250_v57 = vpop.f32.mrb[1].mxu1  ;;  %5154 = vmatpush1.bf16.msra.mxu0 %v6965_v47  ;;  %v4394_v47 = vld [vmem:[%s9445_s3 + $0x380] sm:$0xff]  ;;  %v4441_v58 = vld [vmem:[%s9445_s3 + $0x4f8] sm:$0xff] }
 0x137   : > { %5178 = vmatpush1.bf16.msra.mxu1 %v6969_v7  ;;  %5180 = vmatprep.subr.bf16.mxu0 %v7279_v45  ;;  %v7353_v7 = vpack.c.bf16 %v4387_v15, %v4384_v29  ;;  %v7359_v33 = vpack.c.bf16 %v4394_v47, %v4391_v60  ;;  %v4416_v29 = vld [vmem:[%s9445_s3 + $0x430] sm:$0xff]  ;;  %v4419_v15 = vld [vmem:[%s9445_s3 + $0x448] sm:$0xff]  ;;  %v7495_v60 = vpack.c.bf16 %v4417_v48, %v4414_v23 }
 0x138   : > { %5239 = vmatprep.subr.bf16.mxu1 %v9506_v54  ;;  %v7499_v47 = vpack.c.bf16 %v4419_v15, %v4416_v29  ;;  %v7577_v23 = vpack.c.bf16 %v4437_v24, %v4434_v14  ;;  %v4439_v48 = vld [vmem:[%s9445_s3 + $0x4e8] sm:$0xff]  ;;  %v4442_v29 = vld [vmem:[%s9445_s3 + $0x500] sm:$0xff]  ;;  %v7600_v62 = vpack.c.bf16 %v4441_v58, %v4438_v30  ;;  %v4452_v30 = vld [vmem:[%s9445_s3 + $0x550] sm:$0xff] }
 0x139   : > { %4370 = vmatmul.mubr.msk.f32.vlgmr.msra.gmra.mrb[6].mxu0 %vm434_vm0, %v2073_v53  ;;  %v7589_v15 = vpack.c.bf16 %v4442_v29, %v4439_v48  ;;  %v4454_v14 = vld [vmem:[%s9445_s3 + $0x560] sm:$0xff]  ;;  %v4453_v29 = vld [vmem:[%s9445_s3 + $0x558] sm:$0xff]  ;;  %v7662_v28 = vpack.c.bf16 %v4455_v59, %v4452_v30 }
 0x13a   : > { %4371 = vmatmul.mubr.msk.f32.vlgmr.msra.gmra.mrb[6].mxu1 %vm434_vm0, %v2073_v53  ;;  %5182 = vmatpush1.bf16.msra.mxu0 %v7291_v11  ;;  %v4404_v53 = vld [vmem:[%s9445_s3 + $0x3d0] sm:$0xff]  ;;  %9670 = vst [vmem:[#allocation24_spill] sm:$0xff] %v7600_v62  ;;  %v7644_v24 = vpack.c.bf16 %v4454_v14, %v4451_v61  ;;  %v4450_v48 = vld [vmem:[%s9445_s3 + $0x540] sm:$0xff] }
 0x13b   : > { %5241 = vmatpush1.bf16.msra.mxu1 %v7293_v12  ;;  %5184 = vmatprep.subr.bf16.mxu0 %v7305_v43  ;;  %v7656_v58 = vpack.c.bf16 %v4453_v29, %v4450_v48  ;;  %9677 = vst [vmem:[#allocation17_spill] sm:$0xff] %v7662_v28  ;;  %v4461_v48 = vld [vmem:[%s9445_s3 + $0x598] sm:$0xff] }
 0x13c   : > { %5242 = vmatprep.subr.bf16.mxu1 %v9506_v54  ;;  %9675 = vst [vmem:[#allocation31_spill] sm:$0xff] %v7644_v24 }
 0x13d   : > { %9676 = vst [vmem:[#allocation16_spill] sm:$0xff] %v7656_v58 }
 0x13e   : > { %5186 = vmatpush1.bf16.msra.mxu0 %v7318_v5 }
 0x13f   : > { %5244 = vmatpush1.bf16.msra.mxu1 %v7328_v32  ;;  %5188 = vmatprep.subr.bf16.mxu0 %v7330_v34 }
 0x140   : > { %5245 = vmatprep.subr.bf16.mxu1 %v9506_v54 }
 0x142   : > { %5190 = vmatpush1.bf16.msra.mxu0 %v7353_v7 }
 0x143   : > { %5247 = vmatpush1.bf16.msra.mxu1 %v7357_v50  ;;  %5192 = vmatprep.subr.bf16.mxu0 %v7359_v33 }
 0x144   : > { %5248 = vmatprep.subr.bf16.mxu1 %v9506_v54 }
 0x146   : > { %5194 = vmatpush1.bf16.msra.mxu0 %v7383_v3 }
 0x147   : > { %5250 = vmatpush1.bf16.msra.mxu1 %v7387_v8  ;;  %5196 = vmatprep.subr.bf16.mxu0 %v7389_v9 }
 0x148   : > { %5251 = vmatprep.subr.bf16.mxu1 %v9506_v54 }
 0x14a   : > { %5198 = vmatpush1.bf16.msra.mxu0 %v7411_v31 }
 0x14b   : > { %5253 = vmatpush1.bf16.msra.mxu1 %v7415_v35  ;;  %5200 = vmatprep.subr.bf16.mxu0 %v7417_v39 }
 0x14c   : > { %5254 = vmatprep.subr.bf16.mxu1 %v9506_v54 }
 0x17c   : > { %v7256_v63 = vpop.f32.mrb[2].mxu0 }
 0x17d   : > { %v1347_v0 = vpop.f32.mrb[2].mxu1  ;;  %v7258_v1 = vpop.f32.mrb[3].mxu0 }
 0x17e   : > { %v7260_v6 = vpop.f32.mrb[3].mxu1 }
 0x1c4   : > { %v7262_v16 = vpop.f32.mrb[4].mxu0 }
 0x1c5   : > { %v1780_v19 = vpop.f32.mrb[4].mxu1  ;;  %v7264_v20 = vpop.f32.mrb[5].mxu0 }
 0x1c6   : > { %2276 = vrot.lane.b32.xlu0 %v1780_v19, %s6194_s22  ;;  %v1782_v25 = vpop.f32.mrb[5].mxu1  ;;  %v4409_v19 = vld [vmem:[%s9445_s3 + $0x3f8] sm:$0xff] }
 0x1ca   : > { %2278 = vrot.lane.b32.xlu0 %v1782_v25, %s6194_s22  ;;  %v4412_v25 = vld [vmem:[%s9445_s3 + $0x410] sm:$0xff] }
 0x1cb   : > { %v7445_v38 = vpack.c.bf16 %v4412_v25, %v4409_v19  ;;  %v7551_v19 = vpack.c.bf16 %v4429_v27, %v4426_v26  ;;  %v7616_v26 = vpack.c.bf16 %v4448_v13, %v4445_v42  ;;  %v4444_v27 = vld [vmem:[%s9445_s3 + $0x510] sm:$0xff]  ;;  %v4457_v42 = vld [vmem:[%s9445_s3 + $0x578] sm:$0xff] }
 0x1cc   : > { %v4460_v13 = vld [vmem:[%s9445_s3 + $0x590] sm:$0xff] }
 0x1cd   : > { %9672 = vst [vmem:[#allocation26_spill] sm:$0xff] %v7616_v26 }
 0x1ce   : > { %2274 = vrot.lane.b32.xlu0 %v7264_v20, %s6194_s22 }
 0x1d2   : > { %2228 = vrot.lane.b32.xlu0 %v914_v44, %s6194_s22  ;;  %v4402_v44 = vld [vmem:[%s9445_s3 + $0x3c0] sm:$0xff] }
 0x1d3   : > { %v7439_v36 = vpack.c.bf16 %v4405_v52, %v4402_v44  ;;  %v4428_v44 = vld [vmem:[%s9445_s3 + $0x490] sm:$0xff]  ;;  %v4431_v52 = vld [vmem:[%s9445_s3 + $0x4a8] sm:$0xff] }
 0x1d4   : > { %v7555_v25 = vpack.c.bf16 %v4431_v52, %v4428_v44  ;;  %v4447_v44 = vld [vmem:[%s9445_s3 + $0x528] sm:$0xff]  ;;  %v4446_v52 = vld [vmem:[%s9445_s3 + $0x520] sm:$0xff] }
 0x1d5   : > { %5202 = vmatpush1.bf16.msra.mxu0 %v7439_v36 }
 0x1d6   : > { %2244 = vrot.lane.b32.xlu0 %v1347_v0, %s6194_s22  ;;  %v4407_v0 = vld [vmem:[%s9445_s3 + $0x3e8] sm:$0xff]  ;;  %5204 = vmatprep.subr.bf16.mxu0 %v7445_v38 }
 0x1d7   : > { %v7443_v37 = vpack.c.bf16 %v4407_v0, %v4404_v53  ;;  %v4433_v53 = vld [vmem:[%s9445_s3 + $0x4b8] sm:$0xff]  ;;  %v4436_v0 = vld [vmem:[%s9445_s3 + $0x4d0] sm:$0xff] }
 0x1d8   : > { %v7557_v55 = vpack.c.bf16 %v4436_v0, %v4433_v53  ;;  %v7628_v53 = vpack.c.bf16 %v4447_v44, %v4444_v27  ;;  %v4449_v0 = vld [vmem:[%s9445_s3 + $0x538] sm:$0xff]  ;;  %v7672_v27 = vpack.c.bf16 %v4460_v13, %v4457_v42  ;;  %v4456_v44 = vld [vmem:[%s9445_s3 + $0x570] sm:$0xff]  ;;  %v2308_v13 = vld [vmem:[%s9445_s3 + $0x8] sm:$0xff] }
 0x1d9   : > { %5256 = vmatpush1.bf16.msra.mxu1 %v7443_v37  ;;  %5206 = vmatpush1.bf16.msra.mxu0 %v7467_v49  ;;  %v7634_v56 = vpack.c.bf16 %v4449_v0, %v4446_v52  ;;  %v4459_v52 = vld [vmem:[%s9445_s3 + $0x588] sm:$0xff]  ;;  %v4458_v0 = vld [vmem:[%s9445_s3 + $0x580] sm:$0xff] }
 0x1da   : > { %2226 = vrot.lane.b32.xlu0 %v7247_v51, %s6194_s22  ;;  %5257 = vmatprep.subr.bf16.mxu1 %v9506_v54  ;;  %9673 = vst [vmem:[#allocation27_spill] sm:$0xff] %v7628_v53  ;;  %9678 = vst [vmem:[#allocation18_spill] sm:$0xff] %v7672_v27  ;;  %v7684_v14 = vpack.c.bf16 %v4459_v52, %v4456_v44  ;;  %v7690_v59 = vpack.c.bf16 %v4461_v48, %v4458_v0  ;;  %v2311_v44 = vld [vmem:[%s9445_s3 + $0x20] sm:$0xff] }
 0x1db   : > { %5208 = vmatprep.subr.bf16.mxu0 %v7473_v4  ;;  %9674 = vst [vmem:[#allocation28_spill] sm:$0xff] %v7634_v56  ;;  %v7701_v52 = vpack.c.bf16 %v2311_v44, %v2308_v13 }
 0x1dc   : > { %9679 = vst [vmem:[#allocation32_spill] sm:$0xff] %v7684_v14  ;;  %9680 = vst [vmem:[#allocation20_spill] sm:$0xff] %v7690_v59 }
 0x1dd   : > { %5259 = vmatpush1.bf16.msra.mxu1 %v7471_v2  ;;  %5210 = vmatpush1.bf16.msra.mxu0 %v7495_v60  ;;  %9681 = vst [vmem:[#allocation21_spill] sm:$0xff] %v7701_v52 }
 0x1de   : > { %5260 = vmatprep.subr.bf16.mxu1 %v9506_v54  ;;  %5212 = vmatprep.subr.bf16.mxu0 %v7501_v21 }
 0x1e1   : > { %5262 = vmatpush1.bf16.msra.mxu1 %v7499_v47  ;;  %5214 = vmatpush1.bf16.msra.mxu0 %v7523_v17 }
 0x1e2   : > { %5263 = vmatprep.subr.bf16.mxu1 %v9506_v54  ;;  %5216 = vmatprep.subr.bf16.mxu0 %v7529_v22 }
 0x1e5   : > { %5265 = vmatpush1.bf16.msra.mxu1 %v7527_v18  ;;  %5218 = vmatpush1.bf16.msra.mxu0 %v7551_v19 }
 0x1e6   : > { %5266 = vmatprep.subr.bf16.mxu1 %v9506_v54  ;;  %5220 = vmatprep.subr.bf16.mxu0 %v7557_v55 }
 0x1e9   : > { %5268 = vmatpush1.bf16.msra.mxu1 %v7555_v25  ;;  %5222 = vmatpush1.bf16.msra.mxu0 %v7573_v41 }
 0x1ea   : > { %5269 = vmatprep.subr.bf16.mxu1 %v9506_v54  ;;  %5224 = vmatprep.subr.bf16.mxu0 %v7589_v15 }
 0x1ed   : > { %5271 = vmatpush1.bf16.msra.mxu1 %v7577_v23  ;;  %5226 = vmatpush1.bf16.msra.mxu0 %v7600_v62 }
 0x1ee   : > { %5272 = vmatprep.subr.bf16.mxu1 %v9506_v54  ;;  %5228 = vmatprep.subr.bf16.mxu0 %v7616_v26 }
 0x1f1   : > { %5274 = vmatpush1.bf16.msra.mxu1 %v7606_v46  ;;  %5230 = vmatpush1.bf16.msra.mxu0 %v7628_v53 }
 0x1f2   : > { %5275 = vmatprep.subr.bf16.mxu1 %v9506_v54  ;;  %5232 = vmatprep.subr.bf16.mxu0 %v7644_v24 }
 0x1f5   : > { %5277 = vmatpush1.bf16.msra.mxu1 %v7634_v56  ;;  %5234 = vmatpush1.bf16.msra.mxu0 %v7656_v58 }
 0x1f6   : > { %5278 = vmatprep.subr.bf16.mxu1 %v9506_v54  ;;  %5236 = vmatprep.subr.bf16.mxu0 %v7672_v27  ;;  %v2222_v27 = vld [vmem:[%s9444_s2] sm:$0x3] }
 0x1f9   : > { %5280 = vmatpush1.bf16.msra.mxu1 %v7662_v28  ;;  %5238 = vmatpush1.bf16.msra.mxu0 %v7684_v14 }
 0x1fa   : > { %5281 = vmatprep.subr.bf16.mxu1 %v9506_v54  ;;  %5285 = vmatprep.subr.bf16.mxu0 %v7701_v52  ;;  %v7720_v52 = vshrl.u32 %v2257_v10, 7 }
 0x1fc   : > { %9682 = vst [vmem:[#allocation22_spill] sm:$0xff] %v7720_v52  ;;  %v9521_v10 = vsub.s32 0, %v7720_v52 }
 0x1fd   : > { %5283 = vmatpush1.bf16.msra.mxu1 %v7690_v59  ;;  %v9522_v59 = vsub.s32 1, %v7720_v52  ;;  %v2343_v52 = vld [vmem:[%s9445_s3 + $0x120] sm:$0xff] }
 0x1fe   : > { %5344 = vmatprep.subr.bf16.mxu1 %v9506_v54 }
 0x20c   : > { %v2142_v61 = vpop.f32.mrb[6].mxu0 }
 0x20d   : > { %v2213_v29 = vpop.f32.mrb[6].mxu1  ;;  %v2144_v30 = vpop.f32.mrb[7].mxu0 }
 0x20e   : > { %2291 = vrot.lane.b32.xlu1 %v2213_v29, %s6194_s22  ;;  %v2215_v42 = vpop.f32.mrb[7].mxu1 }
 0x212   : > { %2293 = vrot.lane.b32.xlu1 %v2215_v42, %s6194_s22 }
 0x216   : > { %2289 = vrot.lane.b32.xlu1 %v2144_v30, %s6194_s22 }
 0x21a   : > { %2230 = vrot.lane.b32.xlu1 %v7250_v57, %s6194_s22  ;;  %v2264_v57 = vrot.slane %v2222_v27, %v9522_v59 }
 0x21e   : > { %2246 = vrot.lane.b32.xlu1 %v7260_v6, %s6194_s22 }
 0x222   : > { %2242 = vrot.lane.b32.xlu1 %v7258_v1, %s6194_s22  ;;  %s4176_s22 = scalar_lea.sflag [#allocation3], %s323_s27 }
 0x238   : > { %v2277_v0 = vpop.permute.xlu0 %2276 }
 0x23c   : > { %v2279_v48 = vpop.permute.xlu0 %2278 }
 0x23d   : > { %v2281_v14 = vsel %vm2232_vm1, %v2277_v0, %v2279_v48 }
 0x240   : > { %v2275_v29 = vpop.permute.xlu0 %2274 }
 0x241   : > { %v2280_v56 = vsel %vm2232_vm1, %v2275_v29, %v2277_v0  ;;  %v2313_v29 = vld [vmem:[%s9445_s3 + $0x30] sm:$0xff] }
 0x242   : > { %v2284_v46 = vmax.f32 %v7262_v16, %v2280_v56  ;;  %v2309_v16 = vld [vmem:[%s9445_s3 + $0x10] sm:$0xff]  ;;  %v2314_v56 = vld [vmem:[%s9445_s3 + $0x38] sm:$0xff] }
 0x244   : > { %v2229_v13 = vpop.permute.xlu0 %2228 }
 0x248   : > { %v7713_v44 = vpop.permute.xlu0 %2244 }
 0x24c   : > { %v2227_v54 = vpop.permute.xlu0 %2226 }
 0x24d   : > { %v7716_v42 = vsel %vm2232_vm1, %v2227_v54, %v2229_v13  ;;  %v2285_v54 = vmax.f32 %v7264_v20, %v2281_v14 }
 0x24e   : > { %v9685_v59 = vmax.f32 %v7244_v40, %v7716_v42  ;;  %v2330_v40 = vld [vmem:[%s9445_s3 + $0xb8] sm:$0xff]  ;;  %v2335_v42 = vld [vmem:[%s9445_s3 + $0xe0] sm:$0xff] }
 0x280   : > { %v2292_v6 = vpop.permute.xlu1 %2291 }
 0x284   : > { %v2294_v28 = vpop.permute.xlu1 %2293 }
 0x285   : > { %v2296_v58 = vsel %vm2232_vm1, %v2292_v6, %v2294_v28  ;;  %v7737_v28 = vrot.slane %v2222_v27, %v9521_v10 }
 0x286   : > { %v2300_v24 = vmax.f32 %v2144_v30, %v2296_v58  ;;  %v2307_v58 = vld [vmem:[%s9445_s3] sm:$0xff] }
 0x288   : > { %v2302_v53 = vmax.f32 %v2285_v54, %v2300_v24  ;;  %v2290_v26 = vpop.permute.xlu1 %2289 }
 0x289   : > { %v2295_v48 = vsel %vm2232_vm1, %v2290_v26, %v2292_v6  ;;  %v2310_v26 = vld [vmem:[%s9445_s3 + $0x18] sm:$0xff] }
 0x28a   : > { %v2304_v62 = vadd.f32 %v2302_v53, %v2264_v57  ;;  %v2299_v20 = vmax.f32 %v2142_v61, %v2295_v48  ;;  %v2312_v53 = vld [vmem:[%s9445_s3 + $0x28] sm:$0xff]  ;;  %v7765_v61 = vpack.c.bf16 %v2310_v26, %v2307_v58  ;;  %v2318_v58 = vld [vmem:[%s9445_s3 + $0x58] sm:$0xff]  ;;  %v2323_v26 = vld [vmem:[%s9445_s3 + $0x80] sm:$0xff] }
 0x28b   : > { %v7767_v0 = vpack.c.bf16 %v2312_v53, %v2309_v16 }
 0x28c   : > { %v7742_v14 = vmax.f32 %v2304_v62, 0.0  ;;  %v2301_v30 = vmax.f32 %v2284_v46, %v2299_v20  ;;  %v2231_v24 = vpop.permute.xlu1 %2230  ;;  %v2317_v62 = vld [vmem:[%s9445_s3 + $0x50] sm:$0xff]  ;;  %v2316_v20 = vld [vmem:[%s9445_s3 + $0x48] sm:$0xff] }
 0x28d   : > { %v2234_v27 = vsel %vm2232_vm1, %v2229_v13, %v2231_v24  ;;  %v7774_v48 = vpack.c.bf16 %v2317_v62, %v2314_v56  ;;  %v2315_v13 = vld [vmem:[%s9445_s3 + $0x40] sm:$0xff]  ;;  %v2320_v24 = vld [vmem:[%s9445_s3 + $0x68] sm:$0xff]  ;;  %v7799_v56 = vpack.c.bf16 %v2316_v20, %v2313_v29  ;;  %v2321_v29 = vld [vmem:[%s9445_s3 + $0x70] sm:$0xff] }
 0x28e   : > { %v2303_v46 = vadd.f32 %v2301_v30, %v7737_v28  ;;  %4462 = vmatprep.mubr.msk.f32.mxu0 %vm2488_vm2, %v7742_v14  ;;  %4463 = vmatprep.mubr.msk.f32.mxu1 %vm2488_vm2, %v7742_v14  ;;  %v2238_v16 = vmax.f32 %v7247_v51, %v2234_v27  ;;  %v7801_v62 = vpack.c.bf16 %v2318_v58, %v2315_v13  ;;  %v2324_v20 = vld [vmem:[%s9445_s3 + $0x88] sm:$0xff]  ;;  %v2326_v58 = vld [vmem:[%s9445_s3 + $0x98] sm:$0xff] }
 0x28f   : > { %v7808_v27 = vpack.c.bf16 %v2323_v26, %v2320_v24  ;;  %v2329_v24 = vld [vmem:[%s9445_s3 + $0xb0] sm:$0xff]  ;;  %v7832_v10 = vpack.c.bf16 %v2324_v20, %v2321_v29  ;;  %v2331_v20 = vld [vmem:[%s9445_s3 + $0xc0] sm:$0xff] }
 0x290   : > { %v7772_v6 = vmax.f32 %v2303_v46, 0.0  ;;  %v2247_v54 = vpop.permute.xlu1 %2246  ;;  %v2319_v46 = vld [vmem:[%s9445_s3 + $0x60] sm:$0xff] }
 0x291   : > { %v2249_v30 = vsel %vm2232_vm1, %v7713_v44, %v2247_v54 }
 0x292   : > { %9683 = vst [vmem:[#allocation23_spill] sm:$0xff] %v7772_v6  ;;  %v2253_v53 = vmax.f32 %v7258_v1, %v2249_v30  ;;  %2557 = vmatmul.mubr.f32.vlgmr.msra.gmra.mrb[8].mxu0 %v7772_v6  ;;  %2628 = vmatmul.mubr.f32.vlgmr.msra.gmra.mrb[8].mxu1 %v7772_v6  ;;  %v9684_v1 = vmov 0.0|0.0   ;;  %v2322_v30 = vld [vmem:[%s9445_s3 + $0x78] sm:$0xff] }
 0x293   : > { %5287 = vmatpush1.bf16.msra.mxu0 %v7765_v61  ;;  %5346 = vmatpush1.bf16.msra.mxu1 %v7767_v0 }
 0x294   : > { %v2255_v54 = vmax.f32 %v2238_v16, %v2253_v53  ;;  %v2243_v51 = vpop.permute.xlu1 %2242  ;;  %5289 = vmatprep.subr.bf16.mxu0 %v7774_v48  ;;  %5347 = vmatprep.subr.bf16.mxu1 %v9684_v1  ;;  %v7830_v53 = vpack.c.bf16 %v2322_v30, %v2319_v46  ;;  %v2328_v46 = vld [vmem:[%s9445_s3 + $0xa8] sm:$0xff] }
 0x295   : > { %v2248_v13 = vsel %vm2232_vm1, %v2243_v51, %v7713_v44  ;;  %v2325_v44 = vld [vmem:[%s9445_s3 + $0x90] sm:$0xff] }
 0x296   : > { %v2268_v26 = vadd.f32 %v2264_v57, %v2255_v54  ;;  %v2252_v16 = vmax.f32 %v7256_v63, %v2248_v13  ;;  %v7846_v63 = vpack.c.bf16 %v2329_v24, %v2326_v58  ;;  %v2327_v54 = vld [vmem:[%s9445_s3 + $0xa0] sm:$0xff]  ;;  %v7869_v30 = vpack.c.bf16 %v2328_v46, %v2325_v44  ;;  %v2334_v58 = vld [vmem:[%s9445_s3 + $0xd8] sm:$0xff]  ;;  %v2333_v24 = vld [vmem:[%s9445_s3 + $0xd0] sm:$0xff] }
 0x297   : > { %5291 = vmatpush1.bf16.msra.mxu0 %v7799_v56  ;;  %5349 = vmatpush1.bf16.msra.mxu1 %v7801_v62  ;;  %v7871_v29 = vpack.c.bf16 %v2330_v40, %v2327_v54  ;;  %v2341_v44 = vld [vmem:[%s9445_s3 + $0x110] sm:$0xff]  ;;  %v7897_v46 = vpack.c.bf16 %v2334_v58, %v2331_v20  ;;  %v2339_v20 = vld [vmem:[%s9445_s3 + $0x100] sm:$0xff]  ;;  %v2342_v58 = vld [vmem:[%s9445_s3 + $0x118] sm:$0xff] }
 0x298   : > { %v7837_v51 = vmax.f32 %v2268_v26, 0.0  ;;  %v7842_v57 = vmax.f32 %v9685_v59, %v2252_v16  ;;  %5293 = vmatprep.subr.bf16.mxu0 %v7808_v27  ;;  %5350 = vmatprep.subr.bf16.mxu1 %v9684_v1  ;;  %v2332_v59 = vld [vmem:[%s9445_s3 + $0xc8] sm:$0xff]  ;;  %v2338_v16 = vld [vmem:[%s9445_s3 + $0xf8] sm:$0xff]  ;;  %v2337_v40 = vld [vmem:[%s9445_s3 + $0xf0] sm:$0xff] }
 0x299   : > { %v7878_v13 = vpack.c.bf16 %v2335_v42, %v2332_v59  ;;  %v2336_v26 = vld [vmem:[%s9445_s3 + $0xe8] sm:$0xff]  ;;  %9687 = vst [vmem:[#allocation6_spill] sm:$0xff] %v7897_v46  ;;  %v7906_v59 = vpack.c.bf16 %v2341_v44, %v2338_v16  ;;  %v7927_v44 = vpack.c.bf16 %v2342_v58, %v2339_v20  ;;  %v2350_v20 = vld [vmem:[%s9445_s3 + $0x158] sm:$0xff]  ;;  %v2353_v58 = vld [vmem:[%s9445_s3 + $0x170] sm:$0xff] }
 0x29a   : > { %4464 = vmatprep.mubr.msk.f32.mxu0 %vm2488_vm2, %v7837_v51  ;;  %4465 = vmatprep.mubr.msk.f32.mxu1 %vm2488_vm2, %v7837_v51  ;;  %v7899_v54 = vpack.c.bf16 %v2336_v26, %v2333_v24  ;;  %v2340_v42 = vld [vmem:[%s9445_s3 + $0x108] sm:$0xff]  ;;  %v2347_v26 = vld [vmem:[%s9445_s3 + $0x140] sm:$0xff] }
 0x29b   : > { %5295 = vmatpush1.bf16.msra.mxu0 %v7830_v53  ;;  %5352 = vmatpush1.bf16.msra.mxu1 %v7832_v10  ;;  %9686 = vst [vmem:[#allocation19_spill] sm:$0xff] %v7878_v13  ;;  %9689 = vst [vmem:[#allocation8_spill] sm:$0xff] %v7906_v59  ;;  %v2344_v24 = vld [vmem:[%s9445_s3 + $0x128] sm:$0xff]  ;;  %v7925_v16 = vpack.c.bf16 %v2340_v42, %v2337_v40  ;;  %v2345_v40 = vld [vmem:[%s9445_s3 + $0x130] sm:$0xff] }
 0x29c   : > { %5297 = vmatprep.subr.bf16.mxu0 %v7846_v63  ;;  %5353 = vmatprep.subr.bf16.mxu1 %v9684_v1  ;;  %9688 = vst [vmem:[#allocation7_spill] sm:$0xff] %v7899_v54  ;;  %9691 = vst [vmem:[#allocation10_spill] sm:$0xff] %v7927_v44  ;;  %v7934_v6 = vpack.c.bf16 %v2347_v26, %v2344_v24  ;;  %v2348_v42 = vld [vmem:[%s9445_s3 + $0x148] sm:$0xff] }
 0x29d   : > { %9690 = vst [vmem:[#allocation9_spill] sm:$0xff] %v7925_v16  ;;  %v7955_v26 = vpack.c.bf16 %v2348_v42, %v2345_v40  ;;  %v2356_v40 = vld [vmem:[%s9445_s3 + $0x188] sm:$0xff]  ;;  %v2359_v42 = vld [vmem:[%s9445_s3 + $0x1a0] sm:$0xff] }
 0x29e   : > { %9692 = vst [vmem:[#allocation11_spill] sm:$0xff] %v7934_v6 }
 0x29f   : > { %5299 = vmatpush1.bf16.msra.mxu0 %v7869_v30  ;;  %5355 = vmatpush1.bf16.msra.mxu1 %v7871_v29  ;;  %9694 = vst [vmem:[#allocation13_spill] sm:$0xff] %v7955_v26 }
 0x2a0   : > { %5301 = vmatprep.subr.bf16.mxu0 %v7878_v13  ;;  %5356 = vmatprep.subr.bf16.mxu1 %v9684_v1  ;;  %v4466_v13 = vld [vmem:[%s9445_s3 + $0x5a0] sm:$0xff] }
 0x2a3   : > { %5303 = vmatpush1.bf16.msra.mxu0 %v7897_v46  ;;  %5358 = vmatpush1.bf16.msra.mxu1 %v7899_v54  ;;  %v2346_v46 = vld [vmem:[%s9445_s3 + $0x138] sm:$0xff]  ;;  %v7962_v54 = vpack.c.bf16 %v2353_v58, %v2350_v20 }
 0x2a4   : > { %5305 = vmatprep.subr.bf16.mxu0 %v7906_v59  ;;  %5359 = vmatprep.subr.bf16.mxu1 %v9684_v1  ;;  %v7953_v24 = vpack.c.bf16 %v2346_v46, %v2343_v52  ;;  %v2349_v59 = vld [vmem:[%s9445_s3 + $0x150] sm:$0xff]  ;;  %v2351_v52 = vld [vmem:[%s9445_s3 + $0x160] sm:$0xff]  ;;  %v2354_v46 = vld [vmem:[%s9445_s3 + $0x178] sm:$0xff] }
 0x2a5   : > { %9695 = vst [vmem:[#allocation14_spill] sm:$0xff] %v7962_v54  ;;  %v7983_v58 = vpack.c.bf16 %v2354_v46, %v2351_v52  ;;  %v2362_v52 = vld [vmem:[%s9445_s3 + $0x1b8] sm:$0xff]  ;;  %v2365_v46 = vld [vmem:[%s9445_s3 + $0x1d0] sm:$0xff] }
 0x2a6   : > { %9693 = vst [vmem:[#allocation12_spill] sm:$0xff] %v7953_v24 }
 0x2a7   : > { %5307 = vmatpush1.bf16.msra.mxu0 %v7925_v16  ;;  %5361 = vmatpush1.bf16.msra.mxu1 %v7927_v44  ;;  %v2352_v16 = vld [vmem:[%s9445_s3 + $0x168] sm:$0xff]  ;;  %9697 = vst [vmem:[#allocation29_spill] sm:$0xff] %v7983_v58  ;;  %v7990_v44 = vpack.c.bf16 %v2359_v42, %v2356_v40 }
 0x2a8   : > { %5309 = vmatprep.subr.bf16.mxu0 %v7934_v6  ;;  %5362 = vmatprep.subr.bf16.mxu1 %v9684_v1  ;;  %v7981_v20 = vpack.c.bf16 %v2352_v16, %v2349_v59  ;;  %v2355_v6 = vld [vmem:[%s9445_s3 + $0x180] sm:$0xff]  ;;  %v2357_v59 = vld [vmem:[%s9445_s3 + $0x190] sm:$0xff]  ;;  %v2360_v16 = vld [vmem:[%s9445_s3 + $0x1a8] sm:$0xff] }
 0x2a9   : > { %9698 = vst [vmem:[#allocation30_spill] sm:$0xff] %v7990_v44  ;;  %v8011_v42 = vpack.c.bf16 %v2360_v16, %v2357_v59  ;;  %v2368_v59 = vld [vmem:[%s9445_s3 + $0x1e8] sm:$0xff]  ;;  %v2371_v16 = vld [vmem:[%s9445_s3 + $0x200] sm:$0xff] }
 0x2aa   : > { %9696 = vst [vmem:[#allocation15_spill] sm:$0xff] %v7981_v20 }
 0x2ab   : > { %5311 = vmatpush1.bf16.msra.mxu0 %v7953_v24  ;;  %5364 = vmatpush1.bf16.msra.mxu1 %v7955_v26  ;;  %v2358_v24 = vld [vmem:[%s9445_s3 + $0x198] sm:$0xff]  ;;  %9700 = vst [vmem:[#allocation33_spill] sm:$0xff] %v8011_v42  ;;  %v8018_v26 = vpack.c.bf16 %v2365_v46, %v2362_v52 }
 0x2ac   : > { %5313 = vmatprep.subr.bf16.mxu0 %v7962_v54  ;;  %5365 = vmatprep.subr.bf16.mxu1 %v9684_v1  ;;  %v8009_v40 = vpack.c.bf16 %v2358_v24, %v2355_v6  ;;  %v2361_v54 = vld [vmem:[%s9445_s3 + $0x1b0] sm:$0xff]  ;;  %v2363_v6 = vld [vmem:[%s9445_s3 + $0x1c0] sm:$0xff]  ;;  %v2366_v24 = vld [vmem:[%s9445_s3 + $0x1d8] sm:$0xff] }
 0x2ad   : > { %9701 = vst [vmem:[#allocation34_spill] sm:$0xff] %v8018_v26  ;;  %v8039_v46 = vpack.c.bf16 %v2366_v24, %v2363_v6  ;;  %v2374_v6 = vld [vmem:[%s9445_s3 + $0x218] sm:$0xff]  ;;  %v2377_v24 = vld [vmem:[%s9445_s3 + $0x230] sm:$0xff] }
 0x2ae   : > { %9699 = vst [vmem:[#allocation5_spill] sm:$0xff] %v8009_v40 }
 0x2af   : > { %5315 = vmatpush1.bf16.msra.mxu0 %v7981_v20  ;;  %5367 = vmatpush1.bf16.msra.mxu1 %v7983_v58  ;;  %v2364_v20 = vld [vmem:[%s9445_s3 + $0x1c8] sm:$0xff]  ;;  %9703 = vst [vmem:[#allocation36_spill] sm:$0xff] %v8039_v46  ;;  %v8046_v58 = vpack.c.bf16 %v2371_v16, %v2368_v59 }
 0x2b0   : > { %5317 = vmatprep.subr.bf16.mxu0 %v7990_v44  ;;  %5368 = vmatprep.subr.bf16.mxu1 %v9684_v1  ;;  %v8037_v52 = vpack.c.bf16 %v2364_v20, %v2361_v54  ;;  %v2367_v44 = vld [vmem:[%s9445_s3 + $0x1e0] sm:$0xff]  ;;  %v2369_v54 = vld [vmem:[%s9445_s3 + $0x1f0] sm:$0xff]  ;;  %v2372_v20 = vld [vmem:[%s9445_s3 + $0x208] sm:$0xff] }
 0x2b1   : > { %9704 = vst [vmem:[#allocation37_spill] sm:$0xff] %v8046_v58  ;;  %v8067_v16 = vpack.c.bf16 %v2372_v20, %v2369_v54  ;;  %v2380_v54 = vld [vmem:[%s9445_s3 + $0x248] sm:$0xff]  ;;  %v2383_v20 = vld [vmem:[%s9445_s3 + $0x260] sm:$0xff] }
 0x2b2   : > { %9702 = vst [vmem:[#allocation35_spill] sm:$0xff] %v8037_v52 }
 0x2b3   : > { %5319 = vmatpush1.bf16.msra.mxu0 %v8009_v40  ;;  %5370 = vmatpush1.bf16.msra.mxu1 %v8011_v42  ;;  %v2370_v40 = vld [vmem:[%s9445_s3 + $0x1f8] sm:$0xff]  ;;  %9706 = vst [vmem:[#allocation39_spill] sm:$0xff] %v8067_v16  ;;  %v8074_v42 = vpack.c.bf16 %v2377_v24, %v2374_v6 }
 0x2b4   : > { %5321 = vmatprep.subr.bf16.mxu0 %v8018_v26  ;;  %5371 = vmatprep.subr.bf16.mxu1 %v9684_v1  ;;  %v8065_v59 = vpack.c.bf16 %v2370_v40, %v2367_v44  ;;  %v2373_v26 = vld [vmem:[%s9445_s3 + $0x210] sm:$0xff]  ;;  %v2375_v44 = vld [vmem:[%s9445_s3 + $0x220] sm:$0xff]  ;;  %v2378_v40 = vld [vmem:[%s9445_s3 + $0x238] sm:$0xff] }
 0x2b5   : > { %9707 = vst [vmem:[#allocation40_spill] sm:$0xff] %v8074_v42  ;;  %v8095_v24 = vpack.c.bf16 %v2378_v40, %v2375_v44  ;;  %v2386_v44 = vld [vmem:[%s9445_s3 + $0x278] sm:$0xff]  ;;  %v2389_v40 = vld [vmem:[%s9445_s3 + $0x290] sm:$0xff] }
 0x2b6   : > { %9705 = vst [vmem:[#allocation38_spill] sm:$0xff] %v8065_v59 }
 0x2b7   : > { %5323 = vmatpush1.bf16.msra.mxu0 %v8037_v52  ;;  %5373 = vmatpush1.bf16.msra.mxu1 %v8039_v46  ;;  %v2376_v52 = vld [vmem:[%s9445_s3 + $0x228] sm:$0xff]  ;;  %9709 = vst [vmem:[#allocation42_spill] sm:$0xff] %v8095_v24  ;;  %v8102_v46 = vpack.c.bf16 %v2383_v20, %v2380_v54 }
 0x2b8   : > { %5325 = vmatprep.subr.bf16.mxu0 %v8046_v58  ;;  %5374 = vmatprep.subr.bf16.mxu1 %v9684_v1  ;;  %v8093_v6 = vpack.c.bf16 %v2376_v52, %v2373_v26  ;;  %v2379_v58 = vld [vmem:[%s9445_s3 + $0x240] sm:$0xff]  ;;  %v2381_v26 = vld [vmem:[%s9445_s3 + $0x250] sm:$0xff]  ;;  %v2384_v52 = vld [vmem:[%s9445_s3 + $0x268] sm:$0xff] }
 0x2b9   : > { %9710 = vst [vmem:[#allocation43_spill] sm:$0xff] %v8102_v46  ;;  %v8123_v20 = vpack.c.bf16 %v2384_v52, %v2381_v26  ;;  %v2392_v26 = vld [vmem:[%s9445_s3 + $0x2a8] sm:$0xff]  ;;  %v2395_v52 = vld [vmem:[%s9445_s3 + $0x2c0] sm:$0xff] }
 0x2ba   : > { %9708 = vst [vmem:[#allocation41_spill] sm:$0xff] %v8093_v6 }
 0x2bb   : > { %5327 = vmatpush1.bf16.msra.mxu0 %v8065_v59  ;;  %5376 = vmatpush1.bf16.msra.mxu1 %v8067_v16  ;;  %v2382_v59 = vld [vmem:[%s9445_s3 + $0x258] sm:$0xff]  ;;  %9712 = vst [vmem:[#allocation45_spill] sm:$0xff] %v8123_v20  ;;  %v8130_v16 = vpack.c.bf16 %v2389_v40, %v2386_v44 }
 0x2bc   : > { %5329 = vmatprep.subr.bf16.mxu0 %v8074_v42  ;;  %5377 = vmatprep.subr.bf16.mxu1 %v9684_v1  ;;  %v8121_v54 = vpack.c.bf16 %v2382_v59, %v2379_v58  ;;  %v2385_v42 = vld [vmem:[%s9445_s3 + $0x270] sm:$0xff]  ;;  %v2387_v58 = vld [vmem:[%s9445_s3 + $0x280] sm:$0xff]  ;;  %v2390_v59 = vld [vmem:[%s9445_s3 + $0x298] sm:$0xff] }
 0x2bd   : > { %9713 = vst [vmem:[#allocation46_spill] sm:$0xff] %v8130_v16  ;;  %v8151_v40 = vpack.c.bf16 %v2390_v59, %v2387_v58  ;;  %v4467_v58 = vld [vmem:[%s9445_s3 + $0x5a8] sm:$0xff]  ;;  %v4470_v59 = vld [vmem:[%s9445_s3 + $0x5c0] sm:$0xff] }
 0x2be   : > { %9711 = vst [vmem:[#allocation44_spill] sm:$0xff] %v8121_v54 }
 0x2bf   : > { %5331 = vmatpush1.bf16.msra.mxu0 %v8093_v6  ;;  %5379 = vmatpush1.bf16.msra.mxu1 %v8095_v24  ;;  %v2388_v6 = vld [vmem:[%s9445_s3 + $0x288] sm:$0xff]  ;;  %9714 = vst [vmem:[#allocation47_spill] sm:$0xff] %v8151_v40  ;;  %v8158_v24 = vpack.c.bf16 %v2395_v52, %v2392_v26 }
 0x2c0   : > { %5333 = vmatprep.subr.bf16.mxu0 %v8102_v46  ;;  %5380 = vmatprep.subr.bf16.mxu1 %v9684_v1  ;;  %v8149_v44 = vpack.c.bf16 %v2388_v6, %v2385_v42  ;;  %v2391_v46 = vld [vmem:[%s9445_s3 + $0x2a0] sm:$0xff]  ;;  %v2393_v42 = vld [vmem:[%s9445_s3 + $0x2b0] sm:$0xff]  ;;  %v2396_v6 = vld [vmem:[%s9445_s3 + $0x2c8] sm:$0xff] }
 0x2c1   : > { %9715 = vst [vmem:[#allocation48_spill] sm:$0xff] %v8158_v24  ;;  %v8179_v52 = vpack.c.bf16 %v2396_v6, %v2393_v42  ;;  %v4476_v42 = vld [vmem:[%s9445_s3 + $0x5f0] sm:$0xff] }
 0x2c3   : > { %5335 = vmatpush1.bf16.msra.mxu0 %v8121_v54  ;;  %5382 = vmatpush1.bf16.msra.mxu1 %v8123_v20  ;;  %v2394_v54 = vld [vmem:[%s9445_s3 + $0x2b8] sm:$0xff]  ;;  %9717 = vst [vmem:[#allocation50_spill] sm:$0xff] %v8179_v52  ;;  %v8185_v20 = vpack.c.bf16 %v4470_v59, %v4467_v58 }
 0x2c4   : > { %5337 = vmatprep.subr.bf16.mxu0 %v8130_v16  ;;  %5383 = vmatprep.subr.bf16.mxu1 %v9684_v1  ;;  %v8177_v26 = vpack.c.bf16 %v2394_v54, %v2391_v46  ;;  %v2267_v16 = vadd.f32 %v7737_v28, %v7842_v57  ;;  %v4469_v46 = vld [vmem:[%s9445_s3 + $0x5b8] sm:$0xff]  ;;  %v4468_v54 = vld [vmem:[%s9445_s3 + $0x5b0] sm:$0xff]  ;;  %v4471_v28 = vld [vmem:[%s9445_s3 + $0x5c8] sm:$0xff] }
 0x2c5   : > { %9718 = vst [vmem:[#allocation51_spill] sm:$0xff] %v8185_v20  ;;  %v4473_v57 = vld [vmem:[%s9445_s3 + $0x5d8] sm:$0xff]  ;;  %v8207_v6 = vpack.c.bf16 %v4469_v46, %v4466_v13  ;;  %v8213_v59 = vpack.c.bf16 %v4471_v28, %v4468_v54  ;;  %v4474_v13 = vld [vmem:[%s9445_s3 + $0x5e0] sm:$0xff]  ;;  %v4479_v28 = vld [vmem:[%s9445_s3 + $0x608] sm:$0xff] }
 0x2c6   : > { %9716 = vst [vmem:[#allocation49_spill] sm:$0xff] %v8177_v26  ;;  %v8209_v58 = vmax.f32 %v2267_v16, 0.0  ;;  %v8225_v16 = vrot.slane %v7837_v51, 1  ;;  %v8227_v46 = vpack.c.bf16 %v4476_v42, %v4473_v57  ;;  %v4477_v54 = vld [vmem:[%s9445_s3 + $0x5f8] sm:$0xff] }
 0x2c7   : > { %5339 = vmatpush1.bf16.msra.mxu0 %v8149_v44  ;;  %5385 = vmatpush1.bf16.msra.mxu1 %v8151_v40  ;;  %9719 = vst [vmem:[#allocation52_spill] sm:$0xff] %v8207_v6  ;;  %9720 = vst [vmem:[#allocation53_spill] sm:$0xff] %v8213_v59  ;;  %v8248_v57 = vpack.c.bf16 %v4477_v54, %v4474_v13  ;;  %v4488_v13 = vld [vmem:[%s9445_s3 + $0x650] sm:$0xff]  ;;  %v4487_v40 = vld [vmem:[%s9445_s3 + $0x648] sm:$0xff] }
 0x2c8   : > { %5341 = vmatprep.subr.bf16.mxu0 %v8158_v24  ;;  %5386 = vmatprep.subr.bf16.mxu1 %v9684_v1  ;;  %v4472_v24 = vld [vmem:[%s9445_s3 + $0x5d0] sm:$0xff]  ;;  %9721 = vst [vmem:[#allocation54_spill] sm:$0xff] %v8227_v46 }
 0x2c9   : > { %9723 = vst [vmem:[#allocation56_spill] sm:$0xff] %v8248_v57 }
 0x2cb   : > { %5343 = vmatpush1.bf16.msra.mxu0 %v8177_v26  ;;  %5388 = vmatpush1.bf16.msra.mxu1 %v8179_v52  ;;  %v4475_v26 = vld [vmem:[%s9445_s3 + $0x5e8] sm:$0xff]  ;;  %v4478_v52 = vld [vmem:[%s9445_s3 + $0x600] sm:$0xff] }
 0x2cc   : > { %5390 = vmatprep.subr.bf16.mxu0 %v8185_v20  ;;  %5449 = vmatprep.subr.bf16.mxu1 %v9684_v1  ;;  %v4482_v20 = vld [vmem:[%s9445_s3 + $0x620] sm:$0xff]  ;;  %v8243_v51 = vpack.c.bf16 %v4475_v26, %v4472_v24  ;;  %v4480_v24 = vld [vmem:[%s9445_s3 + $0x610] sm:$0xff]  ;;  %v4485_v26 = vld [vmem:[%s9445_s3 + $0x638] sm:$0xff] }
 0x2cd   : > { %v8250_v42 = vpack.c.bf16 %v4482_v20, %v4479_v28  ;;  %v4483_v20 = vld [vmem:[%s9445_s3 + $0x628] sm:$0xff] }
 0x2ce   : > { %2701 = vmatmul.mubr.f32.vlgmr.msra.gmra.mrb[8].mxu0 %v8209_v58  ;;  %2772 = vmatmul.mubr.f32.vlgmr.msra.gmra.mrb[8].mxu1 %v8209_v58  ;;  %9722 = vst [vmem:[#allocation55_spill] sm:$0xff] %v8243_v51  ;;  %v8277_v28 = vpack.c.bf16 %v4483_v20, %v4480_v24  ;;  %v4491_v24 = vld [vmem:[%s9445_s3 + $0x668] sm:$0xff]  ;;  %v4494_v20 = vld [vmem:[%s9445_s3 + $0x680] sm:$0xff] }
 0x2cf   : > { %5392 = vmatpush1.bf16.msra.mxu0 %v8207_v6  ;;  %4556 = vmatprep.mubr.msk.f32.mxu0 %vm2488_vm2, %v8225_v16  ;;  %9724 = vst [vmem:[#allocation57_spill] sm:$0xff] %v8250_v42  ;;  %v4481_v6 = vld [vmem:[%s9445_s3 + $0x618] sm:$0xff] }
 0x2d0   : > { %5451 = vmatpush1.bf16.msra.mxu1 %v8213_v59  ;;  %4557 = vmatprep.mubr.msk.f32.mxu1 %vm2488_vm2, %v8225_v16  ;;  %v8273_v54 = vpack.c.bf16 %v4481_v6, %v4478_v52  ;;  %9726 = vst [vmem:[#allocation59_spill] sm:$0xff] %v8277_v28  ;;  %v4484_v59 = vld [vmem:[%s9445_s3 + $0x630] sm:$0xff]  ;;  %v4486_v52 = vld [vmem:[%s9445_s3 + $0x640] sm:$0xff]  ;;  %v4489_v6 = vld [vmem:[%s9445_s3 + $0x658] sm:$0xff] }
 0x2d1   : > { %5394 = vmatprep.subr.bf16.mxu0 %v8227_v46  ;;  %5452 = vmatprep.subr.bf16.mxu1 %v9684_v1  ;;  %v8279_v46 = vpack.c.bf16 %v4488_v13, %v4485_v26  ;;  %v8301_v26 = vpack.c.bf16 %v4487_v40, %v4484_v59  ;;  %v8305_v13 = vpack.c.bf16 %v4489_v6, %v4486_v52  ;;  %v4492_v40 = vld [vmem:[%s9445_s3 + $0x670] sm:$0xff]  ;;  %v4495_v59 = vld [vmem:[%s9445_s3 + $0x688] sm:$0xff]  ;;  %v4497_v52 = vld [vmem:[%s9445_s3 + $0x698] sm:$0xff] }
 0x2d2   : > { %9725 = vst [vmem:[#allocation58_spill] sm:$0xff] %v8273_v54  ;;  %v4500_v6 = vld [vmem:[%s9445_s3 + $0x6b0] sm:$0xff] }
 0x2d3   : > { %5396 = vmatpush1.bf16.msra.mxu0 %v8243_v51  ;;  %9727 = vst [vmem:[#allocation60_spill] sm:$0xff] %v8279_v46  ;;  %9728 = vst [vmem:[#allocation61_spill] sm:$0xff] %v8301_v26  ;;  %v4493_v51 = vld [vmem:[%s9445_s3 + $0x678] sm:$0xff] }
 0x2d4   : > { %5454 = vmatpush1.bf16.msra.mxu1 %v8248_v57  ;;  %5398 = vmatprep.subr.bf16.mxu0 %v8250_v42  ;;  %9729 = vst [vmem:[#allocation62_spill] sm:$0xff] %v8305_v13  ;;  %v8307_v42 = vpack.c.bf16 %v4494_v20, %v4491_v24  ;;  %v4490_v57 = vld [vmem:[%s9445_s3 + $0x660] sm:$0xff]  ;;  %v8333_v20 = vpack.c.bf16 %v4495_v59, %v4492_v40  ;;  %v4503_v40 = vld [vmem:[%s9445_s3 + $0x6c8] sm:$0xff] }
 0x2d5   : > { %5455 = vmatprep.subr.bf16.mxu1 %v9684_v1  ;;  %v8329_v24 = vpack.c.bf16 %v4493_v51, %v4490_v57  ;;  %v4498_v51 = vld [vmem:[%s9445_s3 + $0x6a0] sm:$0xff]  ;;  %v4501_v57 = vld [vmem:[%s9445_s3 + $0x6b8] sm:$0xff] }
 0x2d6   : > { %9730 = vst [vmem:[#allocation63_spill] sm:$0xff] %v8307_v42  ;;  %9732 = vst [vmem:[#allocation65_spill] sm:$0xff] %v8333_v20  ;;  %v4506_v59 = vld [vmem:[%s9445_s3 + $0x6e0] sm:$0xff] }
 0x2d7   : > { %5400 = vmatpush1.bf16.msra.mxu0 %v8273_v54  ;;  %9731 = vst [vmem:[#allocation64_spill] sm:$0xff] %v8329_v24  ;;  %v4499_v54 = vld [vmem:[%s9445_s3 + $0x6a8] sm:$0xff] }
 0x2d8   : > { %5457 = vmatpush1.bf16.msra.mxu1 %v8277_v28  ;;  %5402 = vmatprep.subr.bf16.mxu0 %v8279_v46  ;;  %v8335_v46 = vpack.c.bf16 %v4500_v6, %v4497_v52  ;;  %v4496_v28 = vld [vmem:[%s9445_s3 + $0x690] sm:$0xff]  ;;  %v8361_v6 = vpack.c.bf16 %v4501_v57, %v4498_v51  ;;  %v4509_v51 = vld [vmem:[%s9445_s3 + $0x6f8] sm:$0xff] }
 0x2d9   : > { %5458 = vmatprep.subr.bf16.mxu1 %v9684_v1  ;;  %v8357_v52 = vpack.c.bf16 %v4499_v54, %v4496_v28  ;;  %v4504_v54 = vld [vmem:[%s9445_s3 + $0x6d0] sm:$0xff]  ;;  %v4507_v28 = vld [vmem:[%s9445_s3 + $0x6e8] sm:$0xff] }
 0x2da   : > { %9733 = vst [vmem:[#allocation66_spill] sm:$0xff] %v8335_v46  ;;  %9735 = vst [vmem:[#allocation68_spill] sm:$0xff] %v8361_v6  ;;  %v4512_v57 = vld [vmem:[%s9445_s3 + $0x710] sm:$0xff] }
 0x2db   : > { %5404 = vmatpush1.bf16.msra.mxu0 %v8301_v26  ;;  %9734 = vst [vmem:[#allocation67_spill] sm:$0xff] %v8357_v52  ;;  %v4505_v26 = vld [vmem:[%s9445_s3 + $0x6d8] sm:$0xff] }
 0x2dc   : > { %5460 = vmatpush1.bf16.msra.mxu1 %v8305_v13  ;;  %5406 = vmatprep.subr.bf16.mxu0 %v8307_v42  ;;  %v8363_v42 = vpack.c.bf16 %v4506_v59, %v4503_v40  ;;  %v4502_v13 = vld [vmem:[%s9445_s3 + $0x6c0] sm:$0xff]  ;;  %v8389_v59 = vpack.c.bf16 %v4507_v28, %v4504_v54  ;;  %v4515_v54 = vld [vmem:[%s9445_s3 + $0x728] sm:$0xff] }
 0x2dd   : > { %5461 = vmatprep.subr.bf16.mxu1 %v9684_v1  ;;  %v8385_v40 = vpack.c.bf16 %v4505_v26, %v4502_v13  ;;  %v4510_v26 = vld [vmem:[%s9445_s3 + $0x700] sm:$0xff]  ;;  %v4513_v13 = vld [vmem:[%s9445_s3 + $0x718] sm:$0xff] }
 0x2de   : > { %9736 = vst [vmem:[#allocation69_spill] sm:$0xff] %v8363_v42  ;;  %9738 = vst [vmem:[#allocation71_spill] sm:$0xff] %v8389_v59  ;;  %v4518_v28 = vld [vmem:[%s9445_s3 + $0x740] sm:$0xff] }
 0x2df   : > { %5408 = vmatpush1.bf16.msra.mxu0 %v8329_v24  ;;  %9737 = vst [vmem:[#allocation70_spill] sm:$0xff] %v8385_v40  ;;  %v4511_v24 = vld [vmem:[%s9445_s3 + $0x708] sm:$0xff] }
 0x2e0   : > { %5463 = vmatpush1.bf16.msra.mxu1 %v8333_v20  ;;  %5410 = vmatprep.subr.bf16.mxu0 %v8335_v46  ;;  %v8391_v46 = vpack.c.bf16 %v4512_v57, %v4509_v51  ;;  %v4508_v20 = vld [vmem:[%s9445_s3 + $0x6f0] sm:$0xff]  ;;  %v8417_v57 = vpack.c.bf16 %v4513_v13, %v4510_v26  ;;  %v4521_v26 = vld [vmem:[%s9445_s3 + $0x758] sm:$0xff] }
 0x2e1   : > { %5464 = vmatprep.subr.bf16.mxu1 %v9684_v1  ;;  %v8413_v51 = vpack.c.bf16 %v4511_v24, %v4508_v20  ;;  %v4516_v24 = vld [vmem:[%s9445_s3 + $0x730] sm:$0xff]  ;;  %v4519_v20 = vld [vmem:[%s9445_s3 + $0x748] sm:$0xff] }
 0x2e2   : > { %9739 = vst [vmem:[#allocation72_spill] sm:$0xff] %v8391_v46  ;;  %9741 = vst [vmem:[#allocation74_spill] sm:$0xff] %v8417_v57  ;;  %v4524_v13 = vld [vmem:[%s9445_s3 + $0x770] sm:$0xff] }
 0x2e3   : > { %5412 = vmatpush1.bf16.msra.mxu0 %v8357_v52  ;;  %9740 = vst [vmem:[#allocation73_spill] sm:$0xff] %v8413_v51  ;;  %v4517_v52 = vld [vmem:[%s9445_s3 + $0x738] sm:$0xff] }
 0x2e4   : > { %5466 = vmatpush1.bf16.msra.mxu1 %v8361_v6  ;;  %5414 = vmatprep.subr.bf16.mxu0 %v8363_v42  ;;  %v8419_v42 = vpack.c.bf16 %v4518_v28, %v4515_v54  ;;  %v4514_v6 = vld [vmem:[%s9445_s3 + $0x720] sm:$0xff]  ;;  %v8445_v28 = vpack.c.bf16 %v4519_v20, %v4516_v24  ;;  %v4527_v24 = vld [vmem:[%s9445_s3 + $0x788] sm:$0xff] }
 0x2e5   : > { %5467 = vmatprep.subr.bf16.mxu1 %v9684_v1  ;;  %v8441_v54 = vpack.c.bf16 %v4517_v52, %v4514_v6  ;;  %v4522_v52 = vld [vmem:[%s9445_s3 + $0x760] sm:$0xff]  ;;  %v4525_v6 = vld [vmem:[%s9445_s3 + $0x778] sm:$0xff] }
 0x2e6   : > { %9742 = vst [vmem:[#allocation75_spill] sm:$0xff] %v8419_v42  ;;  %9744 = vst [vmem:[#allocation77_spill] sm:$0xff] %v8445_v28  ;;  %v4530_v20 = vld [vmem:[%s9445_s3 + $0x7a0] sm:$0xff] }
 0x2e7   : > { %5416 = vmatpush1.bf16.msra.mxu0 %v8385_v40  ;;  %9743 = vst [vmem:[#allocation76_spill] sm:$0xff] %v8441_v54  ;;  %v4523_v40 = vld [vmem:[%s9445_s3 + $0x768] sm:$0xff] }
 0x2e8   : > { %5469 = vmatpush1.bf16.msra.mxu1 %v8389_v59  ;;  %5418 = vmatprep.subr.bf16.mxu0 %v8391_v46  ;;  %v8447_v46 = vpack.c.bf16 %v4524_v13, %v4521_v26  ;;  %v4520_v59 = vld [vmem:[%s9445_s3 + $0x750] sm:$0xff]  ;;  %v8473_v13 = vpack.c.bf16 %v4525_v6, %v4522_v52  ;;  %v4533_v52 = vld [vmem:[%s9445_s3 + $0x7b8] sm:$0xff] }
 0x2e9   : > { %5470 = vmatprep.subr.bf16.mxu1 %v9684_v1  ;;  %v8469_v26 = vpack.c.bf16 %v4523_v40, %v4520_v59  ;;  %v4528_v40 = vld [vmem:[%s9445_s3 + $0x790] sm:$0xff]  ;;  %v4531_v59 = vld [vmem:[%s9445_s3 + $0x7a8] sm:$0xff] }
 0x2ea   : > { %9745 = vst [vmem:[#allocation78_spill] sm:$0xff] %v8447_v46  ;;  %9747 = vst [vmem:[#allocation80_spill] sm:$0xff] %v8473_v13  ;;  %v4536_v6 = vld [vmem:[%s9445_s3 + $0x7d0] sm:$0xff] }
 0x2eb   : > { %5420 = vmatpush1.bf16.msra.mxu0 %v8413_v51  ;;  %9746 = vst [vmem:[#allocation79_spill] sm:$0xff] %v8469_v26  ;;  %v4529_v51 = vld [vmem:[%s9445_s3 + $0x798] sm:$0xff] }
 0x2ec   : > { %5472 = vmatpush1.bf16.msra.mxu1 %v8417_v57  ;;  %5422 = vmatprep.subr.bf16.mxu0 %v8419_v42  ;;  %v8475_v42 = vpack.c.bf16 %v4530_v20, %v4527_v24  ;;  %v4526_v57 = vld [vmem:[%s9445_s3 + $0x780] sm:$0xff]  ;;  %v8501_v20 = vpack.c.bf16 %v4531_v59, %v4528_v40  ;;  %v4539_v40 = vld [vmem:[%s9445_s3 + $0x7e8] sm:$0xff] }
 0x2ed   : > { %5473 = vmatprep.subr.bf16.mxu1 %v9684_v1  ;;  %v8497_v24 = vpack.c.bf16 %v4529_v51, %v4526_v57  ;;  %v4534_v51 = vld [vmem:[%s9445_s3 + $0x7c0] sm:$0xff]  ;;  %v4537_v57 = vld [vmem:[%s9445_s3 + $0x7d8] sm:$0xff] }
 0x2ee   : > { %9748 = vst [vmem:[#allocation81_spill] sm:$0xff] %v8475_v42  ;;  %9750 = vst [vmem:[#allocation83_spill] sm:$0xff] %v8501_v20  ;;  %v4542_v59 = vld [vmem:[%s9445_s3 + $0x800] sm:$0xff] }
 0x2ef   : > { %5424 = vmatpush1.bf16.msra.mxu0 %v8441_v54  ;;  %9749 = vst [vmem:[#allocation82_spill] sm:$0xff] %v8497_v24  ;;  %v4535_v54 = vld [vmem:[%s9445_s3 + $0x7c8] sm:$0xff] }
 0x2f0   : > { %5475 = vmatpush1.bf16.msra.mxu1 %v8445_v28  ;;  %5426 = vmatprep.subr.bf16.mxu0 %v8447_v46  ;;  %v8503_v46 = vpack.c.bf16 %v4536_v6, %v4533_v52  ;;  %v4532_v28 = vld [vmem:[%s9445_s3 + $0x7b0] sm:$0xff]  ;;  %v8529_v6 = vpack.c.bf16 %v4537_v57, %v4534_v51  ;;  %v4545_v51 = vld [vmem:[%s9445_s3 + $0x818] sm:$0xff] }
 0x2f1   : > { %5476 = vmatprep.subr.bf16.mxu1 %v9684_v1  ;;  %v8525_v52 = vpack.c.bf16 %v4535_v54, %v4532_v28  ;;  %v4540_v54 = vld [vmem:[%s9445_s3 + $0x7f0] sm:$0xff]  ;;  %v4543_v28 = vld [vmem:[%s9445_s3 + $0x808] sm:$0xff] }
 0x2f2   : > { %9751 = vst [vmem:[#allocation84_spill] sm:$0xff] %v8503_v46  ;;  %9753 = vst [vmem:[#allocation86_spill] sm:$0xff] %v8529_v6  ;;  %v4548_v57 = vld [vmem:[%s9445_s3 + $0x830] sm:$0xff] }
 0x2f3   : > { %5428 = vmatpush1.bf16.msra.mxu0 %v8469_v26  ;;  %9752 = vst [vmem:[#allocation85_spill] sm:$0xff] %v8525_v52  ;;  %v4541_v26 = vld [vmem:[%s9445_s3 + $0x7f8] sm:$0xff] }
 0x2f4   : > { %5478 = vmatpush1.bf16.msra.mxu1 %v8473_v13  ;;  %5430 = vmatprep.subr.bf16.mxu0 %v8475_v42  ;;  %v8531_v42 = vpack.c.bf16 %v4542_v59, %v4539_v40  ;;  %v4538_v13 = vld [vmem:[%s9445_s3 + $0x7e0] sm:$0xff]  ;;  %v8557_v59 = vpack.c.bf16 %v4543_v28, %v4540_v54  ;;  %v4551_v54 = vld [vmem:[%s9445_s3 + $0x848] sm:$0xff] }
 0x2f5   : > { %5479 = vmatprep.subr.bf16.mxu1 %v9684_v1  ;;  %v8553_v40 = vpack.c.bf16 %v4541_v26, %v4538_v13  ;;  %v4546_v26 = vld [vmem:[%s9445_s3 + $0x820] sm:$0xff]  ;;  %v4549_v13 = vld [vmem:[%s9445_s3 + $0x838] sm:$0xff] }
 0x2f6   : > { %9754 = vst [vmem:[#allocation87_spill] sm:$0xff] %v8531_v42  ;;  %v4554_v28 = vld [vmem:[%s9445_s3 + $0x860] sm:$0xff] }
 0x2f7   : > { %5432 = vmatpush1.bf16.msra.mxu0 %v8497_v24  ;;  %v4547_v24 = vld [vmem:[%s9445_s3 + $0x828] sm:$0xff] }
 0x2f8   : > { %5481 = vmatpush1.bf16.msra.mxu1 %v8501_v20  ;;  %5434 = vmatprep.subr.bf16.mxu0 %v8503_v46  ;;  %v8559_v46 = vpack.c.bf16 %v4548_v57, %v4545_v51  ;;  %v4544_v20 = vld [vmem:[%s9445_s3 + $0x810] sm:$0xff]  ;;  %v8585_v57 = vpack.c.bf16 %v4549_v13, %v4546_v26 }
 0x2f9   : > { %5482 = vmatprep.subr.bf16.mxu1 %v9684_v1  ;;  %v8581_v51 = vpack.c.bf16 %v4547_v24, %v4544_v20  ;;  %v4552_v24 = vld [vmem:[%s9445_s3 + $0x850] sm:$0xff]  ;;  %v4555_v20 = vld [vmem:[%s9445_s3 + $0x868] sm:$0xff] }
 0x2fa   : > { %v8607_v13 = vpack.c.bf16 %v4555_v20, %v4552_v24  ;;  %v9805_v24 = vld [vmem:[#allocation56_spill] sm:$0xff]  ;;  %v9806_v20 = vld [vmem:[#allocation57_spill] sm:$0xff] }
 0x2fb   : > { %5436 = vmatpush1.bf16.msra.mxu0 %v8525_v52  ;;  %v4553_v52 = vld [vmem:[%s9445_s3 + $0x858] sm:$0xff] }
 0x2fc   : > { %5484 = vmatpush1.bf16.msra.mxu1 %v8529_v6  ;;  %5438 = vmatprep.subr.bf16.mxu0 %v8531_v42  ;;  %v8587_v42 = vpack.c.bf16 %v4554_v28, %v4551_v54  ;;  %v4550_v6 = vld [vmem:[%s9445_s3 + $0x840] sm:$0xff]  ;;  %v8613_v54 = vrot.slane %v8209_v58, 1  ;;  %v9800_v58 = vld [vmem:[#allocation23_spill] sm:$0xff] }
 0x2fd   : > { %5485 = vmatprep.subr.bf16.mxu1 %v9684_v1  ;;  %v8603_v26 = vpack.c.bf16 %v4553_v52, %v4550_v6  ;;  %v9802_v52 = vld [vmem:[#allocation53_spill] sm:$0xff]  ;;  %v9803_v6 = vld [vmem:[#allocation54_spill] sm:$0xff]  ;;  %v9804_v28 = vld [vmem:[#allocation55_spill] sm:$0xff] }
 0x2ff   : > { %5440 = vmatpush1.bf16.msra.mxu0 %v8553_v40 }
 0x300   : > { %5487 = vmatpush1.bf16.msra.mxu1 %v8557_v59  ;;  %5442 = vmatprep.subr.bf16.mxu0 %v8559_v46 }
 0x301   : > { %5488 = vmatprep.subr.bf16.mxu1 %v9684_v1 }
 0x303   : > { %5444 = vmatpush1.bf16.msra.mxu0 %v8581_v51 }
 0x304   : > { %5490 = vmatpush1.bf16.msra.mxu1 %v8585_v57  ;;  %5446 = vmatprep.subr.bf16.mxu0 %v8587_v42 }
 0x305   : > { %5491 = vmatprep.subr.bf16.mxu1 %v9684_v1 }
 0x307   : > { %5448 = vmatpush1.bf16.msra.mxu0 %v8603_v26 }
 0x308   : > { %5493 = vmatpush1.bf16.msra.mxu1 %v8607_v13  ;;  %5495 = vmatprep.subr.bf16.mxu0 %v7279_v45  ;;  %v9755_v45 = vld [vmem:[#allocation24_spill] sm:$0xff] }
 0x309   : > { %5554 = vmatprep.subr.bf16.mxu1 %v9684_v1 }
 0x30a   : > { %2939 = vmatmul.mubr.f32.vlgmr.msra.gmra.mrb[8].mxu0 %v8613_v54 }
 0x30b   : > { %3010 = vmatmul.mubr.f32.vlgmr.msra.gmra.mrb[8].mxu1 %v8613_v54  ;;  %5497 = vmatpush1.bf16.msra.mxu0 %v7291_v11  ;;  %v9756_v11 = vld [vmem:[#allocation25_spill] sm:$0xff] }
 0x30c   : > { %4558 = vmatprep.mubr.msk.f32.mxu0 %vm2488_vm2, %v8225_v16  ;;  %5556 = vmatpush1.bf16.msra.mxu1 %v7293_v12  ;;  %v9757_v12 = vld [vmem:[#allocation26_spill] sm:$0xff] }
 0x30d   : > { %4559 = vmatprep.mubr.msk.f32.mxu1 %vm2488_vm2, %v8225_v16  ;;  %5499 = vmatprep.subr.bf16.mxu0 %v7305_v43  ;;  %v9758_v43 = vld [vmem:[#allocation27_spill] sm:$0xff]  ;;  %v3302_v16 = vrot.slane %v7742_v14, 1 }
 0x30e   : > { %5557 = vmatprep.subr.bf16.mxu1 %v9684_v1 }
 0x30f   : > { %5501 = vmatpush1.bf16.msra.mxu0 %v7318_v5  ;;  %v9759_v5 = vld [vmem:[#allocation28_spill] sm:$0xff] }
 0x310   : > { %5559 = vmatpush1.bf16.msra.mxu1 %v7328_v32  ;;  %5503 = vmatprep.subr.bf16.mxu0 %v7330_v34  ;;  %v9760_v32 = vld [vmem:[#allocation31_spill] sm:$0xff]  ;;  %v9761_v34 = vld [vmem:[#allocation16_spill] sm:$0xff] }
 0x311   : > { %5560 = vmatprep.subr.bf16.mxu1 %v9684_v1 }
 0x313   : > { %5505 = vmatpush1.bf16.msra.mxu0 %v7353_v7  ;;  %v9762_v7 = vld [vmem:[#allocation17_spill] sm:$0xff] }
 0x314   : > { %5562 = vmatpush1.bf16.msra.mxu1 %v7357_v50  ;;  %5507 = vmatprep.subr.bf16.mxu0 %v7359_v33  ;;  %v9763_v50 = vld [vmem:[#allocation18_spill] sm:$0xff]  ;;  %v9764_v33 = vld [vmem:[#allocation32_spill] sm:$0xff] }
 0x315   : > { %5563 = vmatprep.subr.bf16.mxu1 %v9684_v1 }
 0x317   : > { %5509 = vmatpush1.bf16.msra.mxu0 %v7383_v3  ;;  %v9765_v3 = vld [vmem:[#allocation20_spill] sm:$0xff] }
 0x318   : > { %5565 = vmatpush1.bf16.msra.mxu1 %v7387_v8  ;;  %5511 = vmatprep.subr.bf16.mxu0 %v7389_v9  ;;  %v9766_v8 = vld [vmem:[#allocation21_spill] sm:$0xff]  ;;  %v9767_v9 = vld [vmem:[#allocation19_spill] sm:$0xff] }
 0x319   : > { %5566 = vmatprep.subr.bf16.mxu1 %v9684_v1 }
 0x31b   : > { %5513 = vmatpush1.bf16.msra.mxu0 %v7411_v31  ;;  %v9768_v31 = vld [vmem:[#allocation6_spill] sm:$0xff] }
 0x31c   : > { %5568 = vmatpush1.bf16.msra.mxu1 %v7415_v35  ;;  %5515 = vmatprep.subr.bf16.mxu0 %v7417_v39  ;;  %v9769_v35 = vld [vmem:[#allocation7_spill] sm:$0xff]  ;;  %v9770_v39 = vld [vmem:[#allocation8_spill] sm:$0xff] }
 0x31d   : > { %5569 = vmatprep.subr.bf16.mxu1 %v9684_v1 }
 0x31f   : > { %5517 = vmatpush1.bf16.msra.mxu0 %v7439_v36  ;;  %v9771_v36 = vld [vmem:[#allocation9_spill] sm:$0xff] }
 0x320   : > { %5571 = vmatpush1.bf16.msra.mxu1 %v7443_v37  ;;  %5519 = vmatprep.subr.bf16.mxu0 %v7445_v38  ;;  %v9772_v37 = vld [vmem:[#allocation10_spill] sm:$0xff]  ;;  %v9773_v38 = vld [vmem:[#allocation11_spill] sm:$0xff] }
 0x321   : > { %5572 = vmatprep.subr.bf16.mxu1 %v9684_v1 }
 0x323   : > { %5521 = vmatpush1.bf16.msra.mxu0 %v7467_v49  ;;  %v9774_v49 = vld [vmem:[#allocation12_spill] sm:$0xff] }
 0x324   : > { %5574 = vmatpush1.bf16.msra.mxu1 %v7471_v2  ;;  %5523 = vmatprep.subr.bf16.mxu0 %v7473_v4  ;;  %v9775_v2 = vld [vmem:[#allocation13_spill] sm:$0xff]  ;;  %v9776_v4 = vld [vmem:[#allocation14_spill] sm:$0xff] }
 0x325   : > { %5575 = vmatprep.subr.bf16.mxu1 %v9684_v1 }
 0x327   : > { %5525 = vmatpush1.bf16.msra.mxu0 %v7495_v60  ;;  %v9777_v60 = vld [vmem:[#allocation15_spill] sm:$0xff] }
 0x328   : > { %5577 = vmatpush1.bf16.msra.mxu1 %v7499_v47  ;;  %5527 = vmatprep.subr.bf16.mxu0 %v7501_v21  ;;  %v9778_v47 = vld [vmem:[#allocation29_spill] sm:$0xff]  ;;  %v9779_v21 = vld [vmem:[#allocation30_spill] sm:$0xff] }
 0x329   : > { %5578 = vmatprep.subr.bf16.mxu1 %v9684_v1 }
 0x32b   : > { %5529 = vmatpush1.bf16.msra.mxu0 %v7523_v17  ;;  %v9780_v17 = vld [vmem:[#allocation5_spill] sm:$0xff] }
 0x32c   : > { %5580 = vmatpush1.bf16.msra.mxu1 %v7527_v18  ;;  %5531 = vmatprep.subr.bf16.mxu0 %v7529_v22  ;;  %v9781_v18 = vld [vmem:[#allocation33_spill] sm:$0xff]  ;;  %v9782_v22 = vld [vmem:[#allocation34_spill] sm:$0xff] }
 0x32d   : > { %5581 = vmatprep.subr.bf16.mxu1 %v9684_v1 }
 0x32f   : > { %5533 = vmatpush1.bf16.msra.mxu0 %v7551_v19  ;;  %v9783_v19 = vld [vmem:[#allocation35_spill] sm:$0xff] }
 0x330   : > { %5583 = vmatpush1.bf16.msra.mxu1 %v7555_v25  ;;  %5535 = vmatprep.subr.bf16.mxu0 %v7557_v55  ;;  %v9784_v25 = vld [vmem:[#allocation36_spill] sm:$0xff]  ;;  %v9785_v55 = vld [vmem:[#allocation37_spill] sm:$0xff] }
 0x331   : > { %5584 = vmatprep.subr.bf16.mxu1 %v9684_v1 }
 0x333   : > { %5537 = vmatpush1.bf16.msra.mxu0 %v7573_v41  ;;  %v9786_v41 = vld [vmem:[#allocation38_spill] sm:$0xff] }
 0x334   : > { %5586 = vmatpush1.bf16.msra.mxu1 %v7577_v23  ;;  %5539 = vmatprep.subr.bf16.mxu0 %v7589_v15  ;;  %v9787_v23 = vld [vmem:[#allocation39_spill] sm:$0xff]  ;;  %v9788_v15 = vld [vmem:[#allocation40_spill] sm:$0xff] }
 0x335   : > { %5587 = vmatprep.subr.bf16.mxu1 %v9684_v1 }
 0x337   : > { %5541 = vmatpush1.bf16.msra.mxu0 %v9755_v45  ;;  %v9809_v45 = vld [vmem:[#allocation60_spill] sm:$0xff] }
 0x338   : > { %5589 = vmatpush1.bf16.msra.mxu1 %v9756_v11  ;;  %5543 = vmatprep.subr.bf16.mxu0 %v9757_v12  ;;  %v9810_v11 = vld [vmem:[#allocation61_spill] sm:$0xff]  ;;  %v9811_v12 = vld [vmem:[#allocation62_spill] sm:$0xff] }
 0x339   : > { %5590 = vmatprep.subr.bf16.mxu1 %v9684_v1 }
 0x33b   : > { %5545 = vmatpush1.bf16.msra.mxu0 %v9758_v43  ;;  %v9812_v43 = vld [vmem:[#allocation63_spill] sm:$0xff] }
 0x33c   : > { %5592 = vmatpush1.bf16.msra.mxu1 %v9759_v5  ;;  %5547 = vmatprep.subr.bf16.mxu0 %v9760_v32  ;;  %v9813_v5 = vld [vmem:[#allocation64_spill] sm:$0xff]  ;;  %v9814_v32 = vld [vmem:[#allocation65_spill] sm:$0xff] }
 0x33d   : > { %5593 = vmatprep.subr.bf16.mxu1 %v9684_v1 }
 0x33f   : > { %5549 = vmatpush1.bf16.msra.mxu0 %v9761_v34  ;;  %v9815_v34 = vld [vmem:[#allocation66_spill] sm:$0xff] }
 0x340   : > { %5595 = vmatpush1.bf16.msra.mxu1 %v9762_v7  ;;  %5551 = vmatprep.subr.bf16.mxu0 %v9763_v50  ;;  %v9816_v7 = vld [vmem:[#allocation67_spill] sm:$0xff]  ;;  %v9817_v50 = vld [vmem:[#allocation68_spill] sm:$0xff] }
 0x341   : > { %5596 = vmatprep.subr.bf16.mxu1 %v9684_v1 }
 0x343   : > { %5553 = vmatpush1.bf16.msra.mxu0 %v9764_v33  ;;  %v9818_v33 = vld [vmem:[#allocation69_spill] sm:$0xff] }
 0x344   : > { %5598 = vmatpush1.bf16.msra.mxu1 %v9765_v3  ;;  %5600 = vmatprep.subr.bf16.mxu0 %v9766_v8  ;;  %v9819_v3 = vld [vmem:[#allocation70_spill] sm:$0xff]  ;;  %v9820_v8 = vld [vmem:[#allocation71_spill] sm:$0xff] }
 0x345   : > { %5659 = vmatprep.subr.bf16.mxu1 %v9684_v1 }
 0x346   : > { %3083 = vmatmul.mubr.f32.vlgmr.msra.gmra.mrb[10].mxu0 %v8613_v54 }
 0x347   : > { %3154 = vmatmul.mubr.f32.vlgmr.msra.gmra.mrb[10].mxu1 %v8613_v54  ;;  %5602 = vmatpush1.bf16.msra.mxu0 %v7765_v61  ;;  %v9790_v61 = vld [vmem:[#allocation42_spill] sm:$0xff]  ;;  %v9808_v54 = vld [vmem:[#allocation59_spill] sm:$0xff] }
 0x348   : > { %4560 = vmatprep.mubr.msk.f32.mxu0 %vm2488_vm2, %v7742_v14  ;;  %5661 = vmatpush1.bf16.msra.mxu1 %v7767_v0  ;;  %v9791_v0 = vld [vmem:[#allocation43_spill] sm:$0xff] }
 0x349   : > { %4561 = vmatprep.mubr.msk.f32.mxu1 %vm2488_vm2, %v7742_v14  ;;  %5604 = vmatprep.subr.bf16.mxu0 %v7774_v48  ;;  %v9792_v48 = vld [vmem:[#allocation44_spill] sm:$0xff]  ;;  %v9807_v14 = vld [vmem:[#allocation58_spill] sm:$0xff] }
 0x34a   : > { %5662 = vmatprep.subr.bf16.mxu1 %v9684_v1 }
 0x34b   : > { %5606 = vmatpush1.bf16.msra.mxu0 %v7799_v56  ;;  %v9793_v56 = vld [vmem:[#allocation45_spill] sm:$0xff] }
 0x34c   : > { %5664 = vmatpush1.bf16.msra.mxu1 %v7801_v62  ;;  %5608 = vmatprep.subr.bf16.mxu0 %v7808_v27  ;;  %v9794_v62 = vld [vmem:[#allocation46_spill] sm:$0xff]  ;;  %v9795_v27 = vld [vmem:[#allocation47_spill] sm:$0xff] }
 0x34d   : > { %5665 = vmatprep.subr.bf16.mxu1 %v9684_v1 }
 0x34f   : > { %5610 = vmatpush1.bf16.msra.mxu0 %v7830_v53  ;;  %v9796_v53 = vld [vmem:[#allocation48_spill] sm:$0xff] }
 0x350   : > { %5667 = vmatpush1.bf16.msra.mxu1 %v7832_v10  ;;  %5612 = vmatprep.subr.bf16.mxu0 %v7846_v63  ;;  %v9789_v10 = vld [vmem:[#allocation41_spill] sm:$0xff] }
 0x351   : > { %5668 = vmatprep.subr.bf16.mxu1 %v9684_v1  ;;  %v9797_v63 = vld [vmem:[#allocation49_spill] sm:$0xff] }
 0x353   : > { %5614 = vmatpush1.bf16.msra.mxu0 %v7869_v30  ;;  %v9798_v30 = vld [vmem:[#allocation50_spill] sm:$0xff] }
 0x354   : > { %5670 = vmatpush1.bf16.msra.mxu1 %v7871_v29  ;;  %5616 = vmatprep.subr.bf16.mxu0 %v9767_v9  ;;  %v9799_v29 = vld [vmem:[#allocation51_spill] sm:$0xff]  ;;  %v9821_v9 = vld [vmem:[#allocation72_spill] sm:$0xff] }
 0x355   : > { %5671 = vmatprep.subr.bf16.mxu1 %v9684_v1 }
 0x357   : > { %5618 = vmatpush1.bf16.msra.mxu0 %v9768_v31  ;;  %v9822_v31 = vld [vmem:[#allocation73_spill] sm:$0xff] }
 0x358   : > { %5673 = vmatpush1.bf16.msra.mxu1 %v9769_v35  ;;  %5620 = vmatprep.subr.bf16.mxu0 %v9770_v39  ;;  %v9823_v35 = vld [vmem:[#allocation74_spill] sm:$0xff]  ;;  %v9824_v39 = vld [vmem:[#allocation75_spill] sm:$0xff] }
 0x359   : > { %5674 = vmatprep.subr.bf16.mxu1 %v9684_v1 }
 0x35b   : > { %5622 = vmatpush1.bf16.msra.mxu0 %v9771_v36  ;;  %v9825_v36 = vld [vmem:[#allocation76_spill] sm:$0xff] }
 0x35c   : > { %5676 = vmatpush1.bf16.msra.mxu1 %v9772_v37  ;;  %5624 = vmatprep.subr.bf16.mxu0 %v9773_v38  ;;  %v9826_v37 = vld [vmem:[#allocation77_spill] sm:$0xff]  ;;  %v9827_v38 = vld [vmem:[#allocation78_spill] sm:$0xff] }
 0x35d   : > { %5677 = vmatprep.subr.bf16.mxu1 %v9684_v1 }
 0x35f   : > { %5626 = vmatpush1.bf16.msra.mxu0 %v9774_v49  ;;  %v9828_v49 = vld [vmem:[#allocation79_spill] sm:$0xff] }
 0x360   : > { %5679 = vmatpush1.bf16.msra.mxu1 %v9775_v2  ;;  %5628 = vmatprep.subr.bf16.mxu0 %v9776_v4  ;;  %v9829_v2 = vld [vmem:[#allocation80_spill] sm:$0xff]  ;;  %v9830_v4 = vld [vmem:[#allocation81_spill] sm:$0xff] }
 0x361   : > { %5680 = vmatprep.subr.bf16.mxu1 %v9684_v1 }
 0x363   : > { %5630 = vmatpush1.bf16.msra.mxu0 %v9777_v60  ;;  %v9831_v60 = vld [vmem:[#allocation82_spill] sm:$0xff] }
 0x364   : > { %5682 = vmatpush1.bf16.msra.mxu1 %v9778_v47  ;;  %5632 = vmatprep.subr.bf16.mxu0 %v9779_v21  ;;  %v9832_v47 = vld [vmem:[#allocation83_spill] sm:$0xff]  ;;  %v9833_v21 = vld [vmem:[#allocation84_spill] sm:$0xff] }
 0x365   : > { %5683 = vmatprep.subr.bf16.mxu1 %v9684_v1 }
 0x367   : > { %5634 = vmatpush1.bf16.msra.mxu0 %v9780_v17  ;;  %v9834_v17 = vld [vmem:[#allocation85_spill] sm:$0xff] }
 0x368   : > { %5685 = vmatpush1.bf16.msra.mxu1 %v9781_v18  ;;  %5636 = vmatprep.subr.bf16.mxu0 %v9782_v22  ;;  %v9835_v18 = vld [vmem:[#allocation86_spill] sm:$0xff]  ;;  %v9836_v22 = vld [vmem:[#allocation87_spill] sm:$0xff] }
 0x369   : > { %5686 = vmatprep.subr.bf16.mxu1 %v9684_v1 }
 0x36b   : > { %5638 = vmatpush1.bf16.msra.mxu0 %v9783_v19 }
 0x36c   : > { %5688 = vmatpush1.bf16.msra.mxu1 %v9784_v25  ;;  %5640 = vmatprep.subr.bf16.mxu0 %v9785_v55  ;;  %v3516_v25 = vld [vmem:[%s9447_s5 + $0xc8] sm:$0xff]  ;;  %v3493_v55 = vld [vmem:[%s9447_s5 + $0x10] sm:$0xff] }
 0x36d   : > { %5689 = vmatprep.subr.bf16.mxu1 %v9684_v1 }
 0x36f   : > { %5642 = vmatpush1.bf16.msra.mxu0 %v9786_v41  ;;  %v3494_v41 = vld [vmem:[%s9447_s5 + $0x18] sm:$0xff] }
 0x370   : > { %5691 = vmatpush1.bf16.msra.mxu1 %v9787_v23  ;;  %5644 = vmatprep.subr.bf16.mxu0 %v9788_v15  ;;  %v3517_v15 = vld [vmem:[%s9447_s5 + $0xd0] sm:$0xff] }
 0x371   : > { %5692 = vmatprep.subr.bf16.mxu1 %v9684_v1 }
 0x373   : > { %5646 = vmatpush1.bf16.msra.mxu0 %v9789_v10  ;;  %v3518_v10 = vld [vmem:[%s9447_s5 + $0xd8] sm:$0xff] }
 0x374   : > { %5694 = vmatpush1.bf16.msra.mxu1 %v9790_v61  ;;  %5648 = vmatprep.subr.bf16.mxu0 %v9791_v0  ;;  %v5849_v61 = vpack.c.bf16 %v3494_v41, %v3493_v55  ;;  %v5813_v0 = vpack.c.bf16 %v3518_v10, %v3517_v15  ;;  %v3513_v55 = vld [vmem:[%s9447_s5 + $0xb0] sm:$0xff]  ;;  %v3514_v41 = vld [vmem:[%s9447_s5 + $0xb8] sm:$0xff] }
 0x375   : > { %5695 = vmatprep.subr.bf16.mxu1 %v9684_v1  ;;  %v3537_v15 = vld [vmem:[%s9447_s5 + $0x170] sm:$0xff]  ;;  %v3538_v10 = vld [vmem:[%s9447_s5 + $0x178] sm:$0xff] }
 0x377   : > { %5650 = vmatpush1.bf16.msra.mxu0 %v9792_v48  ;;  %v3495_v48 = vld [vmem:[%s9447_s5 + $0x20] sm:$0xff] }
 0x378   : > { %5697 = vmatpush1.bf16.msra.mxu1 %v9793_v56  ;;  %5652 = vmatprep.subr.bf16.mxu0 %v9794_v62  ;;  %v3496_v56 = vld [vmem:[%s9447_s5 + $0x28] sm:$0xff]  ;;  %v3519_v62 = vld [vmem:[%s9447_s5 + $0xe0] sm:$0xff] }
 0x379   : > { %5698 = vmatprep.subr.bf16.mxu1 %v9684_v1 }
 0x37b   : > { %5654 = vmatpush1.bf16.msra.mxu0 %v8149_v44  ;;  %v9801_v44 = vld [vmem:[#allocation52_spill] sm:$0xff] }
 0x37c   : > { %5700 = vmatpush1.bf16.msra.mxu1 %v9795_v27  ;;  %5656 = vmatprep.subr.bf16.mxu0 %v9796_v53  ;;  %v3520_v27 = vld [vmem:[%s9447_s5 + $0xe8] sm:$0xff]  ;;  %v5852_v53 = vpack.c.bf16 %v3496_v56, %v3495_v48 }
 0x37d   : > { %5701 = vmatprep.subr.bf16.mxu1 %v9684_v1 }
 0x37f   : > { %5658 = vmatpush1.bf16.msra.mxu0 %v9797_v63  ;;  %v5816_v63 = vpack.c.bf16 %v3520_v27, %v3519_v62 }
 0x380   : > { %5703 = vmatpush1.bf16.msra.mxu1 %v9798_v30  ;;  %5705 = vmatprep.subr.bf16.mxu0 %v9799_v29  ;;  %v3497_v30 = vld [vmem:[%s9447_s5 + $0x30] sm:$0xff]  ;;  %v3498_v29 = vld [vmem:[%s9447_s5 + $0x38] sm:$0xff] }
 0x381   : > { %5764 = vmatprep.subr.bf16.mxu1 %v9684_v1 }
 0x382   : > { %3224 = vmatmul.mubr.f32.vlgmr.msra.gmra.mrb[10].mxu0 %v9800_v58 }
 0x383   : > { %3295 = vmatmul.mubr.f32.vlgmr.msra.gmra.mrb[10].mxu1 %v9800_v58  ;;  %5707 = vmatpush1.bf16.msra.mxu0 %v9801_v44  ;;  %v5855_v44 = vpack.c.bf16 %v3498_v29, %v3497_v30 }
 0x384   : > { %4562 = vmatprep.mubr.msk.f32.mxu0 %vm2488_vm2, %v3302_v16  ;;  %5766 = vmatpush1.bf16.msra.mxu1 %v9802_v52 }
 0x385   : > { %4563 = vmatprep.mubr.msk.f32.mxu1 %vm2488_vm2, %v3302_v16  ;;  %5709 = vmatprep.subr.bf16.mxu0 %v9803_v6  ;;  %v3522_v16 = vld [vmem:[%s9447_s5 + $0xf8] sm:$0xff]  ;;  %v3499_v6 = vld [vmem:[%s9447_s5 + $0x40] sm:$0xff] }
 0x386   : > { %5767 = vmatprep.subr.bf16.mxu1 %v9684_v1 }
 0x387   : > { %5711 = vmatpush1.bf16.msra.mxu0 %v9804_v28  ;;  %v3500_v28 = vld [vmem:[%s9447_s5 + $0x48] sm:$0xff] }
 0x388   : > { %5769 = vmatpush1.bf16.msra.mxu1 %v9805_v24  ;;  %5713 = vmatprep.subr.bf16.mxu0 %v9806_v20  ;;  %v3523_v24 = vld [vmem:[%s9447_s5 + $0x100] sm:$0xff]  ;;  %v3524_v20 = vld [vmem:[%s9447_s5 + $0x108] sm:$0xff] }
 0x389   : > { %5770 = vmatprep.subr.bf16.mxu1 %v9684_v1 }
 0x38b   : > { %5715 = vmatpush1.bf16.msra.mxu0 %v9807_v14  ;;  %v5858_v14 = vpack.c.bf16 %v3500_v28, %v3499_v6 }
 0x38c   : > { %5772 = vmatpush1.bf16.msra.mxu1 %v9808_v54  ;;  %5717 = vmatprep.subr.bf16.mxu0 %v9809_v45  ;;  %v5822_v54 = vpack.c.bf16 %v3524_v20, %v3523_v24  ;;  %v3501_v45 = vld [vmem:[%s9447_s5 + $0x50] sm:$0xff] }
 0x38d   : > { %5773 = vmatprep.subr.bf16.mxu1 %v9684_v1 }
 0x38f   : > { %5719 = vmatpush1.bf16.msra.mxu0 %v9810_v11  ;;  %v3502_v11 = vld [vmem:[%s9447_s5 + $0x58] sm:$0xff] }
 0x390   : > { %5775 = vmatpush1.bf16.msra.mxu1 %v9811_v12  ;;  %5721 = vmatprep.subr.bf16.mxu0 %v9812_v43  ;;  %v3525_v12 = vld [vmem:[%s9447_s5 + $0x110] sm:$0xff]  ;;  %v3526_v43 = vld [vmem:[%s9447_s5 + $0x118] sm:$0xff] }
 0x391   : > { %5776 = vmatprep.subr.bf16.mxu1 %v9684_v1 }
 0x393   : > { %5723 = vmatpush1.bf16.msra.mxu0 %v9813_v5  ;;  %v5861_v5 = vpack.c.bf16 %v3502_v11, %v3501_v45 }
 0x394   : > { %5778 = vmatpush1.bf16.msra.mxu1 %v9814_v32  ;;  %5725 = vmatprep.subr.bf16.mxu0 %v9815_v34  ;;  %v5825_v32 = vpack.c.bf16 %v3526_v43, %v3525_v12  ;;  %v3503_v34 = vld [vmem:[%s9447_s5 + $0x60] sm:$0xff] }
 0x395   : > { %5779 = vmatprep.subr.bf16.mxu1 %v9684_v1  ;;  %v3788_v43 = vld [vmem:[%s9447_s5 + $0x240] sm:$0xff] }
 0x397   : > { %5727 = vmatpush1.bf16.msra.mxu0 %v9816_v7  ;;  %v3504_v7 = vld [vmem:[%s9447_s5 + $0x68] sm:$0xff] }
 0x398   : > { %5781 = vmatpush1.bf16.msra.mxu1 %v9817_v50  ;;  %5729 = vmatprep.subr.bf16.mxu0 %v9818_v33  ;;  %v3527_v50 = vld [vmem:[%s9447_s5 + $0x120] sm:$0xff]  ;;  %v3528_v33 = vld [vmem:[%s9447_s5 + $0x128] sm:$0xff] }
 0x399   : > { %5782 = vmatprep.subr.bf16.mxu1 %v9684_v1 }
 0x39b   : > { %5731 = vmatpush1.bf16.msra.mxu0 %v9819_v3  ;;  %v5864_v3 = vpack.c.bf16 %v3504_v7, %v3503_v34  ;;  %v3689_v34 = vld [vmem:[%s9447_s5 + $0x188] sm:$0xff] }
 0x39c   : > { %5784 = vmatpush1.bf16.msra.mxu1 %v9820_v8  ;;  %5733 = vmatprep.subr.bf16.mxu0 %v9821_v9  ;;  %v5828_v8 = vpack.c.bf16 %v3528_v33, %v3527_v50  ;;  %v3505_v9 = vld [vmem:[%s9447_s5 + $0x70] sm:$0xff] }
 0x39d   : > { %5785 = vmatprep.subr.bf16.mxu1 %v9684_v1 }
 0x39f   : > { %5735 = vmatpush1.bf16.msra.mxu0 %v9822_v31  ;;  %v3506_v31 = vld [vmem:[%s9447_s5 + $0x78] sm:$0xff] }
 0x3a0   : > { %5787 = vmatpush1.bf16.msra.mxu1 %v9823_v35  ;;  %5737 = vmatprep.subr.bf16.mxu0 %v9824_v39  ;;  %v3529_v35 = vld [vmem:[%s9447_s5 + $0x130] sm:$0xff]  ;;  %v3530_v39 = vld [vmem:[%s9447_s5 + $0x138] sm:$0xff] }
 0x3a1   : > { %5788 = vmatprep.subr.bf16.mxu1 %v9684_v1 }
 0x3a3   : > { %5739 = vmatpush1.bf16.msra.mxu0 %v9825_v36  ;;  %v5867_v36 = vpack.c.bf16 %v3506_v31, %v3505_v9 }
 0x3a4   : > { %5790 = vmatpush1.bf16.msra.mxu1 %v9826_v37  ;;  %5741 = vmatprep.subr.bf16.mxu0 %v9827_v38  ;;  %v5831_v37 = vpack.c.bf16 %v3530_v39, %v3529_v35  ;;  %v3507_v38 = vld [vmem:[%s9447_s5 + $0x80] sm:$0xff] }
 0x3a5   : > { %5791 = vmatprep.subr.bf16.mxu1 %v9684_v1 }
 0x3a7   : > { %5743 = vmatpush1.bf16.msra.mxu0 %v9828_v49  ;;  %v3508_v49 = vld [vmem:[%s9447_s5 + $0x88] sm:$0xff] }
 0x3a8   : > { %5793 = vmatpush1.bf16.msra.mxu1 %v9829_v2  ;;  %5745 = vmatprep.subr.bf16.mxu0 %v9830_v4  ;;  %v3531_v2 = vld [vmem:[%s9447_s5 + $0x140] sm:$0xff]  ;;  %v3532_v4 = vld [vmem:[%s9447_s5 + $0x148] sm:$0xff] }
 0x3a9   : > { %5794 = vmatprep.subr.bf16.mxu1 %v9684_v1 }
 0x3ab   : > { %5747 = vmatpush1.bf16.msra.mxu0 %v9831_v60  ;;  %v5870_v60 = vpack.c.bf16 %v3508_v49, %v3507_v38 }
 0x3ac   : > { %5796 = vmatpush1.bf16.msra.mxu1 %v9832_v47  ;;  %5749 = vmatprep.subr.bf16.mxu0 %v9833_v21  ;;  %v5834_v47 = vpack.c.bf16 %v3532_v4, %v3531_v2  ;;  %v3509_v21 = vld [vmem:[%s9447_s5 + $0x90] sm:$0xff]  ;;  %v3792_v2 = vld [vmem:[%s9447_s5 + $0x260] sm:$0xff]  ;;  %v3793_v4 = vld [vmem:[%s9447_s5 + $0x268] sm:$0xff] }
 0x3ad   : > { %5797 = vmatprep.subr.bf16.mxu1 %v9684_v1 }
 0x3af   : > { %5751 = vmatpush1.bf16.msra.mxu0 %v9834_v17  ;;  %v3510_v17 = vld [vmem:[%s9447_s5 + $0x98] sm:$0xff] }
 0x3b0   : > { %5799 = vmatpush1.bf16.msra.mxu1 %v9835_v18  ;;  %5753 = vmatprep.subr.bf16.mxu0 %v9836_v22  ;;  %v5873_v18 = vpack.c.bf16 %v3510_v17, %v3509_v21  ;;  %v3533_v22 = vld [vmem:[%s9447_s5 + $0x150] sm:$0xff]  ;;  %v3693_v21 = vld [vmem:[%s9447_s5 + $0x1a8] sm:$0xff]  ;;  %v5924_v17 = vpack.c.bf16 %v3793_v4, %v3792_v2 }
 0x3b1   : > { %5800 = vmatprep.subr.bf16.mxu1 %v9684_v1  ;;  %v3989_v2 = vld [vmem:[%s9447_s5 + $0x3c8] sm:$0xff] }
 0x3b3   : > { %5755 = vmatpush1.bf16.msra.mxu0 %v8553_v40  ;;  %v3301_v40 = vrot.slane %v9800_v58, 1  ;;  %v3521_v58 = vld [vmem:[%s9447_s5 + $0xf0] sm:$0xff] }
 0x3b4   : > { %5802 = vmatpush1.bf16.msra.mxu1 %v8557_v59  ;;  %5757 = vmatprep.subr.bf16.mxu0 %v8559_v46  ;;  %v5819_v52 = vpack.c.bf16 %v3522_v16, %v3521_v58 }
 0x3b5   : > { %5803 = vmatprep.subr.bf16.mxu1 %v9684_v1 }
 0x3b7   : > { %5759 = vmatpush1.bf16.msra.mxu0 %v8581_v51 }
 0x3b8   : > { %5805 = vmatpush1.bf16.msra.mxu1 %v8585_v57  ;;  %5761 = vmatprep.subr.bf16.mxu0 %v8587_v42  ;;  %v3491_v57 = vld [vmem:[%s9447_s5] sm:$0xff] }
 0x3b9   : > { %5806 = vmatprep.subr.bf16.mxu1 %v9684_v1 }
 0x3bb   : > { %5763 = vmatpush1.bf16.msra.mxu0 %v8603_v26  ;;  %v3492_v26 = vld [vmem:[%s9447_s5 + $0x8] sm:$0xff] }
 0x3bc   : > { %5808 = vmatpush1.bf16.msra.mxu1 %v8607_v13  ;;  %5809 = vmatprep.subr.bf16.mxu0 %v9684_v1  ;;  %v3515_v13 = vld [vmem:[%s9447_s5 + $0xc0] sm:$0xff]  ;;  %v5846_v19 = vpack.c.bf16 %v3492_v26, %v3491_v57  ;;  %v3512_v57 = vld [vmem:[%s9447_s5 + $0xa8] sm:$0xff] }
 0x3bd   : > { %5845 = vmatprep.subr.bf16.mxu1 %v9684_v1  ;;  %v5810_v23 = vpack.c.bf16 %v3516_v25, %v3515_v13  ;;  %v3535_v13 = vld [vmem:[%s9447_s5 + $0x160] sm:$0xff] }
 0x3be   : > { %3371 = vmatmul.mubr.f32.vlgmr.msra.gmra.mrb[10].mxu0 %v3301_v40 }
 0x3bf   : > { %3442 = vmatmul.mubr.f32.vlgmr.msra.gmra.mrb[10].mxu1 %v3301_v40  ;;  %5811 = vmatpush1.bf16.msra.mxu0 %v5810_v23  ;;  %v3534_v40 = vld [vmem:[%s9447_s5 + $0x158] sm:$0xff]  ;;  %v5879_v23 = vpack.c.bf16 %v3514_v41, %v3513_v55  ;;  %v3697_v55 = vld [vmem:[%s9447_s5 + $0x1c8] sm:$0xff] }
 0x3c0   : > { %5847 = vmatpush1.bf16.msra.mxu1 %v5846_v19  ;;  %5812 = vmatprep.subr.bf16.mxu0 %v9684_v1  ;;  %v3536_v19 = vld [vmem:[%s9447_s5 + $0x168] sm:$0xff] }
 0x3c1   : > { %5848 = vmatprep.subr.bf16.mxu1 %v9684_v1  ;;  %v5840_v25 = vpack.c.bf16 %v3536_v19, %v3535_v13  ;;  %v3797_v13 = vld [vmem:[%s9447_s5 + $0x288] sm:$0xff] }
 0x3c3   : > { %5814 = vmatpush1.bf16.msra.mxu0 %v5813_v0 }
 0x3c4   : > { %5850 = vmatpush1.bf16.msra.mxu1 %v5849_v61  ;;  %5815 = vmatprep.subr.bf16.mxu0 %v9684_v1  ;;  %v5843_v61 = vpack.c.bf16 %v3538_v10, %v3537_v15  ;;  %v3799_v15 = vld [vmem:[%s9447_s5 + $0x298] sm:$0xff] }
 0x3c5   : > { %5851 = vmatprep.subr.bf16.mxu1 %v9684_v1 }
 0x3c7   : > { %5817 = vmatpush1.bf16.msra.mxu0 %v5816_v63  ;;  %v3450_v63 = vld [vmem:[%s9446_s4] sm:$0x3] }
 0x3c8   : > { %5853 = vmatpush1.bf16.msra.mxu1 %v5852_v53  ;;  %5818 = vmatprep.subr.bf16.mxu0 %v9684_v1 }
 0x3c9   : > { %5854 = vmatprep.subr.bf16.mxu1 %v9684_v1 }
 0x3cb   : > { %5820 = vmatpush1.bf16.msra.mxu0 %v5819_v52 }
 0x3cc   : > { %5856 = vmatpush1.bf16.msra.mxu1 %v5855_v44  ;;  %5821 = vmatprep.subr.bf16.mxu0 %v9684_v1  ;;  %v9837_v44 = vld [vmem:[#allocation22_spill] sm:$0xff] }
 0x3cd   : > { %5857 = vmatprep.subr.bf16.mxu1 %v9684_v1  ;;  %v9838_v52 = vsub.s32 1, %v9837_v44 }
 0x3cf   : > { %5823 = vmatpush1.bf16.msra.mxu0 %v5822_v54  ;;  %v3484_v6 = vrot.slane %v3450_v63, %v9838_v52  ;;  %v3703_v52 = vld [vmem:[%s9447_s5 + $0x1f8] sm:$0xff] }
 0x3d0   : > { %5859 = vmatpush1.bf16.msra.mxu1 %v5858_v14  ;;  %5824 = vmatprep.subr.bf16.mxu0 %v9684_v1  ;;  %v9839_v14 = vsub.s32 0, %v9837_v44  ;;  %v3702_v44 = vld [vmem:[%s9447_s5 + $0x1f0] sm:$0xff] }
 0x3d1   : > { %5860 = vmatprep.subr.bf16.mxu1 %v9684_v1 }
 0x3d2   : > { %v3480_v54 = vrot.slane %v3450_v63, %v9839_v14  ;;  %v3701_v63 = vld [vmem:[%s9447_s5 + $0x1e8] sm:$0xff]  ;;  %v3704_v14 = vld [vmem:[%s9447_s5 + $0x200] sm:$0xff] }
 0x3d3   : > { %5826 = vmatpush1.bf16.msra.mxu0 %v5825_v32 }
 0x3d4   : > { %5862 = vmatpush1.bf16.msra.mxu1 %v5861_v5  ;;  %5827 = vmatprep.subr.bf16.mxu0 %v9684_v1 }
 0x3d5   : > { %5863 = vmatprep.subr.bf16.mxu1 %v9684_v1 }
 0x3d7   : > { %5829 = vmatpush1.bf16.msra.mxu0 %v5828_v8  ;;  %v3791_v8 = vld [vmem:[%s9447_s5 + $0x258] sm:$0xff] }
 0x3d8   : > { %5865 = vmatpush1.bf16.msra.mxu1 %v5864_v3  ;;  %5830 = vmatprep.subr.bf16.mxu0 %v9684_v1  ;;  %v3790_v3 = vld [vmem:[%s9447_s5 + $0x250] sm:$0xff] }
 0x3d9   : > { %5866 = vmatprep.subr.bf16.mxu1 %v9684_v1  ;;  %v5921_v49 = vpack.c.bf16 %v3791_v8, %v3790_v3  ;;  %v3708_v3 = vld [vmem:[%s9447_s5 + $0x220] sm:$0xff]  ;;  %v3709_v8 = vld [vmem:[%s9447_s5 + $0x228] sm:$0xff] }
 0x3db   : > { %5832 = vmatpush1.bf16.msra.mxu0 %v5831_v37  ;;  %v3691_v37 = vld [vmem:[%s9447_s5 + $0x198] sm:$0xff] }
 0x3dc   : > { %5868 = vmatpush1.bf16.msra.mxu1 %v5867_v36  ;;  %5833 = vmatprep.subr.bf16.mxu0 %v9684_v1  ;;  %v3690_v36 = vld [vmem:[%s9447_s5 + $0x190] sm:$0xff] }
 0x3dd   : > { %v8815_v46 = vpop.f32.mrb[8].mxu0  ;;  %5869 = vmatprep.subr.bf16.mxu1 %v9684_v1 }
 0x3de   : > { %v3011_v59 = vpop.f32.mrb[8].mxu1  ;;  %v8817_v51 = vpop.f32.mrb[9].mxu0 }
 0x3df   : > { %3455 = vrot.lane.b32.xlu1 %v3011_v59, %s6196_s26  ;;  %v3013_v42 = vpop.f32.mrb[9].mxu1  ;;  %3453 = vrot.lane.b32.xlu0 %v8817_v51, %s6196_s26  ;;  %v5837_v59 = vpack.c.bf16 %v3534_v40, %v3533_v22  ;;  %v3795_v22 = vld [vmem:[%s9447_s5 + $0x278] sm:$0xff] }
 0x3e0   : > { %5871 = vmatpush1.bf16.msra.mxu1 %v5870_v60  ;;  %5835 = vmatpush1.bf16.msra.mxu0 %v5834_v47  ;;  %v3511_v42 = vld [vmem:[%s9447_s5 + $0xa0] sm:$0xff]  ;;  %v5885_v60 = vpack.c.bf16 %v3691_v37, %v3690_v36  ;;  %v3710_v36 = vld [vmem:[%s9447_s5 + $0x230] sm:$0xff]  ;;  %v3711_v37 = vld [vmem:[%s9447_s5 + $0x238] sm:$0xff] }
 0x3e1   : > { %5872 = vmatprep.subr.bf16.mxu1 %v9684_v1  ;;  %5836 = vmatprep.subr.bf16.mxu0 %v9684_v1  ;;  %v5876_v26 = vpack.c.bf16 %v3512_v57, %v3511_v42  ;;  %v3692_v47 = vld [vmem:[%s9447_s5 + $0x1a0] sm:$0xff]  ;;  %v3695_v42 = vld [vmem:[%s9447_s5 + $0x1b8] sm:$0xff]  ;;  %v5915_v4 = vpack.c.bf16 %v3711_v37, %v3710_v36 }
 0x3e2   : > { %v5888_v40 = vpack.c.bf16 %v3693_v21, %v3692_v47  ;;  %v3889_v47 = vld [vmem:[%s9447_s5 + $0x308] sm:$0xff]  ;;  %v4007_v36 = vld [vmem:[%s9447_s5 + $0x458] sm:$0xff] }
 0x3e4   : > { %5874 = vmatpush1.bf16.msra.mxu1 %v5873_v18  ;;  %5838 = vmatpush1.bf16.msra.mxu0 %v5837_v59  ;;  %v3794_v18 = vld [vmem:[%s9447_s5 + $0x270] sm:$0xff] }
 0x3e5   : > { %5875 = vmatprep.subr.bf16.mxu1 %v9684_v1  ;;  %5839 = vmatprep.subr.bf16.mxu0 %v9684_v1  ;;  %v3694_v59 = vld [vmem:[%s9447_s5 + $0x1b0] sm:$0xff]  ;;  %v5927_v57 = vpack.c.bf16 %v3795_v22, %v3794_v18  ;;  %v3991_v22 = vld [vmem:[%s9447_s5 + $0x3d8] sm:$0xff] }
 0x3e6   : > { %v5891_v19 = vpack.c.bf16 %v3695_v42, %v3694_v59  ;;  %v3990_v18 = vld [vmem:[%s9447_s5 + $0x3d0] sm:$0xff] }
 0x3e8   : > { %5877 = vmatpush1.bf16.msra.mxu1 %v5876_v26  ;;  %5841 = vmatpush1.bf16.msra.mxu0 %v5840_v25  ;;  %v3796_v26 = vld [vmem:[%s9447_s5 + $0x280] sm:$0xff] }
 0x3e9   : > { %5878 = vmatprep.subr.bf16.mxu1 %v9684_v1  ;;  %5842 = vmatprep.subr.bf16.mxu0 %v9684_v1  ;;  %v3696_v25 = vld [vmem:[%s9447_s5 + $0x1c0] sm:$0xff]  ;;  %v5930_v41 = vpack.c.bf16 %v3797_v13, %v3796_v26  ;;  %v3891_v26 = vld [vmem:[%s9447_s5 + $0x318] sm:$0xff] }
 0x3ea   : > { %v5894_v10 = vpack.c.bf16 %v3697_v55, %v3696_v25  ;;  %v3992_v25 = vld [vmem:[%s9447_s5 + $0x3e0] sm:$0xff]  ;;  %v3993_v55 = vld [vmem:[%s9447_s5 + $0x3e8] sm:$0xff] }
 0x3ec   : > { %5880 = vmatpush1.bf16.msra.mxu1 %v5879_v23  ;;  %5844 = vmatpush1.bf16.msra.mxu0 %v5843_v61  ;;  %v3798_v23 = vld [vmem:[%s9447_s5 + $0x290] sm:$0xff] }
 0x3ed   : > { %5917 = vmatprep.subr.bf16.mxu1 %v9684_v1  ;;  %5881 = vmatprep.subr.bf16.mxu0 %v9684_v1  ;;  %v3698_v61 = vld [vmem:[%s9447_s5 + $0x1d0] sm:$0xff] }
 0x451   : > { %v3456_v27 = vpop.permute.xlu1 %3455  ;;  %v3454_v53 = vpop.permute.xlu0 %3453 }
 0x452   : > { %v3458_v30 = vsel %vm3457_vm3, %v3454_v53, %v3456_v27  ;;  %v3462_v16 = vmax.f32 %v8817_v51, %v3456_v27  ;;  %v3789_v51 = vld [vmem:[%s9447_s5 + $0x248] sm:$0xff]  ;;  %v3700_v53 = vld [vmem:[%s9447_s5 + $0x1e0] sm:$0xff] }
 0x453   : > { %v3461_v20 = vmax.f32 %v8815_v46, %v3458_v30  ;;  %v3688_v46 = vld [vmem:[%s9447_s5 + $0x180] sm:$0xff]  ;;  %v5918_v50 = vpack.c.bf16 %v3789_v51, %v3788_v43  ;;  %v3706_v51 = vld [vmem:[%s9447_s5 + $0x210] sm:$0xff] }
 0x454   : > { %v5882_v35 = vpack.c.bf16 %v3689_v34, %v3688_v46  ;;  %v3808_v46 = vld [vmem:[%s9447_s5 + $0x2e0] sm:$0xff]  ;;  %v3809_v34 = vld [vmem:[%s9447_s5 + $0x2e8] sm:$0xff] }
 0x491   : > { %v3372_v0 = vpop.f32.mrb[10].mxu0 }
 0x492   : > { %v3443_v48 = vpop.f32.mrb[10].mxu1  ;;  %v3374_v56 = vpop.f32.mrb[11].mxu0 }
 0x493   : > { %3467 = vrot.lane.b32.xlu1 %v3443_v48, %s6196_s26  ;;  %v3445_v62 = vpop.f32.mrb[11].mxu1  ;;  %3465 = vrot.lane.b32.xlu0 %v3374_v56, %s6196_s26  ;;  %v5933_v48 = vpack.c.bf16 %v3799_v15, %v3798_v23  ;;  %v3893_v23 = vld [vmem:[%s9447_s5 + $0x328] sm:$0xff]  ;;  %v5996_v15 = vpack.c.bf16 %v3993_v55, %v3992_v25  ;;  %v4091_v55 = vld [vmem:[%s9449_s7] sm:$0xff] }
 0x494   : > { %v3801_v62 = vld [vmem:[%s9447_s5 + $0x2a8] sm:$0xff] }
 0x505   : > { %v3468_v29 = vpop.permute.xlu1 %3467  ;;  %v3466_v58 = vpop.permute.xlu0 %3465 }
 0x506   : > { %v3473_v28 = vmax.f32 %v3374_v56, %v3468_v29  ;;  %v3469_v24 = vsel %vm3457_vm3, %v3466_v58, %v3468_v29  ;;  %v3800_v56 = vld [vmem:[%s9447_s5 + $0x2a0] sm:$0xff]  ;;  %v3802_v29 = vld [vmem:[%s9447_s5 + $0x2b0] sm:$0xff]  ;;  %v3803_v58 = vld [vmem:[%s9447_s5 + $0x2b8] sm:$0xff] }
 0x507   : > { %v3472_v45 = vmax.f32 %v3372_v0, %v3469_v24  ;;  %v3699_v0 = vld [vmem:[%s9447_s5 + $0x1d8] sm:$0xff]  ;;  %v5936_v30 = vpack.c.bf16 %v3801_v62, %v3800_v56  ;;  %v3805_v24 = vld [vmem:[%s9447_s5 + $0x2c8] sm:$0xff] }
 0x508   : > { %v3475_v11 = vmax.f32 %v3462_v16, %v3473_v28  ;;  %v5897_v27 = vpack.c.bf16 %v3699_v0, %v3698_v61  ;;  %v5900_v16 = vpack.c.bf16 %v3701_v63, %v3700_v53  ;;  %v3804_v28 = vld [vmem:[%s9447_s5 + $0x2c0] sm:$0xff]  ;;  %v3995_v61 = vld [vmem:[%s9447_s5 + $0x3f8] sm:$0xff]  ;;  %v3997_v53 = vld [vmem:[%s9447_s5 + $0x408] sm:$0xff] }
 0x509   : > { %v3474_v12 = vmax.f32 %v3461_v20, %v3472_v45  ;;  %v5903_v20 = vpack.c.bf16 %v3703_v52, %v3702_v44  ;;  %v5942_v45 = vpack.c.bf16 %v3805_v24, %v3804_v28  ;;  %v3895_v56 = vld [vmem:[%s9447_s5 + $0x338] sm:$0xff] }
 0x50a   : > { %v3488_v5 = vadd.f32 %v3484_v6, %v3475_v11  ;;  %v5939_v6 = vpack.c.bf16 %v3803_v58, %v3802_v29  ;;  %v3806_v11 = vld [vmem:[%s9447_s5 + $0x2d0] sm:$0xff]  ;;  %v3897_v29 = vld [vmem:[%s9447_s5 + $0x348] sm:$0xff]  ;;  %v3999_v44 = vld [vmem:[%s9447_s5 + $0x418] sm:$0xff] }
 0x50b   : > { %v3487_v32 = vadd.f32 %v3480_v54, %v3474_v12  ;;  %v3705_v54 = vld [vmem:[%s9447_s5 + $0x208] sm:$0xff]  ;;  %v3807_v12 = vld [vmem:[%s9447_s5 + $0x2d8] sm:$0xff] }
 0x50c   : > { %v9015_v7 = vmax.f32 %v3488_v5, 0.0  ;;  %v5906_v43 = vpack.c.bf16 %v3705_v54, %v3704_v14  ;;  %v3707_v5 = vld [vmem:[%s9447_s5 + $0x218] sm:$0xff]  ;;  %v4001_v14 = vld [vmem:[%s9447_s5 + $0x428] sm:$0xff] }
 0x50d   : > { %v9017_v33 = vmax.f32 %v3487_v32, 0.0  ;;  %v5945_v32 = vpack.c.bf16 %v3807_v12, %v3806_v11  ;;  %v3899_v28 = vld [vmem:[%s9447_s5 + $0x358] sm:$0xff]  ;;  %v3901_v11 = vld [vmem:[%s9447_s5 + $0x368] sm:$0xff] }
 0x50e   : > { %4565 = vmatprep.mubr.msk.f32.mxu1 %vm3457_vm3, %v9015_v7  ;;  %v3542_v9 = vrot.slane %v9015_v7, 1  ;;  %v3813_v31 = vrot.slane %v9015_v7, 3  ;;  %v3713_v38 = vrot.slane %v9015_v7, 2  ;;  %v3913_v13 = vrot.slane %v9015_v7, 4 }
 0x50f   : > { %3683 = vmatmul.mubr.f32.vlgmr.msra.gmra.mrb[12].mxu1 %v9017_v33  ;;  %v3541_v39 = vrot.slane %v9017_v33, 1  ;;  %v3712_v42 = vrot.slane %v9017_v33, 2  ;;  %v3912_v25 = vrot.slane %v9017_v33, 4 }
 0x510   : > { %4564 = vmatprep.mubr.msk.f32.mxu0 %vm3457_vm3, %v3542_v9  ;;  %5919 = vmatpush1.bf16.msra.mxu1 %v5918_v50  ;;  %v5909_v50 = vpack.c.bf16 %v3707_v5, %v3706_v51  ;;  %v5948_v9 = vpack.c.bf16 %v3809_v34, %v3808_v46  ;;  %v4003_v51 = vld [vmem:[%s9447_s5 + $0x438] sm:$0xff] }
 0x511   : > { %4567 = vmatprep.mubr.msk.f32.mxu1 %vm3457_vm3, %v3813_v31  ;;  %3611 = vmatmul.mubr.f32.vlgmr.msra.gmra.mrb[12].mxu0 %v3541_v39  ;;  %v3810_v31 = vld [vmem:[%s9447_s5 + $0x2f0] sm:$0xff]  ;;  %v5912_v39 = vpack.c.bf16 %v3709_v8, %v3708_v3  ;;  %v3903_v46 = vld [vmem:[%s9447_s5 + $0x378] sm:$0xff]  ;;  %v4005_v3 = vld [vmem:[%s9447_s5 + $0x448] sm:$0xff] }
 0x512   : > { %5883 = vmatpush1.bf16.msra.mxu0 %v5882_v35  ;;  %4566 = vmatprep.mubr.msk.f32.mxu0 %vm3457_vm3, %v3713_v38  ;;  %v3811_v35 = vld [vmem:[%s9447_s5 + $0x2f8] sm:$0xff] }
 0x513   : > { %5920 = vmatprep.subr.bf16.mxu1 %v9684_v1  ;;  %5884 = vmatprep.subr.bf16.mxu0 %v9684_v1  ;;  %v5951_v38 = vpack.c.bf16 %v3811_v35, %v3810_v31  ;;  %v3905_v31 = vld [vmem:[%s9447_s5 + $0x388] sm:$0xff] }
 0x514   : > { %5922 = vmatpush1.bf16.msra.mxu1 %v5921_v49  ;;  %v3988_v49 = vld [vmem:[%s9447_s5 + $0x3c0] sm:$0xff] }
 0x515   : > { %5923 = vmatprep.subr.bf16.mxu1 %v9684_v1  ;;  %v5990_v21 = vpack.c.bf16 %v3989_v2, %v3988_v49  ;;  %v3907_v49 = vld [vmem:[%s9447_s5 + $0x398] sm:$0xff] }
 0x516   : > { %5886 = vmatpush1.bf16.msra.mxu0 %v5885_v60  ;;  %v3888_v60 = vld [vmem:[%s9447_s5 + $0x300] sm:$0xff] }
 0x517   : > { %5887 = vmatprep.subr.bf16.mxu0 %v9684_v1  ;;  %v5954_v59 = vpack.c.bf16 %v3889_v47, %v3888_v60  ;;  %v4009_v60 = vld [vmem:[%s9447_s5 + $0x468] sm:$0xff] }
 0x518   : > { %5925 = vmatpush1.bf16.msra.mxu1 %v5924_v17  ;;  %v3812_v17 = vrot.slane %v9017_v33, 3 }
 0x519   : > { %5926 = vmatprep.subr.bf16.mxu1 %v9684_v1 }
 0x51a   : > { %5889 = vmatpush1.bf16.msra.mxu0 %v5888_v40  ;;  %v4013_v40 = vrot.slane %v9015_v7, 5  ;;  %v3892_v7 = vld [vmem:[%s9447_s5 + $0x320] sm:$0xff] }
 0x51b   : > { %5890 = vmatprep.subr.bf16.mxu0 %v9684_v1  ;;  %v5960_v0 = vpack.c.bf16 %v3893_v23, %v3892_v7  ;;  %v4093_v23 = vld [vmem:[%s9449_s7 + $0x10] sm:$0xff] }
 0x51c   : > { %5928 = vmatpush1.bf16.msra.mxu1 %v5927_v57  ;;  %v3890_v57 = vld [vmem:[%s9447_s5 + $0x310] sm:$0xff] }
 0x51d   : > { %5929 = vmatprep.subr.bf16.mxu1 %v9684_v1 }
 0x51e   : > { %5892 = vmatpush1.bf16.msra.mxu0 %v5891_v19  ;;  %v5993_v19 = vpack.c.bf16 %v3991_v22, %v3990_v18  ;;  %v4010_v22 = vld [vmem:[%s9447_s5 + $0x470] sm:$0xff] }
 0x51f   : > { %5893 = vmatprep.subr.bf16.mxu0 %v9684_v1 }
 0x520   : > { %5931 = vmatpush1.bf16.msra.mxu1 %v5930_v41  ;;  %v5957_v41 = vpack.c.bf16 %v3891_v26, %v3890_v57  ;;  %v3911_v57 = vld [vmem:[%s9447_s5 + $0x3b8] sm:$0xff] }
 0x521   : > { %5932 = vmatprep.subr.bf16.mxu1 %v9684_v1 }
 0x522   : > { %5895 = vmatpush1.bf16.msra.mxu0 %v5894_v10  ;;  %v3994_v10 = vld [vmem:[%s9447_s5 + $0x3f0] sm:$0xff] }
 0x523   : > { %5896 = vmatprep.subr.bf16.mxu0 %v9684_v1  ;;  %v5999_v62 = vpack.c.bf16 %v3995_v61, %v3994_v10  ;;  %v4095_v10 = vld [vmem:[%s9449_s7 + $0x20] sm:$0xff]  ;;  %v4096_v61 = vld [vmem:[%s9449_s7 + $0x28] sm:$0xff] }
 0x524   : > { %5934 = vmatpush1.bf16.msra.mxu1 %v5933_v48  ;;  %v3894_v48 = vld [vmem:[%s9447_s5 + $0x330] sm:$0xff] }
 0x525   : > { %5935 = vmatprep.subr.bf16.mxu1 %v9684_v1  ;;  %v5963_v63 = vpack.c.bf16 %v3895_v56, %v3894_v48  ;;  %v4097_v48 = vld [vmem:[%s9449_s7 + $0x30] sm:$0xff]  ;;  %v4098_v56 = vld [vmem:[%s9449_s7 + $0x38] sm:$0xff] }
 0x526   : > { %5898 = vmatpush1.bf16.msra.mxu0 %v5897_v27  ;;  %v3996_v27 = vld [vmem:[%s9447_s5 + $0x400] sm:$0xff] }
 0x527   : > { %5899 = vmatprep.subr.bf16.mxu0 %v9684_v1  ;;  %v6002_v58 = vpack.c.bf16 %v3997_v53, %v3996_v27  ;;  %v9840_v27 = vmov 0.0  }
 0x528   : > { %5937 = vmatpush1.bf16.msra.mxu1 %v5936_v30  ;;  %v3896_v30 = vld [vmem:[%s9447_s5 + $0x340] sm:$0xff] }
 0x529   : > { %5938 = vmatprep.subr.bf16.mxu1 %v9684_v1  ;;  %v5966_v52 = vpack.c.bf16 %v3897_v29, %v3896_v30 }
 0x52a   : > { %5901 = vmatpush1.bf16.msra.mxu0 %v5900_v16  ;;  %v3998_v16 = vld [vmem:[%s9447_s5 + $0x410] sm:$0xff] }
 0x52b   : > { %5902 = vmatprep.subr.bf16.mxu0 %v9684_v1  ;;  %v6005_v24 = vpack.c.bf16 %v3999_v44, %v3998_v16 }
 0x52c   : > { %5940 = vmatpush1.bf16.msra.mxu1 %v5939_v6  ;;  %v3898_v6 = vld [vmem:[%s9447_s5 + $0x350] sm:$0xff] }
 0x52d   : > { %5941 = vmatprep.subr.bf16.mxu1 %v9684_v1  ;;  %v5969_v54 = vpack.c.bf16 %v3899_v28, %v3898_v6 }
 0x52e   : > { %5904 = vmatpush1.bf16.msra.mxu0 %v5903_v20  ;;  %v4000_v20 = vld [vmem:[%s9447_s5 + $0x420] sm:$0xff] }
 0x52f   : > { %5905 = vmatprep.subr.bf16.mxu0 %v9684_v1  ;;  %v6008_v12 = vpack.c.bf16 %v4001_v14, %v4000_v20 }
 0x530   : > { %5943 = vmatpush1.bf16.msra.mxu1 %v5942_v45  ;;  %v3900_v45 = vld [vmem:[%s9447_s5 + $0x360] sm:$0xff] }
 0x531   : > { %5944 = vmatprep.subr.bf16.mxu1 %v9684_v1  ;;  %v5972_v5 = vpack.c.bf16 %v3901_v11, %v3900_v45  ;;  %v4088_v11 = vld [vmem:[%s9448_s6] sm:$0x1] }
 0x532   : > { %5907 = vmatpush1.bf16.msra.mxu0 %v5906_v43  ;;  %v4002_v43 = vld [vmem:[%s9447_s5 + $0x430] sm:$0xff] }
 0x533   : > { %5908 = vmatprep.subr.bf16.mxu0 %v9684_v1  ;;  %v6011_v34 = vpack.c.bf16 %v4003_v51, %v4002_v43 }
 0x534   : > { %5946 = vmatpush1.bf16.msra.mxu1 %v5945_v32  ;;  %v3902_v32 = vld [vmem:[%s9447_s5 + $0x370] sm:$0xff] }
 0x535   : > { %5947 = vmatprep.subr.bf16.mxu1 %v9684_v1  ;;  %v5975_v8 = vpack.c.bf16 %v3903_v46, %v3902_v32 }
 0x536   : > { %5910 = vmatpush1.bf16.msra.mxu0 %v5909_v50  ;;  %v4004_v50 = vld [vmem:[%s9447_s5 + $0x440] sm:$0xff] }
 0x537   : > { %5911 = vmatprep.subr.bf16.mxu0 %v9684_v1  ;;  %v6014_v35 = vpack.c.bf16 %v4005_v3, %v4004_v50 }
 0x538   : > { %5949 = vmatpush1.bf16.msra.mxu1 %v5948_v9  ;;  %v3904_v9 = vld [vmem:[%s9447_s5 + $0x380] sm:$0xff] }
 0x539   : > { %5950 = vmatprep.subr.bf16.mxu1 %v9684_v1  ;;  %v5978_v37 = vpack.c.bf16 %v3905_v31, %v3904_v9 }
 0x53a   : > { %5913 = vmatpush1.bf16.msra.mxu0 %v5912_v39  ;;  %v4006_v39 = vld [vmem:[%s9447_s5 + $0x450] sm:$0xff] }
 0x53b   : > { %5914 = vmatprep.subr.bf16.mxu0 %v9684_v1  ;;  %v6017_v2 = vpack.c.bf16 %v4007_v36, %v4006_v39 }
 0x53c   : > { %5952 = vmatpush1.bf16.msra.mxu1 %v5951_v38  ;;  %v3906_v38 = vld [vmem:[%s9447_s5 + $0x390] sm:$0xff] }
 0x53d   : > { %5989 = vmatprep.subr.bf16.mxu1 %v9684_v1  ;;  %v5981_v47 = vpack.c.bf16 %v3907_v49, %v3906_v38 }
 0x53e   : > { %5916 = vmatpush1.bf16.msra.mxu0 %v5915_v4  ;;  %v4008_v4 = vld [vmem:[%s9447_s5 + $0x460] sm:$0xff] }
 0x53f   : > { %3882 = vmatmul.mubr.f32.vlgmr.msra.gmra.mrb[14].mxu1 %v3812_v17  ;;  %5953 = vmatprep.subr.bf16.mxu0 %v9684_v1  ;;  %v3909_v17 = vld [vmem:[%s9447_s5 + $0x3a8] sm:$0xff]  ;;  %v6020_v18 = vpack.c.bf16 %v4009_v60, %v4008_v4 }
 0x540   : > { %5991 = vmatpush1.bf16.msra.mxu1 %v5990_v21  ;;  %4569 = vmatprep.mubr.msk.f32.mxu1 %vm3457_vm3, %v4013_v40  ;;  %v3908_v21 = vld [vmem:[%s9447_s5 + $0x3a0] sm:$0xff]  ;;  %v4011_v40 = vld [vmem:[%s9447_s5 + $0x478] sm:$0xff] }
 0x541   : > { %3782 = vmatmul.mubr.f32.vlgmr.msra.gmra.mrb[14].mxu0 %v3712_v42  ;;  %5992 = vmatprep.subr.bf16.mxu1 %v9684_v1  ;;  %v3910_v42 = vld [vmem:[%s9447_s5 + $0x3b0] sm:$0xff]  ;;  %v6023_v26 = vpack.c.bf16 %v4011_v40, %v4010_v22 }
 0x542   : > { %5955 = vmatpush1.bf16.msra.mxu0 %v5954_v59  ;;  %4568 = vmatprep.mubr.msk.f32.mxu0 %vm3457_vm3, %v3913_v13  ;;  %v5984_v59 = vpack.c.bf16 %v3909_v17, %v3908_v21  ;;  %v5987_v13 = vpack.c.bf16 %v3911_v57, %v3910_v42 }
 0x543   : > { %5956 = vmatprep.subr.bf16.mxu0 %v9684_v1 }
 0x544   : > { %5994 = vmatpush1.bf16.msra.mxu1 %v5993_v19  ;;  %v4012_v19 = vrot.slane %v9017_v33, 5  ;;  %v4094_v33 = vld [vmem:[%s9449_s7 + $0x18] sm:$0xff] }
 0x545   : > { %5995 = vmatprep.subr.bf16.mxu1 %v9684_v1 }
 0x546   : > { %5958 = vmatpush1.bf16.msra.mxu0 %v5957_v41  ;;  %v4092_v41 = vld [vmem:[%s9449_s7 + $0x8] sm:$0xff] }
 0x547   : > { %5959 = vmatprep.subr.bf16.mxu0 %v9684_v1  ;;  %v6026_v7 = vpack.c.bf16 %v4092_v41, %v4091_v55 }
 0x548   : > { %5997 = vmatpush1.bf16.msra.mxu1 %v5996_v15  ;;  %v6029_v15 = vpack.c.bf16 %v4094_v33, %v4093_v23 }
 0x549   : > { %5998 = vmatprep.subr.bf16.mxu1 %v9684_v1 }
 0x54a   : > { %5961 = vmatpush1.bf16.msra.mxu0 %v5960_v0  ;;  %v6032_v0 = vpack.c.bf16 %v4096_v61, %v4095_v10 }
 0x54b   : > { %5962 = vmatprep.subr.bf16.mxu0 %v9684_v1 }
 0x54c   : > { %6000 = vmatpush1.bf16.msra.mxu1 %v5999_v62  ;;  %v6035_v62 = vpack.c.bf16 %v4098_v56, %v4097_v48 }
 0x54d   : > { %6001 = vmatprep.subr.bf16.mxu1 %v9684_v1 }
 0x54e   : > { %5964 = vmatpush1.bf16.msra.mxu0 %v5963_v63 }
 0x54f   : > { %5965 = vmatprep.subr.bf16.mxu0 %v9684_v1 }
 0x550   : > { %6003 = vmatpush1.bf16.msra.mxu1 %v6002_v58 }
 0x551   : > { %6004 = vmatprep.subr.bf16.mxu1 %v9684_v1 }
 0x552   : > { %5967 = vmatpush1.bf16.msra.mxu0 %v5966_v52 }
 0x553   : > { %5968 = vmatprep.subr.bf16.mxu0 %v9684_v1 }
 0x554   : > { %6006 = vmatpush1.bf16.msra.mxu1 %v6005_v24 }
 0x555   : > { %6007 = vmatprep.subr.bf16.mxu1 %v9684_v1 }
 0x556   : > { %5970 = vmatpush1.bf16.msra.mxu0 %v5969_v54 }
 0x557   : > { %5971 = vmatprep.subr.bf16.mxu0 %v9684_v1 }
 0x558   : > { %6009 = vmatpush1.bf16.msra.mxu1 %v6008_v12 }
 0x559   : > { %6010 = vmatprep.subr.bf16.mxu1 %v9684_v1 }
 0x55a   : > { %5973 = vmatpush1.bf16.msra.mxu0 %v5972_v5  ;;  %v4099_v5 = vld [vmem:[%s9450_s8] sm:$0x1] }
 0x55b   : > { %5974 = vmatprep.subr.bf16.mxu0 %v9684_v1 }
 0x55c   : > { %6012 = vmatpush1.bf16.msra.mxu1 %v6011_v34 }
 0x55d   : > { %6013 = vmatprep.subr.bf16.mxu1 %v9684_v1 }
 0x55e   : > { %5976 = vmatpush1.bf16.msra.mxu0 %v5975_v8 }
 0x55f   : > { %5977 = vmatprep.subr.bf16.mxu0 %v9684_v1 }
 0x560   : > { %6015 = vmatpush1.bf16.msra.mxu1 %v6014_v35 }
 0x561   : > { %6016 = vmatprep.subr.bf16.mxu1 %v9684_v1 }
 0x562   : > { %5979 = vmatpush1.bf16.msra.mxu0 %v5978_v37 }
 0x563   : > { %5980 = vmatprep.subr.bf16.mxu0 %v9684_v1 }
 0x564   : > { %6018 = vmatpush1.bf16.msra.mxu1 %v6017_v2 }
 0x565   : > { %6019 = vmatprep.subr.bf16.mxu1 %v9684_v1 }
 0x566   : > { %5982 = vmatpush1.bf16.msra.mxu0 %v5981_v47 }
 0x567   : > { %5983 = vmatprep.subr.bf16.mxu0 %v9684_v1 }
 0x568   : > { %6021 = vmatpush1.bf16.msra.mxu1 %v6020_v18 }
 0x569   : > { %6022 = vmatprep.subr.bf16.mxu1 %v9684_v1 }
 0x56a   : > { %5985 = vmatpush1.bf16.msra.mxu0 %v5984_v59 }
 0x56b   : > { %5986 = vmatprep.subr.bf16.mxu0 %v9684_v1 }
 0x56c   : > { %6024 = vmatpush1.bf16.msra.mxu1 %v6023_v26 }
 0x56e   : > { %5988 = vmatpush1.bf16.msra.mxu0 %v5987_v13 }
 0x56f   : > { %4082 = vmatmul.mubr.f32.vlgmr.msra.gmra.mrb[16].mxu1 %v4012_v19  ;;  %6025 = vmatprep.subr.bf16.mxu0 %v9684_v1 }
 0x571   : > { %3982 = vmatmul.mubr.f32.vlgmr.msra.gmra.mrb[16].mxu0 %v3912_v25 }
 0x572   : > { %6027 = vmatpush3.bf16.msra.mxu0 %v6026_v7  ;;  %4600 = vmatprep.mubr.msk.f32.mxu0 %vm6197_vm4, %v9840_v27 }
 0x573   : > { %6028 = vmatprep.subr.bf16.mxu0 %v9684_v1 }
 0x576   : > { %6030 = vmatpush3.bf16.msra.mxu0 %v6029_v15 }
 0x577   : > { %6031 = vmatprep.subr.bf16.mxu0 %v9684_v1 }
 0x57a   : > { %6033 = vmatpush3.bf16.msra.mxu0 %v6032_v0 }
 0x57b   : > { %6034 = vmatprep.subr.bf16.mxu0 %v9684_v1 }
 0x57e   : > { %6036 = vmatpush3.bf16.msra.mxu0 %v6035_v62 }
 0x5e2   : > { %v3684_v53 = vpop.f32.mrb[12].mxu1 }
 0x5e3   : > { %v3686_v63 = vpop.f32.mrb[13].mxu1 }
 0x5e4   : > { %v3612_v30 = vpop.f32.mrb[12].mxu0 }
 0x5e5   : > { %v3685_v29 = vadd.f32 %v3684_v53, %v3612_v30  ;;  %v3614_v58 = vpop.f32.mrb[13].mxu0 }
 0x612   : > { %v3883_v16 = vpop.f32.mrb[14].mxu1 }
 0x613   : > { %v3885_v1 = vpop.f32.mrb[15].mxu1 }
 0x614   : > { %v3783_v44 = vpop.f32.mrb[14].mxu0 }
 0x615   : > { %v3787_v52 = vadd.f32 %v3783_v44, %v3685_v29  ;;  %v3785_v6 = vpop.f32.mrb[15].mxu0 }
 0x617   : > { %v3887_v28 = vadd.f32 %v3883_v16, %v3787_v52 }
 0x642   : > { %v4083_v24 = vpop.f32.mrb[16].mxu1 }
 0x643   : > { %v4085_v20 = vpop.f32.mrb[17].mxu1 }
 0x644   : > { %v3983_v14 = vpop.f32.mrb[16].mxu0 }
 0x645   : > { %v3987_v54 = vadd.f32 %v3983_v14, %v3887_v28  ;;  %v3985_v45 = vpop.f32.mrb[17].mxu0 }
 0x647   : > { %v4087_v12 = vadd.f32 %v4083_v24, %v3987_v54 }
 0x649   : > { %v4089_v43 = vadd.f32 %v4088_v11, %v4087_v12 }
 0x64b   : > { %v4090_v51 = vmax.f32 %v4089_v43, 0.0 }
 0x64d   : > { %4601 = vmatmul.mubr.msk.f32.vlgmr.msra.gmra.mrb[18].mxu0 %vm3457_vm3, %v4090_v51 }
 0x720   : > { %v4169_v32 = vpop.f32.mrb[18].mxu0 }
 0x721   : > { %v4170_v46 = vadd.f32 %v4169_v32, %v4099_v5  ;;  %v4602_v34 = vpop.f32.mrb[19].mxu0 }
 0x723   : > { %4174 = vst.msk [vmem:[%s324_s23] sm:$0x1] %vm4173_vm5, %v4170_v46 }
 0x724   : > { %6142 = shalt.err (!%p6139_p3)
}
 0x725   : > { %s6143_s27 = scalar_lea.hbm %s9400_s28, 16  ;;  %s6147_s23 = scalar_lea.hbm %s9451_s9, 32 }
 0x726   : > { %p6144_p4 = scmp.ne.s32.totalorder %s9400_s28, %s6143_s27  ;;  %p6148_p9 = scmp.lt.u32.totalorder %s9400_s28, %s9451_s9 }
 0x727   : > { %p6149_p10 = scmp.lt.u32.totalorder %s6147_s23, %s6143_s27  ;;  %p6151_p12 = scmp.lt.u32.totalorder %s6143_s27, %s9400_s28 }
 0x728   : > { %p6145_p7 = pnand %p6144_p4, %p6287_p5 }
 0x729   : > { %p6150_p11 = por %p6149_p10, %p6148_p9 }
 0x72a   : > { %p6146_p8 = pneg %p6145_p7 }
 0x72b   : > { %p6152_p13 = por %p6151_p12, %p6150_p11 }
 0x72d   : > { %p6153_p0 = pnand %p6152_p13, %p6146_p8 }
 0x72f   : > { %6156 = shalt.err (!%p6153_p0)
}
 0x730   : > { %6085 = dma.vmem_to_hbm [thread:$0]  (%p6287_p5), %s9402_s24, 16, %s9400_s28, %s4176_s22  }
 0x731 PF: > { %p6091_p1 = scmp.ge.s32.totalorder %s6191_s12, 2  ;;  %s4200_s29 = sand.u32 1, %s6179_s30  }
 0x732   : > { %s4201_s13 = scalar_lea.sflag [#allocation3], %s4200_s29 }
 0x733   : > { %p6088_p2 = pnand %p6091_p1, %p6291_p6 }
 0x735   : > { %6174 = dma.done.wait (!%p6088_p2), %s4201_s13, 16  }
 0x736   : > { %6176 = vsyncadd (!%p6088_p2), %s4201_s13, 4294967280  ;;  %p19_p3 = scmp.ge.s32.totalorder %s6274_s15, 4   ;;  %s9841_s30 = smov %s6183_s10 }
 0x737   : > { %s9842_s10 = smov %s6187_s11  ;;  %s9843_s11 = smov %s6285_s18 }
 0x738   : > { %s9844_s12 = smov %s6274_s15  ;;  %21 = sbr.rel (!%p19_p3) target bundleno = 3 (0x3), region = 98 }
 0x73f   :  { %4205 = vsyncpa [#allocation3], 1 }
 0x740   :  { %4207 = vsyncpa [#allocation3 + $0x1], 1 }

</bundles_post_ra>
